<compile_context>
chip_gen: v7x
topology: tpu7x:2x2x1
jax: 0.10.0
libtpu: 0.0.40
codegen_flags: <defaults>
</compile_context>

<pallas_src>
import functools

import jax
import jax.numpy as jnp
from jax.experimental import pallas as pl
from jax.experimental.pallas import tpu as pltpu


# ----------------------------------------------------------------------------
# Pallas kernels
# ----------------------------------------------------------------------------
def _gemm_bias_act_kernel(w_ref, p_ref, b_ref, o_ref, *, activation):
    # w_ref: (Cout, K), p_ref: (K, TM), b_ref: (Cout, 1), o_ref: (Cout, TM)
    acc = (
        jnp.dot(w_ref[...], p_ref[...], preferred_element_type=jnp.float32)
        + b_ref[...]
    )
    if activation == "tanh_half":
        acc = jnp.tanh(acc) * 0.5 + 0.5
    o_ref[...] = acc


def _instnorm_lrelu_kernel(x_ref, o_ref):
    # x_ref: (RT, S) -- rows are (n, c) instances, lanes are the spatial axis.
    # InstanceNorm3d(eps=1e-5, affine=False) + LeakyReLU(0.01).
    x = x_ref[...]
    mean = jnp.mean(x, axis=1, keepdims=True)
    xc = x - mean
    var = jnp.mean(xc * xc, axis=1, keepdims=True)  # biased variance (torch)
    xn = xc * jax.lax.rsqrt(var + 1e-5)
    o_ref[...] = jnp.where(xn >= 0, xn, 0.01 * xn)


# ----------------------------------------------------------------------------
# Pallas wrappers
# ----------------------------------------------------------------------------
def _round_up(x, m):
    return ((x + m - 1) // m) * m


def gemm_bias(w_mat, patches, bias, activation=None):
    """(Cout, K) @ (K, M) + bias -> (Cout, M), output lane-dense along M."""
    Cout, K = w_mat.shape
    M = patches.shape[1]

    m128 = _round_up(M, 128)
    if m128 <= 1024:
        tm, m_pad = m128, m128                 # single block for small levels
    else:
        tm, m_pad = 1024, _round_up(M, 1024)   # big levels: 1024-wide tiles

    if m_pad != M:
        patches = jnp.pad(patches, ((0, 0), (0, m_pad - M)))

    out = pl.pallas_call(
        functools.partial(_gemm_bias_act_kernel, activation=activation),
        out_shape=jax.ShapeDtypeStruct((Cout, m_pad), jnp.float32),
        grid=(m_pad // tm,),
        in_specs=[
            pl.BlockSpec((Cout, K), lambda i: (0, 0)),   # weights stay resident
            pl.BlockSpec((K, tm), lambda i: (0, i)),
            pl.BlockSpec((Cout, 1), lambda i: (0, 0)),
        ],
        out_specs=pl.BlockSpec((Cout, tm), lambda i: (0, i)),
        compiler_params=pltpu.CompilerParams(dimension_semantics=("parallel",)),
    )(w_mat, patches, bias.reshape(Cout, 1))
    return out[:, :M]


def instancenorm_leakyrelu(x):
    """x: [N, C, D, H, W] -> InstanceNorm3d + LeakyReLU(0.01), lane-dense in S."""
    N, C, D, H, W = x.shape
    S = D * H * W
    NC = N * C
    xf = x.reshape(NC, S)
    rt = 8 if (NC % 8 == 0 and NC > 8) else NC
    out = pl.pallas_call(
        _instnorm_lrelu_kernel,
        out_shape=jax.ShapeDtypeStruct((NC, S), x.dtype),
        grid=(NC // rt,),
        in_specs=[pl.BlockSpec((rt, S), lambda i: (i, 0))],
        out_specs=pl.BlockSpec((rt, S), lambda i: (i, 0)),
        compiler_params=pltpu.CompilerParams(dimension_semantics=("parallel",)),
    )(xf)
    return out.reshape(N, C, D, H, W)


# ----------------------------------------------------------------------------
# Conv building blocks (im2col in JAX glue, GEMM + epilogue in Pallas)
# ----------------------------------------------------------------------------
def conv3d(x, w, b, stride=1, padding=0, activation=None):
    """x: [N,Cin,D,H,W]; w: [Cout,Cin,KD,KH,KW] (torch layout); b: [Cout]."""
    N, Cin = x.shape[0], x.shape[1]
    Cout, _, KD, KH, KW = w.shape
    if padding > 0:
        p = padding
        x = jnp.pad(x, ((0, 0), (0, 0), (p, p), (p, p), (p, p)))
    Dp, Hp, Wp = x.shape[2], x.shape[3], x.shape[4]
    OD = (Dp - KD) // stride + 1
    OH = (Hp - KH) // stride + 1
    OW = (Wp - KW) // stride + 1

    cols = []
    for kd in range(KD):
        for kh in range(KH):
            for kw in range(KW):
                cols.append(
                    x[:, :,
                      kd : kd + (OD - 1) * stride + 1 : stride,
                      kh : kh + (OH - 1) * stride + 1 : stride,
                      kw : kw + (OW - 1) * stride + 1 : stride]
                )
    pat = jnp.stack(cols, axis=2)                       # [N, Cin, T, OD, OH, OW]
    pat = jnp.transpose(pat, (1, 2, 0, 3, 4, 5)).reshape(
        Cin * KD * KH * KW, N * OD * OH * OW)           # K rows, M lanes
    w_mat = w.reshape(Cout, Cin * KD * KH * KW)         # (cin, kd, kh, kw) order

    out = gemm_bias(w_mat, pat, b, activation=activation)   # [Cout, M]
    out = out.reshape(Cout, N, OD, OH, OW)
    return jnp.transpose(out, (1, 0, 2, 3, 4))


def conv_transpose3d(x, w, b):
    """ConvTranspose3d(kernel=4, stride=2) via sub-pixel decomposition.

    x: [N,Cin,D,H,W]; w: [Cin,Cout,4,4,4] (torch ConvTranspose layout); b: [Cout].
    All 8 output-parity classes share one 2x2x2-tap patch matrix; their weights
    are stacked into a single (8*Cout, Cin*8) matrix -> one Pallas GEMM.
    """
    N, Cin, D, H, W = x.shape
    Cout = w.shape[1]
    OD, OH, OW = D + 1, H + 1, W + 1                    # per-parity output extent

    # Shared patch matrix: taps (a,b,c) in {0,1}^3 over x padded by 1.
    xp = jnp.pad(x, ((0, 0), (0, 0), (1, 1), (1, 1), (1, 1)))
    cols = []
    for a in range(2):
        for bb in range(2):
            for c in range(2):
                cols.append(xp[:, :, a : a + OD, bb : bb + OH, c : c + OW])
    pat = jnp.stack(cols, axis=2)                       # [N, Cin, 8, OD, OH, OW]
    pat = jnp.transpose(pat, (1, 2, 0, 3, 4, 5)).reshape(Cin * 8, N * OD * OH * OW)

    # Weights: class (pd,ph,pw), tap (a,b,c) -> w[cin, cout, pd+2*(1-a), ...].
    kidx = jnp.arange(2)[:, None] + 2 * (1 - jnp.arange(2)[None, :])  # [[2,0],[3,1]]
    wt = jnp.transpose(w, (1, 0, 2, 3, 4))              # [Cout, Cin, 4, 4, 4]
    wt = jnp.take(wt, kidx, axis=2)                     # [Cout, Cin, pd, a, 4, 4]
    wt = jnp.take(wt, kidx, axis=4)                     # [Cout, Cin, pd, a, ph, b, 4]
    wt = jnp.take(wt, kidx, axis=6)                     # [Cout, Cin, pd,a, ph,b, pw,c]
    w_sub = jnp.transpose(wt, (2, 4, 6, 0, 1, 3, 5, 7)).reshape(8 * Cout, Cin * 8)
    bias = jnp.tile(b, 8)                               # row p*Cout+cout -> b[cout]

    out = gemm_bias(w_sub, pat, bias)                   # [8*Cout, N*OD*OH*OW]
    out = out.reshape(2, 2, 2, Cout, N, OD, OH, OW)     # [pd, ph, pw, cout, n, ...]
    out = jnp.transpose(out, (4, 3, 5, 0, 6, 1, 7, 2))  # [n, cout, OD,pd, OH,ph, OW,pw]
    return out.reshape(N, Cout, 2 * OD, 2 * OH, 2 * OW)


def double_conv(x, p):
    x = conv3d(x, p["w1"], p["b1"], stride=1, padding=1)
    x = instancenorm_leakyrelu(x)
    x = conv3d(x, p["w2"], p["b2"], stride=1, padding=1)
    x = instancenorm_leakyrelu(x)
    return x


def down(x, p):
    x = conv3d(x, p["wd"], p["bd"], stride=2, padding=0)   # kernel_size=4, stride=2
    return double_conv(x, p["dc"])


def up(x1, x2, p):
    x1 = conv_transpose3d(x1, p["wu"], p["bu"])
    # Reproduce the torch F.pad quirk exactly: the "diff_d" pair pads the LAST
    # (W) axis, "diff_h" pads H, "diff_w" pads D.
    diff_d = x2.shape[2] - x1.shape[2]
    diff_h = x2.shape[3] - x1.shape[3]
    diff_w = x2.shape[4] - x1.shape[4]
    assert diff_d >= 0 and diff_h >= 0 and diff_w >= 0, "up-path size mismatch"
    x1 = jnp.pad(
        x1,
        (
            (0, 0),
            (0, 0),
            (diff_w // 2, diff_w - diff_w // 2),   # D axis gets diff_w (torch quirk)
            (diff_h // 2, diff_h - diff_h // 2),   # H axis gets diff_h
            (diff_d // 2, diff_d - diff_d // 2),   # W axis gets diff_d (torch quirk)
        ),
    )
    x = x2 + x1
    return double_conv(x, p["dc"])


# ----------------------------------------------------------------------------
# VNet forward
# ----------------------------------------------------------------------------
def vnet_forward(x, params):
    # x: [N, 1, D, H, W]  (NCDHW, same as torch)
    xi = [double_conv(x * 2.0 - 1.0, params["dc0"])]
    for lp in params["down"]:
        xi.append(down(xi[-1], lp))
    for i, lp in enumerate(params["up"]):
        xi[-1] = up(xi[-1], xi[-2 - i], lp)
    # Final 1x1x1 conv with tanh/2 + 0.5 fused into the Pallas GEMM epilogue.
    return conv3d(xi[-1], params["final"]["w"], params["final"]["b"],
                  stride=1, padding=0, activation="tanh_half")


# ----------------------------------------------------------------------------
# Deterministic parameter initialization (shapes follow the torch module)
# ----------------------------------------------------------------------------
def _conv_init(key, cin, cout, k):
    k1, k2 = jax.random.split(key)
    bound = 1.0 / float((cin * k * k * k) ** 0.5)
    w = jax.random.uniform(k1, (cout, cin, k, k, k), jnp.float32, -bound, bound)
    b = jax.random.uniform(k2, (cout,), jnp.float32, -bound, bound)
    return w, b


def _convT_init(key, cin, cout, k):
    k1, k2 = jax.random.split(key)
    bound = 1.0 / float((cin * k * k * k) ** 0.5)
    w = jax.random.uniform(k1, (cin, cout, k, k, k), jnp.float32, -bound, bound)
    b = jax.random.uniform(k2, (cout,), jnp.float32, -bound, bound)
    return w, b


def init_vnet_params(key, nb_class=1, nb_layer=3, features=4):
    keys = iter(jax.random.split(key, 64))

    def dc(cin, cout):
        w1, b1 = _conv_init(next(keys), cin, cout, 3)
        w2, b2 = _conv_init(next(keys), cout, cout, 3)
        return {"w1": w1, "b1": b1, "w2": w2, "b2": b2}

    params = {"dc0": dc(1, features), "down": [], "up": [], "final": None}
    feats = features
    for _ in range(nb_layer - 1):
        wd, bd = _conv_init(next(keys), feats, feats, 4)
        params["down"].append({"wd": wd, "bd": bd, "dc": dc(feats, feats * 2)})
        feats *= 2
    for _ in range(nb_layer - 1):
        wu, bu = _convT_init(next(keys), feats, feats // 2, 4)
        params["up"].append({"wu": wu, "bu": bu, "dc": dc(feats // 2, feats // 2)})
        feats //= 2
    wf, bf = _conv_init(next(keys), feats, nb_class, 1)
    params["final"] = {"w": wf, "b": bf}
    return params


# ----------------------------------------------------------------------------
if __name__ == "__main__":
    key = jax.random.PRNGKey(0)
    kx, kp = jax.random.split(key)

    # Small configuration consistent with the module: nb_class=1, nb_layer=3,
    # features=4, input volume 16^3 with a single channel (NCDHW like torch).
    N, D, H, W = 1, 16, 16, 16
    x = jax.random.uniform(kx, (N, 1, D, H, W), jnp.float32)
    params = init_vnet_params(kp, nb_class=1, nb_layer=3, features=4)

    fwd = jax.jit(vnet_forward)
    y = jax.block_until_ready(fwd(x, params))

    assert y.shape == (N, 1, D, H, W), y.shape
    assert bool(jnp.all(jnp.isfinite(y)))
    assert bool(jnp.all((y >= 0.0) & (y <= 1.0)))  # tanh/2 + 0.5 range
    print("KERNEL_OK")
</pallas_src>

<mosaic_0001>
module attributes {stable_mosaic.version = 11 : i64} {
  func.func @_gemm_bias_act_kernel(%arg0: i32, %arg1: memref<4x27xf32, #tpu.memory_space<vmem>>, %arg2: memref<27x1024xf32, #tpu.memory_space<vmem>>, %arg3: memref<4x1xf32, #tpu.memory_space<vmem>>, %arg4: memref<4x1024xf32, #tpu.memory_space<vmem>>) attributes {dimension_semantics = [#tpu.dimension_semantics<parallel>], iteration_bounds = array<i64: 4>, scalar_prefetch = 0 : i64, scratch_operands = 0 : i64, tpu.core_type = #tpu.core_type<tc>, window_params = [{pipeline_mode = #tpu.pipeline_mode<synchronous>, transform_indices = @transform_0, window_bounds = array<i64: 4, 27>}, {transform_indices = @transform_1, window_bounds = array<i64: 27, 1024>}, {pipeline_mode = #tpu.pipeline_mode<synchronous>, transform_indices = @transform_2, window_bounds = array<i64: 4, 1>}, {transform_indices = @transform_3, window_bounds = array<i64: 4, 1024>}]} {
    %c0 = arith.constant 0 : index
    %c0_0 = arith.constant 0 : index
    %0 = vector.load %arg1[%c0, %c0_0] : memref<4x27xf32, #tpu.memory_space<vmem>>, vector<4x27xf32>
    %c0_1 = arith.constant 0 : index
    %c0_2 = arith.constant 0 : index
    %1 = vector.load %arg2[%c0_1, %c0_2] : memref<27x1024xf32, #tpu.memory_space<vmem>>, vector<27x1024xf32>
    %cst = arith.constant dense<0.000000e+00> : vector<4x1024xf32>
    %2 = tpu.matmul %0, %1, %cst {dimension_numbers = #tpu.dot_dimension_numbers<[1], [0], [0], [1], [0, 0, 1, 1], [], []>} : vector<4x27xf32>, vector<27x1024xf32>, vector<4x1024xf32> -> vector<4x1024xf32>
    %c0_3 = arith.constant 0 : index
    %c0_4 = arith.constant 0 : index
    %3 = vector.load %arg3[%c0_3, %c0_4] : memref<4x1xf32, #tpu.memory_space<vmem>>, vector<4x1xf32>
    %4 = vector.broadcast %3 : vector<4x1xf32> to vector<4x1024xf32>
    %5 = arith.addf %2, %4 : vector<4x1024xf32>
    %c0_5 = arith.constant 0 : index
    %c0_6 = arith.constant 0 : index
    %6 = vector.load %arg4[%c0_5, %c0_6] : memref<4x1024xf32, #tpu.memory_space<vmem>>, vector<4x1024xf32>
    tpu.vector_store %arg4[%c0_5, %c0_6], %5 {strides = array<i32>} : memref<4x1024xf32, #tpu.memory_space<vmem>>, vector<4x1024xf32>,
    return
  }
  func.func @transform_0(%arg0: i32) -> (i32, i32) {
    %c0_i32 = arith.constant 0 : i32
    %c0_i32_0 = arith.constant 0 : i32
    %c0_i32_1 = arith.constant 0 : i32
    return %c0_i32, %c0_i32_0 : i32, i32
  }
  func.func @transform_1(%arg0: i32) -> (i32, i32) {
    %c0_i32 = arith.constant 0 : i32
    %c0_i32_0 = arith.constant 0 : i32
    return %c0_i32, %arg0 : i32, i32
  }
  func.func @transform_2(%arg0: i32) -> (i32, i32) {
    %c0_i32 = arith.constant 0 : i32
    %c0_i32_0 = arith.constant 0 : i32
    %c0_i32_1 = arith.constant 0 : i32
    return %c0_i32, %c0_i32_0 : i32, i32
  }
  func.func @transform_3(%arg0: i32) -> (i32, i32) {
    %c0_i32 = arith.constant 0 : i32
    %c0_i32_0 = arith.constant 0 : i32
    return %c0_i32, %arg0 : i32, i32
  }
}

module attributes {stable_mosaic.version = 11 : i64} {
  func.func @_instnorm_lrelu_kernel(%arg0: i32, %arg1: memref<4x4096xf32, #tpu.memory_space<vmem>>, %arg2: memref<4x4096xf32, #tpu.memory_space<vmem>>) attributes {dimension_semantics = [#tpu.dimension_semantics<parallel>], iteration_bounds = array<i64: 1>, scalar_prefetch = 0 : i64, scratch_operands = 0 : i64, tpu.core_type = #tpu.core_type<tc>, window_params = [{transform_indices = @transform_0, window_bounds = array<i64: 4, 4096>}, {transform_indices = @transform_1, window_bounds = array<i64: 4, 4096>}]} {
    %c0 = arith.constant 0 : index
    %c0_0 = arith.constant 0 : index
    %0 = vector.load %arg1[%c0, %c0_0] : memref<4x4096xf32, #tpu.memory_space<vmem>>, vector<4x4096xf32>
    %cst = arith.constant dense<0.000000e+00> : vector<4xf32>
    %1 = vector.multi_reduction <add>, %0, %cst [1] : vector<4x4096xf32> to vector<4xf32>
    %2 = vector.shape_cast %1 : vector<4xf32> to vector<4x1xf32>
    %cst_1 = arith.constant 4.096000e+03 : f32
    %3 = vector.broadcast %cst_1 : f32 to vector<4x1xf32>
    %4 = arith.divf %2, %3 : vector<4x1xf32>
    %5 = vector.broadcast %4 : vector<4x1xf32> to vector<4x4096xf32>
    %6 = arith.subf %0, %5 : vector<4x4096xf32>
    %7 = arith.mulf %6, %6 : vector<4x4096xf32>
    %cst_2 = arith.constant dense<0.000000e+00> : vector<4xf32>
    %8 = vector.multi_reduction <add>, %7, %cst_2 [1] : vector<4x4096xf32> to vector<4xf32>
    %9 = vector.shape_cast %8 : vector<4xf32> to vector<4x1xf32>
    %cst_3 = arith.constant 4.096000e+03 : f32
    %10 = vector.broadcast %cst_3 : f32 to vector<4x1xf32>
    %11 = arith.divf %9, %10 : vector<4x1xf32>
    %cst_4 = arith.constant 9.99999974E-6 : f32
    %12 = vector.broadcast %cst_4 : f32 to vector<4x1xf32>
    %13 = arith.addf %11, %12 : vector<4x1xf32>
    %14 = math.rsqrt %13 : vector<4x1xf32>
    %15 = vector.broadcast %14 : vector<4x1xf32> to vector<4x4096xf32>
    %16 = arith.mulf %6, %15 : vector<4x4096xf32>
    %cst_5 = arith.constant 0.000000e+00 : f32
    %17 = vector.broadcast %cst_5 : f32 to vector<4x4096xf32>
    %18 = arith.cmpf oge, %16, %17 : vector<4x4096xf32>
    %cst_6 = arith.constant 0.00999999977 : f32
    %19 = vector.broadcast %cst_6 : f32 to vector<4x4096xf32>
    %20 = arith.mulf %19, %16 : vector<4x4096xf32>
    %21 = arith.select %18, %16, %20 : vector<4x4096xi1>, vector<4x4096xf32>
    %c0_7 = arith.constant 0 : index
    %c0_8 = arith.constant 0 : index
    %22 = vector.load %arg2[%c0_7, %c0_8] : memref<4x4096xf32, #tpu.memory_space<vmem>>, vector<4x4096xf32>
    tpu.vector_store %arg2[%c0_7, %c0_8], %21 {strides = array<i32>} : memref<4x4096xf32, #tpu.memory_space<vmem>>, vector<4x4096xf32>,
    return
  }
  func.func @transform_0(%arg0: i32) -> (i32, i32) {
    %c0_i32 = arith.constant 0 : i32
    %c0_i32_0 = arith.constant 0 : i32
    return %arg0, %c0_i32 : i32, i32
  }
  func.func @transform_1(%arg0: i32) -> (i32, i32) {
    %c0_i32 = arith.constant 0 : i32
    %c0_i32_0 = arith.constant 0 : i32
    return %arg0, %c0_i32 : i32, i32
  }
}

module attributes {stable_mosaic.version = 11 : i64} {
  func.func @_gemm_bias_act_kernel(%arg0: i32, %arg1: memref<4x108xf32, #tpu.memory_space<vmem>>, %arg2: memref<108x1024xf32, #tpu.memory_space<vmem>>, %arg3: memref<4x1xf32, #tpu.memory_space<vmem>>, %arg4: memref<4x1024xf32, #tpu.memory_space<vmem>>) attributes {dimension_semantics = [#tpu.dimension_semantics<parallel>], iteration_bounds = array<i64: 4>, scalar_prefetch = 0 : i64, scratch_operands = 0 : i64, tpu.core_type = #tpu.core_type<tc>, window_params = [{pipeline_mode = #tpu.pipeline_mode<synchronous>, transform_indices = @transform_0, window_bounds = array<i64: 4, 108>}, {transform_indices = @transform_1, window_bounds = array<i64: 108, 1024>}, {pipeline_mode = #tpu.pipeline_mode<synchronous>, transform_indices = @transform_2, window_bounds = array<i64: 4, 1>}, {transform_indices = @transform_3, window_bounds = array<i64: 4, 1024>}]} {
    %c0 = arith.constant 0 : index
    %c0_0 = arith.constant 0 : index
    %0 = vector.load %arg1[%c0, %c0_0] : memref<4x108xf32, #tpu.memory_space<vmem>>, vector<4x108xf32>
    %c0_1 = arith.constant 0 : index
    %c0_2 = arith.constant 0 : index
    %1 = vector.load %arg2[%c0_1, %c0_2] : memref<108x1024xf32, #tpu.memory_space<vmem>>, vector<108x1024xf32>
    %cst = arith.constant dense<0.000000e+00> : vector<4x1024xf32>
    %2 = tpu.matmul %0, %1, %cst {dimension_numbers = #tpu.dot_dimension_numbers<[1], [0], [0], [1], [0, 0, 1, 1], [], []>} : vector<4x108xf32>, vector<108x1024xf32>, vector<4x1024xf32> -> vector<4x1024xf32>
    %c0_3 = arith.constant 0 : index
    %c0_4 = arith.constant 0 : index
    %3 = vector.load %arg3[%c0_3, %c0_4] : memref<4x1xf32, #tpu.memory_space<vmem>>, vector<4x1xf32>
    %4 = vector.broadcast %3 : vector<4x1xf32> to vector<4x1024xf32>
    %5 = arith.addf %2, %4 : vector<4x1024xf32>
    %c0_5 = arith.constant 0 : index
    %c0_6 = arith.constant 0 : index
    %6 = vector.load %arg4[%c0_5, %c0_6] : memref<4x1024xf32, #tpu.memory_space<vmem>>, vector<4x1024xf32>
    tpu.vector_store %arg4[%c0_5, %c0_6], %5 {strides = array<i32>} : memref<4x1024xf32, #tpu.memory_space<vmem>>, vector<4x1024xf32>,
    return
  }
  func.func @transform_0(%arg0: i32) -> (i32, i32) {
    %c0_i32 = arith.constant 0 : i32
    %c0_i32_0 = arith.constant 0 : i32
    %c0_i32_1 = arith.constant 0 : i32
    return %c0_i32, %c0_i32_0 : i32, i32
  }
  func.func @transform_1(%arg0: i32) -> (i32, i32) {
    %c0_i32 = arith.constant 0 : i32
    %c0_i32_0 = arith.constant 0 : i32
    return %c0_i32, %arg0 : i32, i32
  }
  func.func @transform_2(%arg0: i32) -> (i32, i32) {
    %c0_i32 = arith.constant 0 : i32
    %c0_i32_0 = arith.constant 0 : i32
    %c0_i32_1 = arith.constant 0 : i32
    return %c0_i32, %c0_i32_0 : i32, i32
  }
  func.func @transform_3(%arg0: i32) -> (i32, i32) {
    %c0_i32 = arith.constant 0 : i32
    %c0_i32_0 = arith.constant 0 : i32
    return %c0_i32, %arg0 : i32, i32
  }
}

module attributes {stable_mosaic.version = 11 : i64} {
  func.func @_gemm_bias_act_kernel(%arg0: i32, %arg1: memref<4x256xf32, #tpu.memory_space<vmem>>, %arg2: memref<256x384xf32, #tpu.memory_space<vmem>>, %arg3: memref<4x1xf32, #tpu.memory_space<vmem>>, %arg4: memref<4x384xf32, #tpu.memory_space<vmem>>) attributes {dimension_semantics = [#tpu.dimension_semantics<parallel>], iteration_bounds = array<i64: 1>, scalar_prefetch = 0 : i64, scratch_operands = 0 : i64, tpu.core_type = #tpu.core_type<tc>, window_params = [{pipeline_mode = #tpu.pipeline_mode<synchronous>, transform_indices = @transform_0, window_bounds = array<i64: 4, 256>}, {transform_indices = @transform_1, window_bounds = array<i64: 256, 384>}, {pipeline_mode = #tpu.pipeline_mode<synchronous>, transform_indices = @transform_2, window_bounds = array<i64: 4, 1>}, {transform_indices = @transform_3, window_bounds = array<i64: 4, 384>}]} {
    %c0 = arith.constant 0 : index
    %c0_0 = arith.constant 0 : index
    %0 = vector.load %arg1[%c0, %c0_0] : memref<4x256xf32, #tpu.memory_space<vmem>>, vector<4x256xf32>
    %c0_1 = arith.constant 0 : index
    %c0_2 = arith.constant 0 : index
    %1 = vector.load %arg2[%c0_1, %c0_2] : memref<256x384xf32, #tpu.memory_space<vmem>>, vector<256x384xf32>
    %cst = arith.constant dense<0.000000e+00> : vector<4x384xf32>
    %2 = tpu.matmul %0, %1, %cst {dimension_numbers = #tpu.dot_dimension_numbers<[1], [0], [0], [1], [0, 0, 1, 1], [], []>} : vector<4x256xf32>, vector<256x384xf32>, vector<4x384xf32> -> vector<4x384xf32>
    %c0_3 = arith.constant 0 : index
    %c0_4 = arith.constant 0 : index
    %3 = vector.load %arg3[%c0_3, %c0_4] : memref<4x1xf32, #tpu.memory_space<vmem>>, vector<4x1xf32>
    %4 = vector.broadcast %3 : vector<4x1xf32> to vector<4x384xf32>
    %5 = arith.addf %2, %4 : vector<4x384xf32>
    %c0_5 = arith.constant 0 : index
    %c0_6 = arith.constant 0 : index
    %6 = vector.load %arg4[%c0_5, %c0_6] : memref<4x384xf32, #tpu.memory_space<vmem>>, vector<4x384xf32>
    tpu.vector_store %arg4[%c0_5, %c0_6], %5 {strides = array<i32>} : memref<4x384xf32, #tpu.memory_space<vmem>>, vector<4x384xf32>,
    return
  }
  func.func @transform_0(%arg0: i32) -> (i32, i32) {
    %c0_i32 = arith.constant 0 : i32
    %c0_i32_0 = arith.constant 0 : i32
    %c0_i32_1 = arith.constant 0 : i32
    return %c0_i32, %c0_i32_0 : i32, i32
  }
  func.func @transform_1(%arg0: i32) -> (i32, i32) {
    %c0_i32 = arith.constant 0 : i32
    %c0_i32_0 = arith.constant 0 : i32
    return %c0_i32, %arg0 : i32, i32
  }
  func.func @transform_2(%arg0: i32) -> (i32, i32) {
    %c0_i32 = arith.constant 0 : i32
    %c0_i32_0 = arith.constant 0 : i32
    %c0_i32_1 = arith.constant 0 : i32
    return %c0_i32, %c0_i32_0 : i32, i32
  }
  func.func @transform_3(%arg0: i32) -> (i32, i32) {
    %c0_i32 = arith.constant 0 : i32
    %c0_i32_0 = arith.constant 0 : i32
    return %c0_i32, %arg0 : i32, i32
  }
}

module attributes {stable_mosaic.version = 11 : i64} {
  func.func @_instnorm_lrelu_kernel(%arg0: i32, %arg1: memref<8x343xf32, #tpu.memory_space<vmem>>, %arg2: memref<8x343xf32, #tpu.memory_space<vmem>>) attributes {dimension_semantics = [#tpu.dimension_semantics<parallel>], iteration_bounds = array<i64: 1>, scalar_prefetch = 0 : i64, scratch_operands = 0 : i64, tpu.core_type = #tpu.core_type<tc>, window_params = [{transform_indices = @transform_0, window_bounds = array<i64: 8, 343>}, {transform_indices = @transform_1, window_bounds = array<i64: 8, 343>}]} {
    %c0 = arith.constant 0 : index
    %c0_0 = arith.constant 0 : index
    %0 = vector.load %arg1[%c0, %c0_0] : memref<8x343xf32, #tpu.memory_space<vmem>>, vector<8x343xf32>
    %cst = arith.constant dense<0.000000e+00> : vector<8xf32>
    %1 = vector.multi_reduction <add>, %0, %cst [1] : vector<8x343xf32> to vector<8xf32>
    %2 = vector.shape_cast %1 : vector<8xf32> to vector<8x1xf32>
    %cst_1 = arith.constant 3.430000e+02 : f32
    %3 = vector.broadcast %cst_1 : f32 to vector<8x1xf32>
    %4 = arith.divf %2, %3 : vector<8x1xf32>
    %5 = vector.broadcast %4 : vector<8x1xf32> to vector<8x343xf32>
    %6 = arith.subf %0, %5 : vector<8x343xf32>
    %7 = arith.mulf %6, %6 : vector<8x343xf32>
    %cst_2 = arith.constant dense<0.000000e+00> : vector<8xf32>
    %8 = vector.multi_reduction <add>, %7, %cst_2 [1] : vector<8x343xf32> to vector<8xf32>
    %9 = vector.shape_cast %8 : vector<8xf32> to vector<8x1xf32>
    %cst_3 = arith.constant 3.430000e+02 : f32
    %10 = vector.broadcast %cst_3 : f32 to vector<8x1xf32>
    %11 = arith.divf %9, %10 : vector<8x1xf32>
    %cst_4 = arith.constant 9.99999974E-6 : f32
    %12 = vector.broadcast %cst_4 : f32 to vector<8x1xf32>
    %13 = arith.addf %11, %12 : vector<8x1xf32>
    %14 = math.rsqrt %13 : vector<8x1xf32>
    %15 = vector.broadcast %14 : vector<8x1xf32> to vector<8x343xf32>
    %16 = arith.mulf %6, %15 : vector<8x343xf32>
    %cst_5 = arith.constant 0.000000e+00 : f32
    %17 = vector.broadcast %cst_5 : f32 to vector<8x343xf32>
    %18 = arith.cmpf oge, %16, %17 : vector<8x343xf32>
    %cst_6 = arith.constant 0.00999999977 : f32
    %19 = vector.broadcast %cst_6 : f32 to vector<8x343xf32>
    %20 = arith.mulf %19, %16 : vector<8x343xf32>
    %21 = arith.select %18, %16, %20 : vector<8x343xi1>, vector<8x343xf32>
    %c0_7 = arith.constant 0 : index
    %c0_8 = arith.constant 0 : index
    %22 = vector.load %arg2[%c0_7, %c0_8] : memref<8x343xf32, #tpu.memory_space<vmem>>, vector<8x343xf32>
    tpu.vector_store %arg2[%c0_7, %c0_8], %21 {strides = array<i32>} : memref<8x343xf32, #tpu.memory_space<vmem>>, vector<8x343xf32>,
    return
  }
  func.func @transform_0(%arg0: i32) -> (i32, i32) {
    %c0_i32 = arith.constant 0 : i32
    %c0_i32_0 = arith.constant 0 : i32
    return %arg0, %c0_i32 : i32, i32
  }
  func.func @transform_1(%arg0: i32) -> (i32, i32) {
    %c0_i32 = arith.constant 0 : i32
    %c0_i32_0 = arith.constant 0 : i32
    return %arg0, %c0_i32 : i32, i32
  }
}

module attributes {stable_mosaic.version = 11 : i64} {
  func.func @_gemm_bias_act_kernel(%arg0: i32, %arg1: memref<8x108xf32, #tpu.memory_space<vmem>>, %arg2: memref<108x384xf32, #tpu.memory_space<vmem>>, %arg3: memref<8x1xf32, #tpu.memory_space<vmem>>, %arg4: memref<8x384xf32, #tpu.memory_space<vmem>>) attributes {dimension_semantics = [#tpu.dimension_semantics<parallel>], iteration_bounds = array<i64: 1>, scalar_prefetch = 0 : i64, scratch_operands = 0 : i64, tpu.core_type = #tpu.core_type<tc>, window_params = [{pipeline_mode = #tpu.pipeline_mode<synchronous>, transform_indices = @transform_0, window_bounds = array<i64: 8, 108>}, {transform_indices = @transform_1, window_bounds = array<i64: 108, 384>}, {pipeline_mode = #tpu.pipeline_mode<synchronous>, transform_indices = @transform_2, window_bounds = array<i64: 8, 1>}, {transform_indices = @transform_3, window_bounds = array<i64: 8, 384>}]} {
    %c0 = arith.constant 0 : index
    %c0_0 = arith.constant 0 : index
    %0 = vector.load %arg1[%c0, %c0_0] : memref<8x108xf32, #tpu.memory_space<vmem>>, vector<8x108xf32>
    %c0_1 = arith.constant 0 : index
    %c0_2 = arith.constant 0 : index
    %1 = vector.load %arg2[%c0_1, %c0_2] : memref<108x384xf32, #tpu.memory_space<vmem>>, vector<108x384xf32>
    %cst = arith.constant dense<0.000000e+00> : vector<8x384xf32>
    %2 = tpu.matmul %0, %1, %cst {dimension_numbers = #tpu.dot_dimension_numbers<[1], [0], [0], [1], [0, 0, 1, 1], [], []>} : vector<8x108xf32>, vector<108x384xf32>, vector<8x384xf32> -> vector<8x384xf32>
    %c0_3 = arith.constant 0 : index
    %c0_4 = arith.constant 0 : index
    %3 = vector.load %arg3[%c0_3, %c0_4] : memref<8x1xf32, #tpu.memory_space<vmem>>, vector<8x1xf32>
    %4 = vector.broadcast %3 : vector<8x1xf32> to vector<8x384xf32>
    %5 = arith.addf %2, %4 : vector<8x384xf32>
    %c0_5 = arith.constant 0 : index
    %c0_6 = arith.constant 0 : index
    %6 = vector.load %arg4[%c0_5, %c0_6] : memref<8x384xf32, #tpu.memory_space<vmem>>, vector<8x384xf32>
    tpu.vector_store %arg4[%c0_5, %c0_6], %5 {strides = array<i32>} : memref<8x384xf32, #tpu.memory_space<vmem>>, vector<8x384xf32>,
    return
  }
  func.func @transform_0(%arg0: i32) -> (i32, i32) {
    %c0_i32 = arith.constant 0 : i32
    %c0_i32_0 = arith.constant 0 : i32
    %c0_i32_1 = arith.constant 0 : i32
    return %c0_i32, %c0_i32_0 : i32, i32
  }
  func.func @transform_1(%arg0: i32) -> (i32, i32) {
    %c0_i32 = arith.constant 0 : i32
    %c0_i32_0 = arith.constant 0 : i32
    return %c0_i32, %arg0 : i32, i32
  }
  func.func @transform_2(%arg0: i32) -> (i32, i32) {
    %c0_i32 = arith.constant 0 : i32
    %c0_i32_0 = arith.constant 0 : i32
    %c0_i32_1 = arith.constant 0 : i32
    return %c0_i32, %c0_i32_0 : i32, i32
  }
  func.func @transform_3(%arg0: i32) -> (i32, i32) {
    %c0_i32 = arith.constant 0 : i32
    %c0_i32_0 = arith.constant 0 : i32
    return %c0_i32, %arg0 : i32, i32
  }
}

module attributes {stable_mosaic.version = 11 : i64} {
  func.func @_gemm_bias_act_kernel(%arg0: i32, %arg1: memref<8x216xf32, #tpu.memory_space<vmem>>, %arg2: memref<216x384xf32, #tpu.memory_space<vmem>>, %arg3: memref<8x1xf32, #tpu.memory_space<vmem>>, %arg4: memref<8x384xf32, #tpu.memory_space<vmem>>) attributes {dimension_semantics = [#tpu.dimension_semantics<parallel>], iteration_bounds = array<i64: 1>, scalar_prefetch = 0 : i64, scratch_operands = 0 : i64, tpu.core_type = #tpu.core_type<tc>, window_params = [{pipeline_mode = #tpu.pipeline_mode<synchronous>, transform_indices = @transform_0, window_bounds = array<i64: 8, 216>}, {transform_indices = @transform_1, window_bounds = array<i64: 216, 384>}, {pipeline_mode = #tpu.pipeline_mode<synchronous>, transform_indices = @transform_2, window_bounds = array<i64: 8, 1>}, {transform_indices = @transform_3, window_bounds = array<i64: 8, 384>}]} {
    %c0 = arith.constant 0 : index
    %c0_0 = arith.constant 0 : index
    %0 = vector.load %arg1[%c0, %c0_0] : memref<8x216xf32, #tpu.memory_space<vmem>>, vector<8x216xf32>
    %c0_1 = arith.constant 0 : index
    %c0_2 = arith.constant 0 : index
    %1 = vector.load %arg2[%c0_1, %c0_2] : memref<216x384xf32, #tpu.memory_space<vmem>>, vector<216x384xf32>
    %cst = arith.constant dense<0.000000e+00> : vector<8x384xf32>
    %2 = tpu.matmul %0, %1, %cst {dimension_numbers = #tpu.dot_dimension_numbers<[1], [0], [0], [1], [0, 0, 1, 1], [], []>} : vector<8x216xf32>, vector<216x384xf32>, vector<8x384xf32> -> vector<8x384xf32>
    %c0_3 = arith.constant 0 : index
    %c0_4 = arith.constant 0 : index
    %3 = vector.load %arg3[%c0_3, %c0_4] : memref<8x1xf32, #tpu.memory_space<vmem>>, vector<8x1xf32>
    %4 = vector.broadcast %3 : vector<8x1xf32> to vector<8x384xf32>
    %5 = arith.addf %2, %4 : vector<8x384xf32>
    %c0_5 = arith.constant 0 : index
    %c0_6 = arith.constant 0 : index
    %6 = vector.load %arg4[%c0_5, %c0_6] : memref<8x384xf32, #tpu.memory_space<vmem>>, vector<8x384xf32>
    tpu.vector_store %arg4[%c0_5, %c0_6], %5 {strides = array<i32>} : memref<8x384xf32, #tpu.memory_space<vmem>>, vector<8x384xf32>,
    return
  }
  func.func @transform_0(%arg0: i32) -> (i32, i32) {
    %c0_i32 = arith.constant 0 : i32
    %c0_i32_0 = arith.constant 0 : i32
    %c0_i32_1 = arith.constant 0 : i32
    return %c0_i32, %c0_i32_0 : i32, i32
  }
  func.func @transform_1(%arg0: i32) -> (i32, i32) {
    %c0_i32 = arith.constant 0 : i32
    %c0_i32_0 = arith.constant 0 : i32
    return %c0_i32, %arg0 : i32, i32
  }
  func.func @transform_2(%arg0: i32) -> (i32, i32) {
    %c0_i32 = arith.constant 0 : i32
    %c0_i32_0 = arith.constant 0 : i32
    %c0_i32_1 = arith.constant 0 : i32
    return %c0_i32, %c0_i32_0 : i32, i32
  }
  func.func @transform_3(%arg0: i32) -> (i32, i32) {
    %c0_i32 = arith.constant 0 : i32
    %c0_i32_0 = arith.constant 0 : i32
    return %c0_i32, %arg0 : i32, i32
  }
}

module attributes {stable_mosaic.version = 11 : i64} {
  func.func @_gemm_bias_act_kernel(%arg0: i32, %arg1: memref<8x512xf32, #tpu.memory_space<vmem>>, %arg2: memref<512x128xf32, #tpu.memory_space<vmem>>, %arg3: memref<8x1xf32, #tpu.memory_space<vmem>>, %arg4: memref<8x128xf32, #tpu.memory_space<vmem>>) attributes {dimension_semantics = [#tpu.dimension_semantics<parallel>], iteration_bounds = array<i64: 1>, scalar_prefetch = 0 : i64, scratch_operands = 0 : i64, tpu.core_type = #tpu.core_type<tc>, window_params = [{pipeline_mode = #tpu.pipeline_mode<synchronous>, transform_indices = @transform_0, window_bounds = array<i64: 8, 512>}, {transform_indices = @transform_1, window_bounds = array<i64: 512, 128>}, {pipeline_mode = #tpu.pipeline_mode<synchronous>, transform_indices = @transform_2, window_bounds = array<i64: 8, 1>}, {transform_indices = @transform_3, window_bounds = array<i64: 8, 128>}]} {
    %c0 = arith.constant 0 : index
    %c0_0 = arith.constant 0 : index
    %0 = vector.load %arg1[%c0, %c0_0] : memref<8x512xf32, #tpu.memory_space<vmem>>, vector<8x512xf32>
    %c0_1 = arith.constant 0 : index
    %c0_2 = arith.constant 0 : index
    %1 = vector.load %arg2[%c0_1, %c0_2] : memref<512x128xf32, #tpu.memory_space<vmem>>, vector<512x128xf32>
    %cst = arith.constant dense<0.000000e+00> : vector<8x128xf32>
    %2 = tpu.matmul %0, %1, %cst {dimension_numbers = #tpu.dot_dimension_numbers<[1], [0], [0], [1], [0, 0, 1, 1], [], []>} : vector<8x512xf32>, vector<512x128xf32>, vector<8x128xf32> -> vector<8x128xf32>
    %c0_3 = arith.constant 0 : index
    %c0_4 = arith.constant 0 : index
    %3 = vector.load %arg3[%c0_3, %c0_4] : memref<8x1xf32, #tpu.memory_space<vmem>>, vector<8x1xf32>
    %4 = vector.broadcast %3 : vector<8x1xf32> to vector<8x128xf32>
    %5 = arith.addf %2, %4 : vector<8x128xf32>
    %c0_5 = arith.constant 0 : index
    %c0_6 = arith.constant 0 : index
    %6 = vector.load %arg4[%c0_5, %c0_6] : memref<8x128xf32, #tpu.memory_space<vmem>>, vector<8x128xf32>
    tpu.vector_store %arg4[%c0_5, %c0_6], %5 {strides = array<i32>} : memref<8x128xf32, #tpu.memory_space<vmem>>, vector<8x128xf32>,
    return
  }
  func.func @transform_0(%arg0: i32) -> (i32, i32) {
    %c0_i32 = arith.constant 0 : i32
    %c0_i32_0 = arith.constant 0 : i32
    %c0_i32_1 = arith.constant 0 : i32
    return %c0_i32, %c0_i32_0 : i32, i32
  }
  func.func @transform_1(%arg0: i32) -> (i32, i32) {
    %c0_i32 = arith.constant 0 : i32
    %c0_i32_0 = arith.constant 0 : i32
    return %c0_i32, %arg0 : i32, i32
  }
  func.func @transform_2(%arg0: i32) -> (i32, i32) {
    %c0_i32 = arith.constant 0 : i32
    %c0_i32_0 = arith.constant 0 : i32
    %c0_i32_1 = arith.constant 0 : i32
    return %c0_i32, %c0_i32_0 : i32, i32
  }
  func.func @transform_3(%arg0: i32) -> (i32, i32) {
    %c0_i32 = arith.constant 0 : i32
    %c0_i32_0 = arith.constant 0 : i32
    return %c0_i32, %arg0 : i32, i32
  }
}

module attributes {stable_mosaic.version = 11 : i64} {
  func.func @_gemm_bias_act_kernel(%arg0: i32, %arg1: memref<16x216xf32, #tpu.memory_space<vmem>>, %arg2: memref<216x128xf32, #tpu.memory_space<vmem>>, %arg3: memref<16x1xf32, #tpu.memory_space<vmem>>, %arg4: memref<16x128xf32, #tpu.memory_space<vmem>>) attributes {dimension_semantics = [#tpu.dimension_semantics<parallel>], iteration_bounds = array<i64: 1>, scalar_prefetch = 0 : i64, scratch_operands = 0 : i64, tpu.core_type = #tpu.core_type<tc>, window_params = [{pipeline_mode = #tpu.pipeline_mode<synchronous>, transform_indices = @transform_0, window_bounds = array<i64: 16, 216>}, {transform_indices = @transform_1, window_bounds = array<i64: 216, 128>}, {pipeline_mode = #tpu.pipeline_mode<synchronous>, transform_indices = @transform_2, window_bounds = array<i64: 16, 1>}, {transform_indices = @transform_3, window_bounds = array<i64: 16, 128>}]} {
    %c0 = arith.constant 0 : index
    %c0_0 = arith.constant 0 : index
    %0 = vector.load %arg1[%c0, %c0_0] : memref<16x216xf32, #tpu.memory_space<vmem>>, vector<16x216xf32>
    %c0_1 = arith.constant 0 : index
    %c0_2 = arith.constant 0 : index
    %1 = vector.load %arg2[%c0_1, %c0_2] : memref<216x128xf32, #tpu.memory_space<vmem>>, vector<216x128xf32>
    %cst = arith.constant dense<0.000000e+00> : vector<16x128xf32>
    %2 = tpu.matmul %0, %1, %cst {dimension_numbers = #tpu.dot_dimension_numbers<[1], [0], [0], [1], [0, 0, 1, 1], [], []>} : vector<16x216xf32>, vector<216x128xf32>, vector<16x128xf32> -> vector<16x128xf32>
    %c0_3 = arith.constant 0 : index
    %c0_4 = arith.constant 0 : index
    %3 = vector.load %arg3[%c0_3, %c0_4] : memref<16x1xf32, #tpu.memory_space<vmem>>, vector<16x1xf32>
    %4 = vector.broadcast %3 : vector<16x1xf32> to vector<16x128xf32>
    %5 = arith.addf %2, %4 : vector<16x128xf32>
    %c0_5 = arith.constant 0 : index
    %c0_6 = arith.constant 0 : index
    %6 = vector.load %arg4[%c0_5, %c0_6] : memref<16x128xf32, #tpu.memory_space<vmem>>, vector<16x128xf32>
    tpu.vector_store %arg4[%c0_5, %c0_6], %5 {strides = array<i32>} : memref<16x128xf32, #tpu.memory_space<vmem>>, vector<16x128xf32>,
    return
  }
  func.func @transform_0(%arg0: i32) -> (i32, i32) {
    %c0_i32 = arith.constant 0 : i32
    %c0_i32_0 = arith.constant 0 : i32
    %c0_i32_1 = arith.constant 0 : i32
    return %c0_i32, %c0_i32_0 : i32, i32
  }
  func.func @transform_1(%arg0: i32) -> (i32, i32) {
    %c0_i32 = arith.constant 0 : i32
    %c0_i32_0 = arith.constant 0 : i32
    return %c0_i32, %arg0 : i32, i32
  }
  func.func @transform_2(%arg0: i32) -> (i32, i32) {
    %c0_i32 = arith.constant 0 : i32
    %c0_i32_0 = arith.constant 0 : i32
    %c0_i32_1 = arith.constant 0 : i32
    return %c0_i32, %c0_i32_0 : i32, i32
  }
  func.func @transform_3(%arg0: i32) -> (i32, i32) {
    %c0_i32 = arith.constant 0 : i32
    %c0_i32_0 = arith.constant 0 : i32
    return %c0_i32, %arg0 : i32, i32
  }
}

module attributes {stable_mosaic.version = 11 : i64} {
  func.func @_instnorm_lrelu_kernel(%arg0: i32, %arg1: memref<8x8xf32, #tpu.memory_space<vmem>>, %arg2: memref<8x8xf32, #tpu.memory_space<vmem>>) attributes {dimension_semantics = [#tpu.dimension_semantics<parallel>], iteration_bounds = array<i64: 2>, scalar_prefetch = 0 : i64, scratch_operands = 0 : i64, tpu.core_type = #tpu.core_type<tc>, window_params = [{transform_indices = @transform_0, window_bounds = array<i64: 8, 8>}, {transform_indices = @transform_1, window_bounds = array<i64: 8, 8>}]} {
    %c0 = arith.constant 0 : index
    %c0_0 = arith.constant 0 : index
    %0 = vector.load %arg1[%c0, %c0_0] : memref<8x8xf32, #tpu.memory_space<vmem>>, vector<8x8xf32>
    %cst = arith.constant dense<0.000000e+00> : vector<8xf32>
    %1 = vector.multi_reduction <add>, %0, %cst [1] : vector<8x8xf32> to vector<8xf32>
    %2 = vector.shape_cast %1 : vector<8xf32> to vector<8x1xf32>
    %cst_1 = arith.constant 8.000000e+00 : f32
    %3 = vector.broadcast %cst_1 : f32 to vector<8x1xf32>
    %4 = arith.divf %2, %3 : vector<8x1xf32>
    %5 = vector.broadcast %4 : vector<8x1xf32> to vector<8x8xf32>
    %6 = arith.subf %0, %5 : vector<8x8xf32>
    %7 = arith.mulf %6, %6 : vector<8x8xf32>
    %cst_2 = arith.constant dense<0.000000e+00> : vector<8xf32>
    %8 = vector.multi_reduction <add>, %7, %cst_2 [1] : vector<8x8xf32> to vector<8xf32>
    %9 = vector.shape_cast %8 : vector<8xf32> to vector<8x1xf32>
    %cst_3 = arith.constant 8.000000e+00 : f32
    %10 = vector.broadcast %cst_3 : f32 to vector<8x1xf32>
    %11 = arith.divf %9, %10 : vector<8x1xf32>
    %cst_4 = arith.constant 9.99999974E-6 : f32
    %12 = vector.broadcast %cst_4 : f32 to vector<8x1xf32>
    %13 = arith.addf %11, %12 : vector<8x1xf32>
    %14 = math.rsqrt %13 : vector<8x1xf32>
    %15 = vector.broadcast %14 : vector<8x1xf32> to vector<8x8xf32>
    %16 = arith.mulf %6, %15 : vector<8x8xf32>
    %cst_5 = arith.constant 0.000000e+00 : f32
    %17 = vector.broadcast %cst_5 : f32 to vector<8x8xf32>
    %18 = arith.cmpf oge, %16, %17 : vector<8x8xf32>
    %cst_6 = arith.constant 0.00999999977 : f32
    %19 = vector.broadcast %cst_6 : f32 to vector<8x8xf32>
    %20 = arith.mulf %19, %16 : vector<8x8xf32>
    %21 = arith.select %18, %16, %20 : vector<8x8xi1>, vector<8x8xf32>
    %c0_7 = arith.constant 0 : index
    %c0_8 = arith.constant 0 : index
    %22 = vector.load %arg2[%c0_7, %c0_8] : memref<8x8xf32, #tpu.memory_space<vmem>>, vector<8x8xf32>
    tpu.vector_store %arg2[%c0_7, %c0_8], %21 {strides = array<i32>} : memref<8x8xf32, #tpu.memory_space<vmem>>, vector<8x8xf32>,
    return
  }
  func.func @transform_0(%arg0: i32) -> (i32, i32) {
    %c0_i32 = arith.constant 0 : i32
    %c0_i32_0 = arith.constant 0 : i32
    return %arg0, %c0_i32 : i32, i32
  }
  func.func @transform_1(%arg0: i32) -> (i32, i32) {
    %c0_i32 = arith.constant 0 : i32
    %c0_i32_0 = arith.constant 0 : i32
    return %arg0, %c0_i32 : i32, i32
  }
}

module attributes {stable_mosaic.version = 11 : i64} {
  func.func @_gemm_bias_act_kernel(%arg0: i32, %arg1: memref<16x432xf32, #tpu.memory_space<vmem>>, %arg2: memref<432x128xf32, #tpu.memory_space<vmem>>, %arg3: memref<16x1xf32, #tpu.memory_space<vmem>>, %arg4: memref<16x128xf32, #tpu.memory_space<vmem>>) attributes {dimension_semantics = [#tpu.dimension_semantics<parallel>], iteration_bounds = array<i64: 1>, scalar_prefetch = 0 : i64, scratch_operands = 0 : i64, tpu.core_type = #tpu.core_type<tc>, window_params = [{pipeline_mode = #tpu.pipeline_mode<synchronous>, transform_indices = @transform_0, window_bounds = array<i64: 16, 432>}, {transform_indices = @transform_1, window_bounds = array<i64: 432, 128>}, {pipeline_mode = #tpu.pipeline_mode<synchronous>, transform_indices = @transform_2, window_bounds = array<i64: 16, 1>}, {transform_indices = @transform_3, window_bounds = array<i64: 16, 128>}]} {
    %c0 = arith.constant 0 : index
    %c0_0 = arith.constant 0 : index
    %0 = vector.load %arg1[%c0, %c0_0] : memref<16x432xf32, #tpu.memory_space<vmem>>, vector<16x432xf32>
    %c0_1 = arith.constant 0 : index
    %c0_2 = arith.constant 0 : index
    %1 = vector.load %arg2[%c0_1, %c0_2] : memref<432x128xf32, #tpu.memory_space<vmem>>, vector<432x128xf32>
    %cst = arith.constant dense<0.000000e+00> : vector<16x128xf32>
    %2 = tpu.matmul %0, %1, %cst {dimension_numbers = #tpu.dot_dimension_numbers<[1], [0], [0], [1], [0, 0, 1, 1], [], []>} : vector<16x432xf32>, vector<432x128xf32>, vector<16x128xf32> -> vector<16x128xf32>
    %c0_3 = arith.constant 0 : index
    %c0_4 = arith.constant 0 : index
    %3 = vector.load %arg3[%c0_3, %c0_4] : memref<16x1xf32, #tpu.memory_space<vmem>>, vector<16x1xf32>
    %4 = vector.broadcast %3 : vector<16x1xf32> to vector<16x128xf32>
    %5 = arith.addf %2, %4 : vector<16x128xf32>
    %c0_5 = arith.constant 0 : index
    %c0_6 = arith.constant 0 : index
    %6 = vector.load %arg4[%c0_5, %c0_6] : memref<16x128xf32, #tpu.memory_space<vmem>>, vector<16x128xf32>
    tpu.vector_store %arg4[%c0_5, %c0_6], %5 {strides = array<i32>} : memref<16x128xf32, #tpu.memory_space<vmem>>, vector<16x128xf32>,
    return
  }
  func.func @transform_0(%arg0: i32) -> (i32, i32) {
    %c0_i32 = arith.constant 0 : i32
    %c0_i32_0 = arith.constant 0 : i32
    %c0_i32_1 = arith.constant 0 : i32
    return %c0_i32, %c0_i32_0 : i32, i32
  }
  func.func @transform_1(%arg0: i32) -> (i32, i32) {
    %c0_i32 = arith.constant 0 : i32
    %c0_i32_0 = arith.constant 0 : i32
    return %c0_i32, %arg0 : i32, i32
  }
  func.func @transform_2(%arg0: i32) -> (i32, i32) {
    %c0_i32 = arith.constant 0 : i32
    %c0_i32_0 = arith.constant 0 : i32
    %c0_i32_1 = arith.constant 0 : i32
    return %c0_i32, %c0_i32_0 : i32, i32
  }
  func.func @transform_3(%arg0: i32) -> (i32, i32) {
    %c0_i32 = arith.constant 0 : i32
    %c0_i32_0 = arith.constant 0 : i32
    return %c0_i32, %arg0 : i32, i32
  }
}

module attributes {stable_mosaic.version = 11 : i64} {
  func.func @_gemm_bias_act_kernel(%arg0: i32, %arg1: memref<64x128xf32, #tpu.memory_space<vmem>>, %arg2: memref<128x128xf32, #tpu.memory_space<vmem>>, %arg3: memref<64x1xf32, #tpu.memory_space<vmem>>, %arg4: memref<64x128xf32, #tpu.memory_space<vmem>>) attributes {dimension_semantics = [#tpu.dimension_semantics<parallel>], iteration_bounds = array<i64: 1>, scalar_prefetch = 0 : i64, scratch_operands = 0 : i64, tpu.core_type = #tpu.core_type<tc>, window_params = [{pipeline_mode = #tpu.pipeline_mode<synchronous>, transform_indices = @transform_0, window_bounds = array<i64: 64, 128>}, {transform_indices = @transform_1, window_bounds = array<i64: 128, 128>}, {pipeline_mode = #tpu.pipeline_mode<synchronous>, transform_indices = @transform_2, window_bounds = array<i64: 64, 1>}, {transform_indices = @transform_3, window_bounds = array<i64: 64, 128>}]} {
    %c0 = arith.constant 0 : index
    %c0_0 = arith.constant 0 : index
    %0 = vector.load %arg1[%c0, %c0_0] : memref<64x128xf32, #tpu.memory_space<vmem>>, vector<64x128xf32>
    %c0_1 = arith.constant 0 : index
    %c0_2 = arith.constant 0 : index
    %1 = vector.load %arg2[%c0_1, %c0_2] : memref<128x128xf32, #tpu.memory_space<vmem>>, vector<128x128xf32>
    %cst = arith.constant dense<0.000000e+00> : vector<64x128xf32>
    %2 = tpu.matmul %0, %1, %cst {dimension_numbers = #tpu.dot_dimension_numbers<[1], [0], [0], [1], [0, 0, 1, 1], [], []>} : vector<64x128xf32>, vector<128x128xf32>, vector<64x128xf32> -> vector<64x128xf32>
    %c0_3 = arith.constant 0 : index
    %c0_4 = arith.constant 0 : index
    %3 = vector.load %arg3[%c0_3, %c0_4] : memref<64x1xf32, #tpu.memory_space<vmem>>, vector<64x1xf32>
    %4 = vector.broadcast %3 : vector<64x1xf32> to vector<64x128xf32>
    %5 = arith.addf %2, %4 : vector<64x128xf32>
    %c0_5 = arith.constant 0 : index
    %c0_6 = arith.constant 0 : index
    %6 = vector.load %arg4[%c0_5, %c0_6] : memref<64x128xf32, #tpu.memory_space<vmem>>, vector<64x128xf32>
    tpu.vector_store %arg4[%c0_5, %c0_6], %5 {strides = array<i32>} : memref<64x128xf32, #tpu.memory_space<vmem>>, vector<64x128xf32>,
    return
  }
  func.func @transform_0(%arg0: i32) -> (i32, i32) {
    %c0_i32 = arith.constant 0 : i32
    %c0_i32_0 = arith.constant 0 : i32
    %c0_i32_1 = arith.constant 0 : i32
    return %c0_i32, %c0_i32_0 : i32, i32
  }
  func.func @transform_1(%arg0: i32) -> (i32, i32) {
    %c0_i32 = arith.constant 0 : i32
    %c0_i32_0 = arith.constant 0 : i32
    return %c0_i32, %arg0 : i32, i32
  }
  func.func @transform_2(%arg0: i32) -> (i32, i32) {
    %c0_i32 = arith.constant 0 : i32
    %c0_i32_0 = arith.constant 0 : i32
    %c0_i32_1 = arith.constant 0 : i32
    return %c0_i32, %c0_i32_0 : i32, i32
  }
  func.func @transform_3(%arg0: i32) -> (i32, i32) {
    %c0_i32 = arith.constant 0 : i32
    %c0_i32_0 = arith.constant 0 : i32
    return %c0_i32, %arg0 : i32, i32
  }
}

module attributes {stable_mosaic.version = 11 : i64} {
  func.func @_gemm_bias_act_kernel(%arg0: i32, %arg1: memref<32x64xf32, #tpu.memory_space<vmem>>, %arg2: memref<64x512xf32, #tpu.memory_space<vmem>>, %arg3: memref<32x1xf32, #tpu.memory_space<vmem>>, %arg4: memref<32x512xf32, #tpu.memory_space<vmem>>) attributes {dimension_semantics = [#tpu.dimension_semantics<parallel>], iteration_bounds = array<i64: 1>, scalar_prefetch = 0 : i64, scratch_operands = 0 : i64, tpu.core_type = #tpu.core_type<tc>, window_params = [{pipeline_mode = #tpu.pipeline_mode<synchronous>, transform_indices = @transform_0, window_bounds = array<i64: 32, 64>}, {transform_indices = @transform_1, window_bounds = array<i64: 64, 512>}, {pipeline_mode = #tpu.pipeline_mode<synchronous>, transform_indices = @transform_2, window_bounds = array<i64: 32, 1>}, {transform_indices = @transform_3, window_bounds = array<i64: 32, 512>}]} {
    %c0 = arith.constant 0 : index
    %c0_0 = arith.constant 0 : index
    %0 = vector.load %arg1[%c0, %c0_0] : memref<32x64xf32, #tpu.memory_space<vmem>>, vector<32x64xf32>
    %c0_1 = arith.constant 0 : index
    %c0_2 = arith.constant 0 : index
    %1 = vector.load %arg2[%c0_1, %c0_2] : memref<64x512xf32, #tpu.memory_space<vmem>>, vector<64x512xf32>
    %cst = arith.constant dense<0.000000e+00> : vector<32x512xf32>
    %2 = tpu.matmul %0, %1, %cst {dimension_numbers = #tpu.dot_dimension_numbers<[1], [0], [0], [1], [0, 0, 1, 1], [], []>} : vector<32x64xf32>, vector<64x512xf32>, vector<32x512xf32> -> vector<32x512xf32>
    %c0_3 = arith.constant 0 : index
    %c0_4 = arith.constant 0 : index
    %3 = vector.load %arg3[%c0_3, %c0_4] : memref<32x1xf32, #tpu.memory_space<vmem>>, vector<32x1xf32>
    %4 = vector.broadcast %3 : vector<32x1xf32> to vector<32x512xf32>
    %5 = arith.addf %2, %4 : vector<32x512xf32>
    %c0_5 = arith.constant 0 : index
    %c0_6 = arith.constant 0 : index
    %6 = vector.load %arg4[%c0_5, %c0_6] : memref<32x512xf32, #tpu.memory_space<vmem>>, vector<32x512xf32>
    tpu.vector_store %arg4[%c0_5, %c0_6], %5 {strides = array<i32>} : memref<32x512xf32, #tpu.memory_space<vmem>>, vector<32x512xf32>,
    return
  }
  func.func @transform_0(%arg0: i32) -> (i32, i32) {
    %c0_i32 = arith.constant 0 : i32
    %c0_i32_0 = arith.constant 0 : i32
    %c0_i32_1 = arith.constant 0 : i32
    return %c0_i32, %c0_i32_0 : i32, i32
  }
  func.func @transform_1(%arg0: i32) -> (i32, i32) {
    %c0_i32 = arith.constant 0 : i32
    %c0_i32_0 = arith.constant 0 : i32
    return %c0_i32, %arg0 : i32, i32
  }
  func.func @transform_2(%arg0: i32) -> (i32, i32) {
    %c0_i32 = arith.constant 0 : i32
    %c0_i32_0 = arith.constant 0 : i32
    %c0_i32_1 = arith.constant 0 : i32
    return %c0_i32, %c0_i32_0 : i32, i32
  }
  func.func @transform_3(%arg0: i32) -> (i32, i32) {
    %c0_i32 = arith.constant 0 : i32
    %c0_i32_0 = arith.constant 0 : i32
    return %c0_i32, %arg0 : i32, i32
  }
}

module attributes {stable_mosaic.version = 11 : i64} {
  func.func @_gemm_bias_act_kernel(%arg0: i32, %arg1: memref<1x4xf32, #tpu.memory_space<vmem>>, %arg2: memref<4x1024xf32, #tpu.memory_space<vmem>>, %arg3: memref<1x1xf32, #tpu.memory_space<vmem>>, %arg4: memref<1x1024xf32, #tpu.memory_space<vmem>>) attributes {dimension_semantics = [#tpu.dimension_semantics<parallel>], iteration_bounds = array<i64: 4>, scalar_prefetch = 0 : i64, scratch_operands = 0 : i64, tpu.core_type = #tpu.core_type<tc>, window_params = [{pipeline_mode = #tpu.pipeline_mode<synchronous>, transform_indices = @transform_0, window_bounds = array<i64: 1, 4>}, {transform_indices = @transform_1, window_bounds = array<i64: 4, 1024>}, {pipeline_mode = #tpu.pipeline_mode<synchronous>, transform_indices = @transform_2, window_bounds = array<i64: 1, 1>}, {transform_indices = @transform_3, window_bounds = array<i64: 1, 1024>}]} {
    %c0 = arith.constant 0 : index
    %c0_0 = arith.constant 0 : index
    %0 = vector.load %arg1[%c0, %c0_0] : memref<1x4xf32, #tpu.memory_space<vmem>>, vector<1x4xf32>
    %c0_1 = arith.constant 0 : index
    %c0_2 = arith.constant 0 : index
    %1 = vector.load %arg2[%c0_1, %c0_2] : memref<4x1024xf32, #tpu.memory_space<vmem>>, vector<4x1024xf32>
    %cst = arith.constant dense<0.000000e+00> : vector<1x1024xf32>
    %2 = tpu.matmul %0, %1, %cst {dimension_numbers = #tpu.dot_dimension_numbers<[1], [0], [0], [1], [0, 0, 1, 1], [], []>} : vector<1x4xf32>, vector<4x1024xf32>, vector<1x1024xf32> -> vector<1x1024xf32>
    %c0_3 = arith.constant 0 : index
    %c0_4 = arith.constant 0 : index
    %3 = vector.load %arg3[%c0_3, %c0_4] : memref<1x1xf32, #tpu.memory_space<vmem>>, vector<1x1xf32>
    %4 = vector.broadcast %3 : vector<1x1xf32> to vector<1x1024xf32>
    %5 = arith.addf %2, %4 : vector<1x1024xf32>
    %6 = math.tanh %5 : vector<1x1024xf32>
    %cst_5 = arith.constant 5.000000e-01 : f32
    %7 = vector.broadcast %cst_5 : f32 to vector<1x1024xf32>
    %8 = arith.mulf %6, %7 : vector<1x1024xf32>
    %cst_6 = arith.constant 5.000000e-01 : f32
    %9 = vector.broadcast %cst_6 : f32 to vector<1x1024xf32>
    %10 = arith.addf %8, %9 : vector<1x1024xf32>
    %c0_7 = arith.constant 0 : index
    %c0_8 = arith.constant 0 : index
    %11 = vector.load %arg4[%c0_7, %c0_8] : memref<1x1024xf32, #tpu.memory_space<vmem>>, vector<1x1024xf32>
    tpu.vector_store %arg4[%c0_7, %c0_8], %10 {strides = array<i32>} : memref<1x1024xf32, #tpu.memory_space<vmem>>, vector<1x1024xf32>,
    return
  }
  func.func @transform_0(%arg0: i32) -> (i32, i32) {
    %c0_i32 = arith.constant 0 : i32
    %c0_i32_0 = arith.constant 0 : i32
    %c0_i32_1 = arith.constant 0 : i32
    return %c0_i32, %c0_i32_0 : i32, i32
  }
  func.func @transform_1(%arg0: i32) -> (i32, i32) {
    %c0_i32 = arith.constant 0 : i32
    %c0_i32_0 = arith.constant 0 : i32
    return %c0_i32, %arg0 : i32, i32
  }
  func.func @transform_2(%arg0: i32) -> (i32, i32) {
    %c0_i32 = arith.constant 0 : i32
    %c0_i32_0 = arith.constant 0 : i32
    %c0_i32_1 = arith.constant 0 : i32
    return %c0_i32, %c0_i32_0 : i32, i32
  }
  func.func @transform_3(%arg0: i32) -> (i32, i32) {
    %c0_i32 = arith.constant 0 : i32
    %c0_i32_0 = arith.constant 0 : i32
    return %c0_i32, %arg0 : i32, i32
  }
}

</mosaic_0001>

<bundles_post_ra>
// kernel: vnet_forward.25
= control target key start
LH: loop header
LB: loop body
LE: loop exit
PB: predicated region body
PF: predicated region fallthrough
CT: control target
= control target key end

     0   :  { %s830_s12 = smov 0   ;;  %s832_s13 = smov 0   ;;  %s1018_s0 = inlined_call_operand.vmem [shape: f32[4,27], index: 0, kind: input, shape index: {}]   ;;  %s1019_s1 = inlined_call_operand.vmem [shape: f32[27,4096], index: 1, kind: input, shape index: {}]   ;;  %s1020_s2 = inlined_call_operand.vmem [shape: f32[4,1], index: 2, kind: input, shape index: {}]   ;;  %s1021_s3 = inlined_call_operand.vmem [shape: f32[4,4096], index: 3, kind: output, shape index: {}]  }
   0x1   :  { %s834_s14 = smov 0  }
   0x2 LB: > { %s689_s15 = sadd.s32 4294967295, %s805_s14   ;;  %s847_s16 = sadd.s32 1, %s805_s14   ;;  %s805_s14 = sphi %s834_s14, %s1026_s14   ;;  %s801_s13 = sphi %s832_s13, %s1025_s13   ;;  %s797_s12 = sphi %s830_s12, %s1024_s12  }
   0x3   : > { %s38_s17 = ssub.s32 %s805_s14, %s847_s16  ;;  %s41_s18 = sadd.s32 1, %s801_s13 }
   0x4   : > { %p39_p0 = scmp.eq.s32.totalorder %s38_s17, 0  ;;  %p48_p1 = scmp.ne.s32.totalorder %s801_s13, %s797_s12 }
   0x5   : > { %p49_p2 = scmp.eq.s32.totalorder %s805_s14, 0  ;;  %p692_p4 = scmp.ge.s32.totalorder %s805_s14, 4 }
   0x6   : > { %s856_s19 = scalar_select %p39_p0, %s801_s13, %s41_s18  }
   0x7   : > { %p50_p3 = por %p49_p2, %p48_p1  ;;  %127 = sbr.rel (%p692_p4) target bundleno = 34 (0x22), region = 24 }
   0xe   : > { %130 = sbr.rel (!%p50_p3) target bundleno = 34 (0x22), region = 28  ;;  %s132_s20 = sand.u32 (%p50_p3), 1, %s801_s13  }
   0xf   : > { %s714_s21 = sshll.u32 (%p50_p3), %s805_s14, 6  ;;  %s693_s22 = sshll.u32 (%p50_p3), %s132_s20, 8 }
  0x10   : > { %s864_s25 = scalar_lea.vmem (%p50_p3), %s1019_s1, %s714_s21  ;;  %s869_s26 = scalar_lea.vmem (%p50_p3), [#allocation2], %s693_s22 }
  0x11   : > { %v150_v0 = vld [vmem:[%s864_s25] sm:$0xff] (%p50_p3)  ;;  %v152_v1 = vld [vmem:[%s864_s25 + $0x8] sm:$0xff] (%p50_p3)  ;;  %v154_v2 = vld [vmem:[%s864_s25 + $0x10] sm:$0xff] (%p50_p3) }
  0x12   : > { %151 = vst [vmem:[%s869_s26] sm:$0xff] (%p50_p3), %v150_v0  ;;  %153 = vst [vmem:[%s869_s26 + $0x8] sm:$0xff] (%p50_p3), %v152_v1  ;;  %v156_v3 = vld [vmem:[%s864_s25 + $0x18] sm:$0xff] (%p50_p3)  ;;  %v158_v4 = vld [vmem:[%s864_s25 + $0x20] sm:$0xff] (%p50_p3) }
  0x13   : > { %155 = vst [vmem:[%s869_s26 + $0x10] sm:$0xff] (%p50_p3), %v154_v2  ;;  %v160_v5 = vld [vmem:[%s864_s25 + $0x28] sm:$0xff] (%p50_p3)  ;;  %157 = vst [vmem:[%s869_s26 + $0x18] sm:$0xff] (%p50_p3), %v156_v3  ;;  %v162_v6 = vld [vmem:[%s864_s25 + $0x30] sm:$0xff] (%p50_p3) }
  0x14   : > { %159 = vst [vmem:[%s869_s26 + $0x20] sm:$0xff] (%p50_p3), %v158_v4  ;;  %161 = vst [vmem:[%s869_s26 + $0x28] sm:$0xff] (%p50_p3), %v160_v5  ;;  %v164_v7 = vld [vmem:[%s864_s25 + $0x38] sm:$0xff] (%p50_p3)  ;;  %v166_v8 = vld [vmem:[%s864_s25 + $0x100] sm:$0xff] (%p50_p3) }
  0x15   : > { %163 = vst [vmem:[%s869_s26 + $0x30] sm:$0xff] %v162_v6  ;;  %165 = vst [vmem:[%s869_s26 + $0x38] sm:$0xff] %v164_v7  ;;  %v168_v9 = vld [vmem:[%s864_s25 + $0x108] sm:$0xff]  ;;  %v170_v10 = vld [vmem:[%s864_s25 + $0x110] sm:$0xff] }
  0x16   : > { %167 = vst [vmem:[%s869_s26 + $0x40] sm:$0xff] %v166_v8  ;;  %v172_v11 = vld [vmem:[%s864_s25 + $0x118] sm:$0xff]  ;;  %169 = vst [vmem:[%s869_s26 + $0x48] sm:$0xff] %v168_v9  ;;  %v174_v12 = vld [vmem:[%s864_s25 + $0x120] sm:$0xff] }
  0x17   : > { %171 = vst [vmem:[%s869_s26 + $0x50] sm:$0xff] %v170_v10  ;;  %173 = vst [vmem:[%s869_s26 + $0x58] sm:$0xff] %v172_v11  ;;  %v176_v13 = vld [vmem:[%s864_s25 + $0x128] sm:$0xff]  ;;  %v178_v14 = vld [vmem:[%s864_s25 + $0x130] sm:$0xff] }
  0x18   : > { %175 = vst [vmem:[%s869_s26 + $0x60] sm:$0xff] %v174_v12  ;;  %177 = vst [vmem:[%s869_s26 + $0x68] sm:$0xff] %v176_v13  ;;  %v180_v15 = vld [vmem:[%s864_s25 + $0x138] sm:$0xff]  ;;  %v182_v16 = vld [vmem:[%s864_s25 + $0x200] sm:$0xff] }
  0x19   : > { %179 = vst [vmem:[%s869_s26 + $0x70] sm:$0xff] %v178_v14  ;;  %v184_v17 = vld [vmem:[%s864_s25 + $0x208] sm:$0xff]  ;;  %181 = vst [vmem:[%s869_s26 + $0x78] sm:$0xff] %v180_v15  ;;  %v186_v18 = vld [vmem:[%s864_s25 + $0x210] sm:$0xff] }
  0x1a   : > { %183 = vst [vmem:[%s869_s26 + $0x80] sm:$0xff] %v182_v16  ;;  %185 = vst [vmem:[%s869_s26 + $0x88] sm:$0xff] %v184_v17  ;;  %v188_v19 = vld [vmem:[%s864_s25 + $0x218] sm:$0xff]  ;;  %v190_v20 = vld [vmem:[%s864_s25 + $0x220] sm:$0xff] }
  0x1b   : > { %187 = vst [vmem:[%s869_s26 + $0x90] sm:$0xff] %v186_v18  ;;  %189 = vst [vmem:[%s869_s26 + $0x98] sm:$0xff] %v188_v19  ;;  %v192_v21 = vld [vmem:[%s864_s25 + $0x228] sm:$0xff]  ;;  %v194_v22 = vld [vmem:[%s864_s25 + $0x230] sm:$0xff] }
  0x1c   : > { %191 = vst [vmem:[%s869_s26 + $0xa0] sm:$0xff] %v190_v20  ;;  %v196_v23 = vld [vmem:[%s864_s25 + $0x238] sm:$0xff]  ;;  %193 = vst [vmem:[%s869_s26 + $0xa8] sm:$0xff] %v192_v21  ;;  %v198_v24 = vld [vmem:[%s864_s25 + $0x300] sm:$0xff] }
  0x1d   : > { %195 = vst [vmem:[%s869_s26 + $0xb0] sm:$0xff] %v194_v22  ;;  %197 = vst [vmem:[%s869_s26 + $0xb8] sm:$0xff] %v196_v23  ;;  %v200_v25 = vld [vmem:[%s864_s25 + $0x308] sm:$0xff]  ;;  %v202_v26 = vld [vmem:[%s864_s25 + $0x310] sm:$0xff] }
  0x1e   : > { %199 = vst [vmem:[%s869_s26 + $0xc0] sm:$0xff] %v198_v24  ;;  %201 = vst [vmem:[%s869_s26 + $0xc8] sm:$0xff] %v200_v25  ;;  %v204_v27 = vld [vmem:[%s864_s25 + $0x318] sm:$0xff]  ;;  %v206_v28 = vld [vmem:[%s864_s25 + $0x320] sm:$0xff] }
  0x1f   : > { %203 = vst [vmem:[%s869_s26 + $0xd0] sm:$0xff] %v202_v26  ;;  %v208_v29 = vld [vmem:[%s864_s25 + $0x328] sm:$0xff]  ;;  %205 = vst [vmem:[%s869_s26 + $0xd8] sm:$0xff] %v204_v27  ;;  %v210_v30 = vld [vmem:[%s864_s25 + $0x330] sm:$0xff] }
  0x20   : > { %207 = vst [vmem:[%s869_s26 + $0xe0] sm:$0xff] %v206_v28  ;;  %209 = vst [vmem:[%s869_s26 + $0xe8] sm:$0xff] %v208_v29  ;;  %v212_v31 = vld [vmem:[%s864_s25 + $0x338] sm:$0xff] }
  0x21   : > { %211 = vst [vmem:[%s869_s26 + $0xf0] sm:$0xff] %v210_v30  ;;  %213 = vst [vmem:[%s869_s26 + $0xf8] sm:$0xff] %v212_v31 }
  0x22 PF: > { %p696_p5 = scmp.ge.s32.totalorder %s805_s14, 1  ;;  %p218_p6 = scmp.lt.s32.totalorder %s805_s14, 5 }
  0x24   : > { %p219_p7 = pnand %p696_p5, %p218_p6 }
  0x25   : > { %s225_s27 = sand.u32 (!%p219_p7), 1, %s797_s12   ;;  %vm298_vm0 = vcmask (!%p219_p7), 1042432   ;;  %v807_v32 = vmov (!%p219_p7), 0.0   ;;  %v288_v33 = vld [vmem:[%s1020_s2] sm:$0xf] (!%p219_p7)  ;;  %vm808_vm1 = vmmov (!%p219_p7), 1  }
  0x26   : > { %222 = sbr.rel (%p219_p7) target bundleno = 279 (0x117), region = 51  ;;  %s697_s28 = sshll.u32 (!%p219_p7), %s225_s27, 8  ;;  %387 = vmatprep.mubr.f32.mxu0 (!%p219_p7), %v807_v32  ;;  %458 = vmatprep.mubr.f32.mxu1 (!%p219_p7), %v807_v32  ;;  %vm940_vm2 = vmpackc.low (!%p219_p7), %vm298_vm0, %vm808_vm1  ;;  %v809_v35 = vmov (!%p219_p7), 0   ;;  %v255_v62 = vld [vmem:[%s1018_s0] sm:$0xf] (!%p219_p7)  ;;  %vm294_vm3 = vcmask (!%p219_p7), 220160  }
  0x27   : > { %782 = vset.pattern.permute.xlu0 (!%p219_p7), %v809_v35  ;;  %s944_s4 = scalar_lea.vmem (!%p219_p7), [#allocation2], %s697_s28  ;;  %s698_s7 = sshll.u32 (!%p219_p7), %s689_s15, 3 }
  0x28   : > { %v257_v36 = vld [vmem:[%s944_s4 + $0x8] sm:$0xff] (!%p219_p7)  ;;  %v259_v38 = vld [vmem:[%s944_s4 + $0x18] sm:$0xff] (!%p219_p7)  ;;  %291 = vperm.xlu0 (!%p219_p7), %782, %v288_v33   ;;  %v256_v41 = vld [vmem:[%s944_s4] sm:$0xff] (!%p219_p7)  ;;  %p250_p8 = scmp.lt.s32.totalorder (!%p219_p7), %s698_s7, 31 }
  0x29   : > { %v265_v37 = vld [vmem:[%s944_s4 + $0x48] sm:$0xff] (!%p219_p7)  ;;  %v267_v40 = vld [vmem:[%s944_s4 + $0x58] sm:$0xff] (!%p219_p7)  ;;  %v264_v42 = vld [vmem:[%s944_s4 + $0x40] sm:$0xff] (!%p219_p7) }
  0x2a   : > { %v715_v39 = vpack.c.bf16 (!%p219_p7), %v265_v37, %v257_v36  ;;  %v725_v43 = vpack.c.bf16 (!%p219_p7), %v267_v40, %v259_v38  ;;  %v717_v44 = vpack.c.bf16 (!%p219_p7), %v264_v42, %v256_v41  ;;  %v258_v45 = vld [vmem:[%s944_s4 + $0x10] sm:$0xff] (!%p219_p7)  ;;  %v273_v47 = vld [vmem:[%s944_s4 + $0x88] sm:$0xff] (!%p219_p7)  ;;  %v275_v50 = vld [vmem:[%s944_s4 + $0x98] sm:$0xff] (!%p219_p7) }
  0x2b   : > { %v266_v46 = vld [vmem:[%s944_s4 + $0x50] sm:$0xff] (!%p219_p7)  ;;  %v281_v49 = vld [vmem:[%s944_s4 + $0xc8] sm:$0x7] (!%p219_p7)  ;;  %v283_v51 = vld [vmem:[%s944_s4 + $0xd8] sm:$0x7] (!%p219_p7) }
  0x2c   : > { %716 = vmatprep.subr.bf16.mxu0 (!%p219_p7), %v715_v39  ;;  %v727_v48 = vpack.c.bf16 (!%p219_p7), %v266_v46, %v258_v45  ;;  %726 = vmatprep.subr.bf16.mxu1 (!%p219_p7), %v725_v43  ;;  %v719_v52 = vpack.c.bf16 (!%p219_p7), %v281_v49, %v273_v47  ;;  %v729_v53 = vpack.c.bf16 (!%p219_p7), %v283_v51, %v275_v50  ;;  %v272_v54 = vld [vmem:[%s944_s4 + $0x80] sm:$0xff] (!%p219_p7)  ;;  %v274_v56 = vld [vmem:[%s944_s4 + $0x90] sm:$0xff] (!%p219_p7)  ;;  %v261_v59 = vld [vmem:[%s944_s4 + $0x28] sm:$0xff] (!%p219_p7) }
  0x2d   : > { %718 = vmatpush1.bf16.msra.mxu0 %v717_v44  ;;  %v280_v55 = vld [vmem:[%s944_s4 + $0xc0] sm:$0x7]  ;;  %v282_v58 = vld [vmem:[%s944_s4 + $0xd0] sm:$0x7]  ;;  %v269_v60 = vld [vmem:[%s944_s4 + $0x68] sm:$0xff]  ;;  %s1028_s7 = smov (!%p250_p8, %s698_s7), 31 }
  0x2e   : > { %728 = vmatpush1.bf16.msra.mxu1 %v727_v48  ;;  %v722_v57 = vpack.c.bf16 %v280_v55, %v272_v54  ;;  %721 = vmatprep.subr.msk.bf16.mxu0 %vm940_vm2, %v719_v52  ;;  %v732_v61 = vpack.c.bf16 %v282_v58, %v274_v56  ;;  %v735_v63 = vpack.c.bf16 %v269_v60, %v261_v59  ;;  %v263_v0 = vld [vmem:[%s944_s4 + $0x38] sm:$0xff]  ;;  %v260_v2 = vld [vmem:[%s944_s4 + $0x20] sm:$0xff]  ;;  %v262_v5 = vld [vmem:[%s944_s4 + $0x30] sm:$0xff]  ;;  %s699_s8 = sshll.u32 %s1028_s7, 2 }
  0x2f   : > { %731 = vmatprep.subr.msk.bf16.mxu1 %vm940_vm2, %v729_v53  ;;  %v271_v1 = vld [vmem:[%s944_s4 + $0x78] sm:$0xff]  ;;  %v268_v4 = vld [vmem:[%s944_s4 + $0x60] sm:$0xff]  ;;  %v270_v6 = vld [vmem:[%s944_s4 + $0x70] sm:$0xff]  ;;  %s253_s11 = scalar_lea.vmem %s1021_s3, %s699_s8 }
  0x30   : > { %v745_v3 = vpack.c.bf16 %v271_v1, %v263_v0  ;;  %v737_v7 = vpack.c.bf16 %v268_v4, %v260_v2  ;;  %v277_v8 = vld [vmem:[%s944_s4 + $0xa8] sm:$0xff]  ;;  %v279_v10 = vld [vmem:[%s944_s4 + $0xb8] sm:$0xff]  ;;  %v747_v11 = vpack.c.bf16 %v270_v6, %v262_v5  ;;  %v276_v14 = vld [vmem:[%s944_s4 + $0xa0] sm:$0xff] }
  0x31   : > { %724 = vmatpush1.bf16.msk.msra.mxu0 %vm940_vm2, %v722_v57  ;;  %v285_v9 = vld [vmem:[%s944_s4 + $0xe8] sm:$0x7]  ;;  %v287_v13 = vld [vmem:[%s944_s4 + $0xf8] sm:$0x7]  ;;  %v284_v15 = vld [vmem:[%s944_s4 + $0xe0] sm:$0x7] }
  0x32   : > { %734 = vmatpush1.bf16.msk.msra.mxu1 %vm940_vm2, %v732_v61  ;;  %736 = vmatprep.subr.bf16.mxu0 %v735_v63  ;;  %v739_v12 = vpack.c.bf16 %v285_v9, %v277_v8  ;;  %v749_v16 = vpack.c.bf16 %v287_v13, %v279_v10  ;;  %v278_v17 = vld [vmem:[%s944_s4 + $0xb0] sm:$0xff]  ;;  %v742_v19 = vpack.c.bf16 %v284_v15, %v276_v14 }
  0x33   : > { %746 = vmatprep.subr.bf16.mxu1 %v745_v3  ;;  %v286_v18 = vld [vmem:[%s944_s4 + $0xf0] sm:$0x7] }
  0x34   : > { %702 = vmatmul.mubr.msk.f32.vlgmr.msra.gmra.mrb[0].mxu0 %vm294_vm3, %v255_v62  ;;  %v752_v20 = vpack.c.bf16 %v286_v18, %v278_v17 }
  0x35   : > { %705 = vmatmul.mubr.msk.f32.vlgmr.msra.gmra.mrb[0].mxu1 %vm294_vm3, %v255_v62  ;;  %738 = vmatpush1.bf16.msra.mxu0 %v737_v7 }
  0x36   : > { %748 = vmatpush1.bf16.msra.mxu1 %v747_v11  ;;  %741 = vmatprep.subr.msk.bf16.mxu0 %vm940_vm2, %v739_v12 }
  0x37   : > { %751 = vmatprep.subr.msk.bf16.mxu1 %vm940_vm2, %v749_v16  ;;  %529 = vmatprep.mubr.f32.mxu0 %v807_v32 }
  0x38   : > { %600 = vmatprep.mubr.f32.mxu1 %v807_v32 }
  0x39   : > { %744 = vmatpush1.bf16.msk.msra.mxu0 %vm940_vm2, %v742_v19 }
  0x3a   : > { %754 = vmatpush1.bf16.msk.msra.mxu1 %vm940_vm2, %v752_v20 }
  0x3c   : > { %708 = vmatmul.mubr.msk.f32.vlgmr.msra.gmra.mrb[2].mxu0 %vm294_vm3, %v255_v62 }
  0x3d   : > { %711 = vmatmul.mubr.msk.f32.vlgmr.msra.gmra.mrb[2].mxu1 %vm294_vm3, %v255_v62 }
  0xa7   : > { %v292_v21 = vpop.permute.xlu0 %291 }
 0x107   : > { %v389_v22 = vpop.f32.mrb[0].mxu0 }
 0x108   : > { %v460_v23 = vpop.f32.mrb[0].mxu1  ;;  %v390_v24 = vadd.f32 %v389_v22, %v292_v21  ;;  %v391_v25 = vpop.f32.mrb[1].mxu0 }
 0x109   : > { %v392_v26 = vadd.f32 %v391_v25, %v292_v21  ;;  %v461_v27 = vadd.f32 %v460_v23, %v292_v21  ;;  %v462_v28 = vpop.f32.mrb[1].mxu1 }
 0x10a   : > { %v463_v29 = vadd.f32 %v462_v28, %v292_v21 }
 0x10b   : > { %v615_v30 = vcombine.low %v390_v24, %v392_v26 }
 0x10c   : > { %v616_v31 = vcombine.low %v461_v27, %v463_v29 }
 0x10d   : > { %623 = vst [vmem:[%s253_s11] sm:$0xff] %v615_v30 }
 0x10e   : > { %624 = vst [vmem:[%s253_s11 + $0x8] sm:$0xff] %v616_v31 }
 0x10f   : > { %v531_v32 = vpop.f32.mrb[2].mxu0 }
 0x110   : > { %v532_v33 = vadd.f32 %v531_v32, %v292_v21  ;;  %v602_v34 = vpop.f32.mrb[2].mxu1  ;;  %v533_v35 = vpop.f32.mrb[3].mxu0 }
 0x111   : > { %v603_v36 = vadd.f32 %v602_v34, %v292_v21  ;;  %v534_v37 = vadd.f32 %v533_v35, %v292_v21  ;;  %v604_v38 = vpop.f32.mrb[3].mxu1 }
 0x112   : > { %v605_v39 = vadd.f32 %v604_v38, %v292_v21 }
 0x113   : > { %v617_v40 = vcombine.low %v532_v33, %v534_v37 }
 0x114   : > { %v618_v41 = vcombine.low %v603_v36, %v605_v39 }
 0x115   : > { %625 = vst [vmem:[%s253_s11 + $0x10] sm:$0xff] %v617_v40 }
 0x116   : > { %626 = vst [vmem:[%s253_s11 + $0x18] sm:$0xff] %v618_v41 }
 0x117 PF: > { %p10_p9 = scmp.ge.s32.totalorder %s847_s16, 6   ;;  %s1024_s12 = smov %s801_s13 }
 0x118   : > { %s1025_s13 = smov %s856_s19  ;;  %s1026_s14 = smov %s847_s16 }
 0x119   :  { %12 = sbr.rel (!%p10_p9) target bundleno = 2 (0x2), region = 90 }

// kernel: vnet_forward.26
= control target key start
LH: loop header
LB: loop body
LE: loop exit
PB: predicated region body
PF: predicated region fallthrough
CT: control target
= control target key end

     0   :  { %vm72_vm0 = vcmask 1043456   ;;  %s774_s0 = inlined_call_operand.vmem [shape: f32[4,4096], index: 0, kind: input, shape index: {}]   ;;  %s775_s1 = inlined_call_operand.vmem [shape: f32[4,4096], index: 1, kind: output, shape index: {}]  }
   0x1   :  { %v423_v0 = vld [vmem:[%s774_s0] sm:$0xff]  ;;  %v428_v1 = vld [vmem:[%s774_s0 + $0x8] sm:$0xff]  ;;  %v439_v5 = vld [vmem:[%s774_s0 + $0x10] sm:$0xff] }
   0x2   :  { %v40_v2 = vcombine.high %v423_v0, %v423_v0  ;;  %v41_v3 = vcombine.high %v428_v1, %v428_v1  ;;  %v73_v4 = vsel %vm72_vm0, %v423_v0, 0.0  ;;  %v76_v7 = vsel %vm72_vm0, %v428_v1, 0.0  ;;  %v450_v11 = vld [vmem:[%s774_s0 + $0x18] sm:$0xff]  ;;  %v460_v17 = vld [vmem:[%s774_s0 + $0x20] sm:$0xff]  ;;  %v470_v23 = vld [vmem:[%s774_s0 + $0x28] sm:$0xff] }
   0x3   :  { %v42_v9 = vcombine.high %v439_v5, %v439_v5  ;;  %v80_v13 = vsel %vm72_vm0, %v439_v5, 0.0  ;;  %v43_v15 = vcombine.high %v450_v11, %v450_v11  ;;  %v84_v19 = vsel %vm72_vm0, %v450_v11, 0.0  ;;  %v480_v29 = vld [vmem:[%s774_s0 + $0x30] sm:$0xff]  ;;  %v490_v35 = vld [vmem:[%s774_s0 + $0x38] sm:$0xff]  ;;  %v500_v41 = vld [vmem:[%s774_s0 + $0x40] sm:$0xff] }
   0x4   :  { %v74_v6 = vsel %vm72_vm0, %v40_v2, 0.0  ;;  %v78_v10 = vsel %vm72_vm0, %v41_v3, 0.0  ;;  %v44_v21 = vcombine.high %v460_v17, %v460_v17  ;;  %v88_v25 = vsel %vm72_vm0, %v460_v17, 0.0  ;;  %v510_v47 = vld [vmem:[%s774_s0 + $0x48] sm:$0xff]  ;;  %v520_v53 = vld [vmem:[%s774_s0 + $0x50] sm:$0xff]  ;;  %v530_v59 = vld [vmem:[%s774_s0 + $0x58] sm:$0xff] }
   0x5   :  { %v75_v8 = vadd.f32 %v74_v6, %v73_v4  ;;  %v82_v16 = vsel %vm72_vm0, %v42_v9, 0.0  ;;  %v86_v22 = vsel %vm72_vm0, %v43_v15, 0.0  ;;  %v45_v27 = vcombine.high %v470_v23, %v470_v23  ;;  %v540_v3 = vld [vmem:[%s774_s0 + $0x60] sm:$0xff] }
   0x6   :  { %v90_v28 = vsel %vm72_vm0, %v44_v21, 0.0  ;;  %v92_v31 = vsel %vm72_vm0, %v470_v23, 0.0  ;;  %v46_v33 = vcombine.high %v480_v29, %v480_v29  ;;  %v96_v37 = vsel %vm72_vm0, %v480_v29, 0.0 }
   0x7   :  { %v77_v12 = vadd.f32 %v76_v7, %v75_v8  ;;  %v94_v34 = vsel %vm72_vm0, %v45_v27, 0.0  ;;  %v47_v39 = vcombine.high %v490_v35, %v490_v35  ;;  %v100_v43 = vsel %vm72_vm0, %v490_v35, 0.0 }
   0x8   :  { %v98_v40 = vsel %vm72_vm0, %v46_v33, 0.0  ;;  %v48_v45 = vcombine.high %v500_v41, %v500_v41  ;;  %v104_v49 = vsel %vm72_vm0, %v500_v41, 0.0  ;;  %v49_v51 = vcombine.high %v510_v47, %v510_v47 }
   0x9   :  { %v79_v14 = vadd.f32 %v78_v10, %v77_v12  ;;  %v102_v46 = vsel %vm72_vm0, %v47_v39, 0.0  ;;  %v108_v55 = vsel %vm72_vm0, %v510_v47, 0.0  ;;  %v50_v57 = vcombine.high %v520_v53, %v520_v53  ;;  %v550_v10 = vld [vmem:[%s774_s0 + $0x68] sm:$0xff] }
   0xa   :  { %v106_v52 = vsel %vm72_vm0, %v48_v45, 0.0  ;;  %v110_v58 = vsel %vm72_vm0, %v49_v51, 0.0  ;;  %v112_v61 = vsel %vm72_vm0, %v520_v53, 0.0  ;;  %v51_v63 = vcombine.high %v530_v59, %v530_v59 }
   0xb   :  { %v81_v18 = vadd.f32 %v80_v13, %v79_v14  ;;  %v114_v2 = vsel %vm72_vm0, %v50_v57, 0.0  ;;  %v116_v6 = vsel %vm72_vm0, %v530_v59, 0.0  ;;  %v52_v8 = vcombine.high %v540_v3, %v540_v3 }
   0xc   :  { %v118_v9 = vsel %vm72_vm0, %v51_v63, 0.0  ;;  %v120_v13 = vsel %vm72_vm0, %v540_v3, 0.0  ;;  %v53_v15 = vcombine.high %v550_v10, %v550_v10  ;;  %v409_v39 = vmov 839922192  }
   0xd   :  { %v83_v20 = vadd.f32 %v82_v16, %v81_v18  ;;  %v122_v16 = vsel %vm72_vm0, %v52_v8, 0.0  ;;  %v560_v18 = vld [vmem:[%s774_s0 + $0x70] sm:$0xff] }
   0xe   :  { %v128_v27 = vsel %vm72_vm0, %v560_v18, 0.0 }
   0xf   :  { %v85_v24 = vadd.f32 %v84_v19, %v83_v20  ;;  %v124_v20 = vsel %vm72_vm0, %v550_v10, 0.0 }
  0x11   :  { %v87_v26 = vadd.f32 %v86_v22, %v85_v24  ;;  %v54_v22 = vcombine.high %v560_v18, %v560_v18  ;;  %v126_v24 = vsel %vm72_vm0, %v53_v15, 0.0 }
  0x13   :  { %v89_v30 = vadd.f32 %v88_v25, %v87_v26  ;;  %v570_v25 = vld [vmem:[%s774_s0 + $0x78] sm:$0xff] }
  0x14   :  { %v132_v33 = vsel %vm72_vm0, %v570_v25, 0.0 }
  0x15   :  { %v91_v32 = vadd.f32 %v90_v28, %v89_v30  ;;  %v55_v30 = vcombine.high %v570_v25, %v570_v25 }
  0x17   :  { %v93_v36 = vadd.f32 %v92_v31, %v91_v32  ;;  %v130_v31 = vsel %vm72_vm0, %v54_v22, 0.0 }
  0x19   :  { %v95_v38 = vadd.f32 %v94_v34, %v93_v36  ;;  %v134_v36 = vsel %vm72_vm0, %v55_v30, 0.0 }
  0x1b   :  { %v97_v42 = vadd.f32 %v96_v37, %v95_v38 }
  0x1d   :  { %v99_v44 = vadd.f32 %v98_v40, %v97_v42  ;;  %v142_v40 = vunpack.c.l.s4 %v409_v39  ;;  %v144_v42 = vlaneseq }
  0x1f   :  { %v101_v48 = vadd.f32 %v100_v43, %v99_v44  ;;  %v143_v43 = vunpack.c.0.s8 %v142_v40  ;;  %v145_v44 = vshrl.u32 %v144_v42, 7 }
  0x21   :  { %v103_v50 = vadd.f32 %v102_v46, %v101_v48  ;;  %v580_v45 = vsub.s32 %v143_v43, %v145_v44 }
  0x23   :  { %v105_v54 = vadd.f32 %v104_v49, %v103_v50 }
  0x25   :  { %v107_v56 = vadd.f32 %v106_v52, %v105_v54 }
  0x27   :  { %v109_v60 = vadd.f32 %v108_v55, %v107_v56 }
  0x29   :  { %v111_v62 = vadd.f32 %v110_v58, %v109_v60 }
  0x2b   :  { %v113_v4 = vadd.f32 %v112_v61, %v111_v62 }
  0x2d   :  { %v115_v7 = vadd.f32 %v114_v2, %v113_v4 }
  0x2f   :  { %v117_v12 = vadd.f32 %v116_v6, %v115_v7 }
  0x31   :  { %v119_v14 = vadd.f32 %v118_v9, %v117_v12 }
  0x33   :  { %v121_v19 = vadd.f32 %v120_v13, %v119_v14 }
  0x35   :  { %v123_v21 = vadd.f32 %v122_v16, %v121_v19 }
  0x37   :  { %v125_v26 = vadd.f32 %v124_v20, %v123_v21 }
  0x39   :  { %v127_v28 = vadd.f32 %v126_v24, %v125_v26 }
  0x3b   :  { %v129_v32 = vadd.f32 %v128_v27, %v127_v28 }
  0x3d   :  { %v131_v34 = vadd.f32 %v130_v31, %v129_v32 }
  0x3f   :  { %v133_v37 = vadd.f32 %v132_v33, %v131_v34 }
  0x41   :  { %v135_v38 = vadd.f32 %v134_v36, %v133_v37 }
  0x43   :  { %136 = vadd.xlane.f32.xlu0 %v135_v38 }
  0xd0   :  { %v137_v46 = vpop.xlane.xlu0 %136 }
  0xd1   :  { %v139_v48 = vmul.f32 0.00024414063, %v137_v46 }
  0xd3   :  { %v583_v49 = vrot.slane %v139_v48, %v580_v45 }
  0xd5   :  { %v587_v50 = vsub.f32 %v423_v0, %v583_v49  ;;  %v591_v51 = vsub.f32 %v428_v1, %v583_v49  ;;  %v597_v54 = vsub.f32 %v439_v5, %v583_v49  ;;  %v603_v57 = vsub.f32 %v450_v11, %v583_v49 }
  0xd6   :  { %v612_v63 = vsub.f32 %v460_v17, %v583_v49  ;;  %v620_v9 = vsub.f32 %v470_v23, %v583_v49  ;;  %v628_v19 = vsub.f32 %v480_v29, %v583_v49  ;;  %v636_v27 = vsub.f32 %v490_v35, %v583_v49 }
  0xd7   :  { %v165_v52 = vmul.f32 %v587_v50, %v587_v50  ;;  %v166_v55 = vmul.f32 %v591_v51, %v591_v51  ;;  %v167_v0 = vmul.f32 %v597_v54, %v597_v54  ;;  %v168_v11 = vmul.f32 %v603_v57, %v603_v57 }
  0xd8   :  { %v169_v12 = vmul.f32 %v612_v63, %v612_v63  ;;  %v170_v20 = vmul.f32 %v620_v9, %v620_v9  ;;  %v171_v28 = vmul.f32 %v628_v19, %v628_v19  ;;  %v644_v34 = vsub.f32 %v500_v41, %v583_v49 }
  0xd9   :  { %v197_v56 = vcombine.high %v165_v52, %v165_v52  ;;  %v198_v1 = vcombine.high %v166_v55, %v166_v55  ;;  %v229_v58 = vsel %vm72_vm0, %v165_v52, 0.0  ;;  %v232_v5 = vsel %vm72_vm0, %v166_v55, 0.0 }
  0xda   :  { %v199_v2 = vcombine.high %v167_v0, %v167_v0  ;;  %v236_v7 = vsel %vm72_vm0, %v167_v0, 0.0  ;;  %v200_v13 = vcombine.high %v168_v11, %v168_v11  ;;  %v240_v15 = vsel %vm72_vm0, %v168_v11, 0.0 }
  0xdb   :  { %v230_v60 = vsel %vm72_vm0, %v197_v56, 0.0  ;;  %v234_v4 = vsel %vm72_vm0, %v198_v1, 0.0  ;;  %v201_v21 = vcombine.high %v169_v12, %v169_v12  ;;  %v244_v24 = vsel %vm72_vm0, %v169_v12, 0.0 }
  0xdc   :  { %v231_v61 = vadd.f32 %v230_v60, %v229_v58  ;;  %v238_v17 = vsel %vm72_vm0, %v199_v2, 0.0  ;;  %v242_v23 = vsel %vm72_vm0, %v200_v13, 0.0  ;;  %v202_v30 = vcombine.high %v170_v20, %v170_v20 }
  0xdd   :  { %v246_v29 = vsel %vm72_vm0, %v201_v21, 0.0  ;;  %v248_v32 = vsel %vm72_vm0, %v170_v20, 0.0  ;;  %v172_v36 = vmul.f32 %v636_v27, %v636_v27  ;;  %v203_v37 = vcombine.high %v171_v28, %v171_v28 }
  0xde   :  { %v233_v62 = vadd.f32 %v232_v5, %v231_v61  ;;  %v250_v35 = vsel %vm72_vm0, %v202_v30, 0.0  ;;  %v252_v39 = vsel %vm72_vm0, %v171_v28, 0.0  ;;  %v652_v42 = vsub.f32 %v510_v47, %v583_v49 }
  0xdf   :  { %v173_v43 = vmul.f32 %v644_v34, %v644_v34  ;;  %v204_v44 = vcombine.high %v172_v36, %v172_v36  ;;  %v254_v41 = vsel %vm72_vm0, %v203_v37, 0.0  ;;  %v256_v48 = vsel %vm72_vm0, %v172_v36, 0.0 }
  0xe0   :  { %v235_v6 = vadd.f32 %v234_v4, %v233_v62  ;;  %v660_v55 = vsub.f32 %v520_v53, %v583_v49  ;;  %v174_v56 = vmul.f32 %v652_v42, %v652_v42  ;;  %v668_v61 = vsub.f32 %v530_v59, %v583_v49 }
  0xe1   :  { %v205_v0 = vcombine.high %v173_v43, %v173_v43  ;;  %v258_v47 = vsel %vm72_vm0, %v204_v44, 0.0  ;;  %v260_v58 = vsel %vm72_vm0, %v173_v43, 0.0 }
  0xe2   :  { %v237_v8 = vadd.f32 %v236_v7, %v235_v6  ;;  %v175_v5 = vmul.f32 %v660_v55, %v660_v55  ;;  %v206_v62 = vcombine.high %v174_v56, %v174_v56  ;;  %v264_v2 = vsel %vm72_vm0, %v174_v56, 0.0 }
  0xe3   :  { %v262_v53 = vsel %vm72_vm0, %v205_v0, 0.0  ;;  %v161_v6 = vsub.f32 %v540_v3, %v583_v49  ;;  %v176_v7 = vmul.f32 %v668_v61, %v668_v61 }
  0xe4   :  { %v239_v14 = vadd.f32 %v238_v17, %v237_v8  ;;  %v207_v8 = vcombine.high %v175_v5, %v175_v5  ;;  %v266_v59 = vsel %vm72_vm0, %v206_v62, 0.0  ;;  %v268_v13 = vsel %vm72_vm0, %v175_v5, 0.0 }
  0xe5   :  { %v272_v3 = vsel %vm72_vm0, %v176_v7, 0.0 }
  0xe6   :  { %v241_v16 = vadd.f32 %v240_v15, %v239_v14  ;;  %v162_v14 = vsub.f32 %v550_v10, %v583_v49  ;;  %v177_v15 = vmul.f32 %v161_v6, %v161_v6  ;;  %v270_v20 = vsel %vm72_vm0, %v207_v8, 0.0 }
  0xe7   :  { %v164_v10 = vsub.f32 %v570_v25, %v583_v49 }
  0xe8   :  { %v243_v22 = vadd.f32 %v242_v23, %v241_v16  ;;  %v208_v16 = vcombine.high %v176_v7, %v176_v7 }
  0xea   :  { %v245_v26 = vadd.f32 %v244_v24, %v243_v22  ;;  %v163_v22 = vsub.f32 %v560_v18, %v583_v49  ;;  %v178_v24 = vmul.f32 %v162_v14, %v162_v14  ;;  %v274_v28 = vsel %vm72_vm0, %v208_v16, 0.0 }
  0xeb   :  { %v180_v18 = vmul.f32 %v164_v10, %v164_v10 }
  0xec   :  { %v247_v31 = vadd.f32 %v246_v29, %v245_v26  ;;  %v209_v26 = vcombine.high %v177_v15, %v177_v15  ;;  %v276_v29 = vsel %vm72_vm0, %v177_v15, 0.0 }
  0xed   :  { %v288_v49 = vsel %vm72_vm0, %v180_v18, 0.0 }
  0xee   :  { %v249_v33 = vadd.f32 %v248_v32, %v247_v31  ;;  %v179_v32 = vmul.f32 %v163_v22, %v163_v22  ;;  %v278_v36 = vsel %vm72_vm0, %v209_v26, 0.0 }
  0xf0   :  { %v251_v38 = vadd.f32 %v250_v35, %v249_v33  ;;  %v210_v33 = vcombine.high %v178_v24, %v178_v24  ;;  %v280_v35 = vsel %vm72_vm0, %v178_v24, 0.0  ;;  %v284_v44 = vsel %vm72_vm0, %v179_v32, 0.0 }
  0xf2   :  { %v253_v40 = vadd.f32 %v252_v39, %v251_v38  ;;  %v211_v39 = vcombine.high %v179_v32, %v179_v32 }
  0xf4   :  { %v255_v46 = vadd.f32 %v254_v41, %v253_v40  ;;  %v282_v40 = vsel %vm72_vm0, %v210_v33, 0.0 }
  0xf6   :  { %v257_v52 = vadd.f32 %v256_v48, %v255_v46  ;;  %v212_v46 = vcombine.high %v180_v18, %v180_v18  ;;  %v286_v48 = vsel %vm72_vm0, %v211_v39, 0.0 }
  0xf8   :  { %v259_v1 = vadd.f32 %v258_v47, %v257_v52  ;;  %v290_v56 = vsel %vm72_vm0, %v212_v46, 0.0 }
  0xfa   :  { %v261_v60 = vadd.f32 %v260_v58, %v259_v1 }
  0xfc   :  { %v263_v11 = vadd.f32 %v262_v53, %v261_v60 }
  0xfe   :  { %v265_v4 = vadd.f32 %v264_v2, %v263_v11 }
 0x100   :  { %v267_v12 = vadd.f32 %v266_v59, %v265_v4 }
 0x102   :  { %v269_v17 = vadd.f32 %v268_v13, %v267_v12 }
 0x104   :  { %v271_v21 = vadd.f32 %v270_v20, %v269_v17 }
 0x106   :  { %v273_v23 = vadd.f32 %v272_v3, %v271_v21 }
 0x108   :  { %v275_v30 = vadd.f32 %v274_v28, %v273_v23 }
 0x10a   :  { %v277_v31 = vadd.f32 %v276_v29, %v275_v30 }
 0x10c   :  { %v279_v37 = vadd.f32 %v278_v36, %v277_v31 }
 0x10e   :  { %v281_v38 = vadd.f32 %v280_v35, %v279_v37 }
 0x110   :  { %v283_v43 = vadd.f32 %v282_v40, %v281_v38 }
 0x112   :  { %v285_v41 = vadd.f32 %v284_v44, %v283_v43 }
 0x114   :  { %v287_v25 = vadd.f32 %v286_v48, %v285_v41 }
 0x116   :  { %v289_v52 = vadd.f32 %v288_v49, %v287_v25 }
 0x118   :  { %v291_v0 = vadd.f32 %v290_v56, %v289_v52 }
 0x11a   :  { %292 = vadd.xlane.f32.xlu0 %v291_v0 }
 0x1a7   :  { %v293_v47 = vpop.xlane.xlu0 %292 }
 0x1a8   :  { %v294_v1 = vmul.f32 0.00024414063, %v293_v47 }
 0x1aa   :  { %v295_v58 = vadd.f32 1e-05, %v294_v1 }
 0x1ac   :  { %407 = vrsqrt.f32 %v295_v58 }
 0x1b6   :  { %v408_v60 = vpop.eup %407 }
 0x1b7   :  { %v304_v5 = vrot.slane %v408_v60, %v580_v45 }
 0x1b9   :  { %v306_v62 = vmul.f32 %v304_v5, %v587_v50  ;;  %v307_v53 = vmul.f32 %v304_v5, %v591_v51  ;;  %v308_v11 = vmul.f32 %v304_v5, %v597_v54  ;;  %v309_v2 = vmul.f32 %v304_v5, %v603_v57 }
 0x1ba   :  { %v310_v4 = vmul.f32 %v304_v5, %v612_v63  ;;  %v311_v7 = vmul.f32 %v304_v5, %v620_v9  ;;  %v312_v8 = vmul.f32 %v304_v5, %v628_v19  ;;  %v313_v59 = vmul.f32 %v304_v5, %v636_v27 }
 0x1bb   :  { %v314_v12 = vmul.f32 %v304_v5, %v644_v34  ;;  %v315_v45 = vmul.f32 %v304_v5, %v652_v42  ;;  %v316_v50 = vmul.f32 %v304_v5, %v660_v55  ;;  %v317_v51 = vmul.f32 %v304_v5, %v668_v61 }
 0x1bc   :  { %v318_v13 = vmul.f32 %v304_v5, %v161_v6  ;;  %v319_v54 = vmul.f32 %v304_v5, %v162_v14  ;;  %v320_v17 = vmul.f32 %v304_v5, %v163_v22  ;;  %v321_v57 = vmul.f32 %v304_v5, %v164_v10 }
 0x1bd   :  { %vm322_vm1 = vcmp.ge.f32.partialorder %v306_v62, 0.0  ;;  %vm323_vm2 = vcmp.ge.f32.partialorder %v307_v53, 0.0  ;;  %vm324_vm3 = vcmp.ge.f32.partialorder %v308_v11, 0.0  ;;  %vm325_vm4 = vcmp.ge.f32.partialorder %v309_v2, 0.0 }
 0x1be   :  { %vm326_vm5 = vcmp.ge.f32.partialorder %v310_v4, 0.0  ;;  %vm327_vm6 = vcmp.ge.f32.partialorder %v311_v7, 0.0  ;;  %vm328_vm7 = vcmp.ge.f32.partialorder %v312_v8, 0.0  ;;  %vm329_vm8 = vcmp.ge.f32.partialorder %v313_v59, 0.0 }
 0x1bf   :  { %vm330_vm9 = vcmp.ge.f32.partialorder %v314_v12, 0.0  ;;  %vm331_vm10 = vcmp.ge.f32.partialorder %v315_v45, 0.0  ;;  %vm332_vm11 = vcmp.ge.f32.partialorder %v316_v50, 0.0  ;;  %vm333_vm12 = vcmp.ge.f32.partialorder %v317_v51, 0.0 }
 0x1c0   :  { %vm334_vm13 = vcmp.ge.f32.partialorder %v318_v13, 0.0  ;;  %vm335_vm14 = vcmp.ge.f32.partialorder %v319_v54, 0.0  ;;  %vm336_vm15 = vcmp.ge.f32.partialorder %v320_v17, 0.0  ;;  %vm337_vm0 = vcmp.ge.f32.partialorder %v321_v57, 0.0 }
 0x1c1   :  { %v338_v63 = vmul.f32 0.01, %v306_v62  ;;  %v339_v9 = vmul.f32 0.01, %v307_v53  ;;  %v340_v19 = vmul.f32 0.01, %v308_v11 }
 0x1c2   :  { %v341_v27 = vmul.f32 0.01, %v309_v2  ;;  %v342_v34 = vmul.f32 0.01, %v310_v4  ;;  %v343_v42 = vmul.f32 0.01, %v311_v7 }
 0x1c3   :  { %v344_v55 = vmul.f32 0.01, %v312_v8  ;;  %v345_v61 = vmul.f32 0.01, %v313_v59  ;;  %v346_v6 = vmul.f32 0.01, %v314_v12  ;;  %v354_v14 = vsel %vm322_vm1, %v306_v62, %v338_v63 }
 0x1c4   :  { %v347_v15 = vmul.f32 0.01, %v315_v45  ;;  %v348_v16 = vmul.f32 0.01, %v316_v50  ;;  %v349_v20 = vmul.f32 0.01, %v317_v51  ;;  %v355_v21 = vsel %vm323_vm2, %v307_v53, %v339_v9  ;;  %370 = vst [vmem:[%s775_s1] sm:$0xff] %v354_v14 }
 0x1c5   :  { %v350_v3 = vmul.f32 0.01, %v318_v13  ;;  %v351_v23 = vmul.f32 0.01, %v319_v54  ;;  %v352_v22 = vmul.f32 0.01, %v320_v17  ;;  %v356_v24 = vsel %vm324_vm3, %v308_v11, %v340_v19 }
 0x1c6   :  { %371 = vst [vmem:[%s775_s1 + $0x8] sm:$0xff] %v355_v21  ;;  %v353_v26 = vmul.f32 0.01, %v321_v57  ;;  %v357_v28 = vsel %vm325_vm4, %v309_v2, %v341_v27  ;;  %v358_v30 = vsel %vm326_vm5, %v310_v4, %v342_v34  ;;  %v359_v29 = vsel %vm327_vm6, %v311_v7, %v343_v42  ;;  %372 = vst [vmem:[%s775_s1 + $0x10] sm:$0xff] %v356_v24 }
 0x1c7   :  { %v360_v31 = vsel %vm328_vm7, %v312_v8, %v344_v55  ;;  %v361_v10 = vsel %vm329_vm8, %v313_v59, %v345_v61  ;;  %v362_v32 = vsel %vm330_vm9, %v314_v12, %v346_v6  ;;  %v363_v33 = vsel %vm331_vm10, %v315_v45, %v347_v15  ;;  %373 = vst [vmem:[%s775_s1 + $0x18] sm:$0xff] %v357_v28 }
 0x1c8   :  { %374 = vst [vmem:[%s775_s1 + $0x20] sm:$0xff] %v358_v30  ;;  %375 = vst [vmem:[%s775_s1 + $0x28] sm:$0xff] %v359_v29  ;;  %v364_v36 = vsel %vm332_vm11, %v316_v50, %v348_v16  ;;  %v365_v37 = vsel %vm333_vm12, %v317_v51, %v349_v20  ;;  %v366_v35 = vsel %vm334_vm13, %v318_v13, %v350_v3 }
 0x1c9   :  { %v367_v38 = vsel %vm335_vm14, %v319_v54, %v351_v23  ;;  %376 = vst [vmem:[%s775_s1 + $0x30] sm:$0xff] %v360_v31  ;;  %377 = vst [vmem:[%s775_s1 + $0x38] sm:$0xff] %v361_v10  ;;  %v368_v18 = vsel %vm336_vm15, %v320_v17, %v352_v22  ;;  %v369_v39 = vsel %vm337_vm0, %v321_v57, %v353_v26 }
 0x1ca   :  { %378 = vst [vmem:[%s775_s1 + $0x40] sm:$0xff] %v362_v32  ;;  %379 = vst [vmem:[%s775_s1 + $0x48] sm:$0xff] %v363_v33 }
 0x1cb   :  { %380 = vst [vmem:[%s775_s1 + $0x50] sm:$0xff] %v364_v36  ;;  %381 = vst [vmem:[%s775_s1 + $0x58] sm:$0xff] %v365_v37 }
 0x1cc   :  { %382 = vst [vmem:[%s775_s1 + $0x60] sm:$0xff] %v366_v35  ;;  %383 = vst [vmem:[%s775_s1 + $0x68] sm:$0xff] %v367_v38 }
 0x1cd   :  { %384 = vst [vmem:[%s775_s1 + $0x70] sm:$0xff] %v368_v18  ;;  %385 = vst [vmem:[%s775_s1 + $0x78] sm:$0xff] %v369_v39 }

// kernel: vnet_forward.27
= control target key start
LH: loop header
LB: loop body
LE: loop exit
PB: predicated region body
PF: predicated region fallthrough
CT: control target
= control target key end

     0   :  { %s1150_s12 = smov 0   ;;  %s1152_s13 = smov 0   ;;  %s1584_s0 = inlined_call_operand.vmem [shape: f32[4,108], index: 0, kind: input, shape index: {}]   ;;  %s1585_s1 = inlined_call_operand.vmem [shape: f32[108,4096], index: 1, kind: input, shape index: {}]   ;;  %s1586_s2 = inlined_call_operand.vmem [shape: f32[4,1], index: 2, kind: input, shape index: {}]   ;;  %s1587_s3 = inlined_call_operand.vmem [shape: f32[4,4096], index: 3, kind: output, shape index: {}]  }
   0x1   :  { %s1154_s14 = smov 0  }
   0x2 LB: > { %s929_s15 = sadd.s32 4294967295, %s1125_s14   ;;  %s1167_s16 = sadd.s32 1, %s1125_s14   ;;  %s1125_s14 = sphi %s1154_s14, %s1592_s14   ;;  %s1121_s13 = sphi %s1152_s13, %s1591_s13   ;;  %s1117_s12 = sphi %s1150_s12, %s1590_s12  }
   0x3   : > { %s38_s17 = ssub.s32 %s1125_s14, %s1167_s16  ;;  %s41_s18 = sadd.s32 1, %s1121_s13 }
   0x4   : > { %p39_p0 = scmp.eq.s32.totalorder %s38_s17, 0  ;;  %p48_p1 = scmp.ne.s32.totalorder %s1121_s13, %s1117_s12 }
   0x5   : > { %p49_p2 = scmp.eq.s32.totalorder %s1125_s14, 0  ;;  %p932_p4 = scmp.ge.s32.totalorder %s1125_s14, 4 }
   0x6   : > { %s1176_s19 = scalar_select %p39_p0, %s1121_s13, %s41_s18  }
   0x7   : > { %p50_p3 = por %p49_p2, %p48_p1  ;;  %127 = sbr.rel (%p932_p4) target bundleno = 75 (0x4b), region = 24 }
   0xe   : > { %130 = sbr.rel (!%p50_p3) target bundleno = 75 (0x4b), region = 28  ;;  %s132_s20 = sand.u32 (%p50_p3), 1, %s1121_s13  }
   0xf   : > { %s952_s21 = sshll.u32 (%p50_p3), %s1125_s14, 6  ;;  %s1073_s22 = smul.u32 (%p50_p3), 896, %s132_s20 }
  0x10   : > { %s1184_s25 = scalar_lea.vmem (%p50_p3), %s1585_s1, %s952_s21 }
  0x11   : > { %v150_v0 = vld [vmem:[%s1184_s25] sm:$0xff] (%p50_p3)  ;;  %v152_v1 = vld [vmem:[%s1184_s25 + $0x8] sm:$0xff] (%p50_p3)  ;;  %v154_v2 = vld [vmem:[%s1184_s25 + $0x10] sm:$0xff] (%p50_p3)  ;;  %s1192_s26 = scalar_lea.vmem (%p50_p3), [#allocation2], %s1073_s22 }
  0x12   : > { %v156_v3 = vld [vmem:[%s1184_s25 + $0x18] sm:$0xff] (%p50_p3)  ;;  %v158_v4 = vld [vmem:[%s1184_s25 + $0x20] sm:$0xff] (%p50_p3)  ;;  %v160_v5 = vld [vmem:[%s1184_s25 + $0x28] sm:$0xff] (%p50_p3)  ;;  %151 = vst [vmem:[%s1192_s26] sm:$0xff] (%p50_p3), %v150_v0 }
  0x13   : > { %153 = vst [vmem:[%s1192_s26 + $0x8] sm:$0xff] (%p50_p3), %v152_v1  ;;  %155 = vst [vmem:[%s1192_s26 + $0x10] sm:$0xff] (%p50_p3), %v154_v2  ;;  %v162_v6 = vld [vmem:[%s1184_s25 + $0x30] sm:$0xff] (%p50_p3)  ;;  %v164_v7 = vld [vmem:[%s1184_s25 + $0x38] sm:$0xff] (%p50_p3) }
  0x14   : > { %157 = vst [vmem:[%s1192_s26 + $0x18] sm:$0xff] (%p50_p3), %v156_v3  ;;  %159 = vst [vmem:[%s1192_s26 + $0x20] sm:$0xff] (%p50_p3), %v158_v4  ;;  %v166_v8 = vld [vmem:[%s1184_s25 + $0x100] sm:$0xff] (%p50_p3)  ;;  %v168_v9 = vld [vmem:[%s1184_s25 + $0x108] sm:$0xff] (%p50_p3) }
  0x15   : > { %161 = vst [vmem:[%s1192_s26 + $0x28] sm:$0xff] %v160_v5  ;;  %163 = vst [vmem:[%s1192_s26 + $0x30] sm:$0xff] %v162_v6  ;;  %v170_v10 = vld [vmem:[%s1184_s25 + $0x110] sm:$0xff]  ;;  %v172_v11 = vld [vmem:[%s1184_s25 + $0x118] sm:$0xff] }
  0x16   : > { %165 = vst [vmem:[%s1192_s26 + $0x38] sm:$0xff] %v164_v7  ;;  %167 = vst [vmem:[%s1192_s26 + $0x40] sm:$0xff] %v166_v8  ;;  %v174_v12 = vld [vmem:[%s1184_s25 + $0x120] sm:$0xff]  ;;  %v176_v13 = vld [vmem:[%s1184_s25 + $0x128] sm:$0xff] }
  0x17   : > { %169 = vst [vmem:[%s1192_s26 + $0x48] sm:$0xff] %v168_v9  ;;  %171 = vst [vmem:[%s1192_s26 + $0x50] sm:$0xff] %v170_v10  ;;  %v178_v14 = vld [vmem:[%s1184_s25 + $0x130] sm:$0xff]  ;;  %v180_v15 = vld [vmem:[%s1184_s25 + $0x138] sm:$0xff] }
  0x18   : > { %173 = vst [vmem:[%s1192_s26 + $0x58] sm:$0xff] %v172_v11  ;;  %175 = vst [vmem:[%s1192_s26 + $0x60] sm:$0xff] %v174_v12  ;;  %v182_v16 = vld [vmem:[%s1184_s25 + $0x200] sm:$0xff]  ;;  %v184_v17 = vld [vmem:[%s1184_s25 + $0x208] sm:$0xff] }
  0x19   : > { %177 = vst [vmem:[%s1192_s26 + $0x68] sm:$0xff] %v176_v13  ;;  %179 = vst [vmem:[%s1192_s26 + $0x70] sm:$0xff] %v178_v14  ;;  %v186_v18 = vld [vmem:[%s1184_s25 + $0x210] sm:$0xff]  ;;  %v188_v19 = vld [vmem:[%s1184_s25 + $0x218] sm:$0xff] }
  0x1a   : > { %181 = vst [vmem:[%s1192_s26 + $0x78] sm:$0xff] %v180_v15  ;;  %183 = vst [vmem:[%s1192_s26 + $0x80] sm:$0xff] %v182_v16  ;;  %v190_v20 = vld [vmem:[%s1184_s25 + $0x220] sm:$0xff]  ;;  %v192_v21 = vld [vmem:[%s1184_s25 + $0x228] sm:$0xff] }
  0x1b   : > { %185 = vst [vmem:[%s1192_s26 + $0x88] sm:$0xff] %v184_v17  ;;  %187 = vst [vmem:[%s1192_s26 + $0x90] sm:$0xff] %v186_v18  ;;  %v194_v22 = vld [vmem:[%s1184_s25 + $0x230] sm:$0xff]  ;;  %v196_v23 = vld [vmem:[%s1184_s25 + $0x238] sm:$0xff] }
  0x1c   : > { %189 = vst [vmem:[%s1192_s26 + $0x98] sm:$0xff] %v188_v19  ;;  %191 = vst [vmem:[%s1192_s26 + $0xa0] sm:$0xff] %v190_v20  ;;  %v198_v24 = vld [vmem:[%s1184_s25 + $0x300] sm:$0xff]  ;;  %v200_v25 = vld [vmem:[%s1184_s25 + $0x308] sm:$0xff] }
  0x1d   : > { %193 = vst [vmem:[%s1192_s26 + $0xa8] sm:$0xff] %v192_v21  ;;  %195 = vst [vmem:[%s1192_s26 + $0xb0] sm:$0xff] %v194_v22  ;;  %v202_v26 = vld [vmem:[%s1184_s25 + $0x310] sm:$0xff]  ;;  %v204_v27 = vld [vmem:[%s1184_s25 + $0x318] sm:$0xff] }
  0x1e   : > { %197 = vst [vmem:[%s1192_s26 + $0xb8] sm:$0xff] %v196_v23  ;;  %199 = vst [vmem:[%s1192_s26 + $0xc0] sm:$0xff] %v198_v24  ;;  %v206_v28 = vld [vmem:[%s1184_s25 + $0x320] sm:$0xff]  ;;  %v208_v29 = vld [vmem:[%s1184_s25 + $0x328] sm:$0xff] }
  0x1f   : > { %201 = vst [vmem:[%s1192_s26 + $0xc8] sm:$0xff] %v200_v25  ;;  %203 = vst [vmem:[%s1192_s26 + $0xd0] sm:$0xff] %v202_v26  ;;  %v210_v30 = vld [vmem:[%s1184_s25 + $0x330] sm:$0xff]  ;;  %v212_v31 = vld [vmem:[%s1184_s25 + $0x338] sm:$0xff] }
  0x20   : > { %205 = vst [vmem:[%s1192_s26 + $0xd8] sm:$0xff] %v204_v27  ;;  %207 = vst [vmem:[%s1192_s26 + $0xe0] sm:$0xff] %v206_v28  ;;  %v214_v32 = vld [vmem:[%s1184_s25 + $0x400] sm:$0xff]  ;;  %v216_v33 = vld [vmem:[%s1184_s25 + $0x408] sm:$0xff] }
  0x21   : > { %209 = vst [vmem:[%s1192_s26 + $0xe8] sm:$0xff] %v208_v29  ;;  %211 = vst [vmem:[%s1192_s26 + $0xf0] sm:$0xff] %v210_v30  ;;  %v218_v34 = vld [vmem:[%s1184_s25 + $0x410] sm:$0xff]  ;;  %v220_v35 = vld [vmem:[%s1184_s25 + $0x418] sm:$0xff] }
  0x22   : > { %213 = vst [vmem:[%s1192_s26 + $0xf8] sm:$0xff] %v212_v31  ;;  %215 = vst [vmem:[%s1192_s26 + $0x100] sm:$0xff] %v214_v32  ;;  %v222_v36 = vld [vmem:[%s1184_s25 + $0x420] sm:$0xff]  ;;  %v224_v37 = vld [vmem:[%s1184_s25 + $0x428] sm:$0xff] }
  0x23   : > { %217 = vst [vmem:[%s1192_s26 + $0x108] sm:$0xff] %v216_v33  ;;  %219 = vst [vmem:[%s1192_s26 + $0x110] sm:$0xff] %v218_v34  ;;  %v226_v38 = vld [vmem:[%s1184_s25 + $0x430] sm:$0xff]  ;;  %v228_v39 = vld [vmem:[%s1184_s25 + $0x438] sm:$0xff] }
  0x24   : > { %221 = vst [vmem:[%s1192_s26 + $0x118] sm:$0xff] %v220_v35  ;;  %223 = vst [vmem:[%s1192_s26 + $0x120] sm:$0xff] %v222_v36  ;;  %v230_v40 = vld [vmem:[%s1184_s25 + $0x500] sm:$0xff]  ;;  %v232_v41 = vld [vmem:[%s1184_s25 + $0x508] sm:$0xff] }
  0x25   : > { %225 = vst [vmem:[%s1192_s26 + $0x128] sm:$0xff] %v224_v37  ;;  %227 = vst [vmem:[%s1192_s26 + $0x130] sm:$0xff] %v226_v38  ;;  %v234_v42 = vld [vmem:[%s1184_s25 + $0x510] sm:$0xff]  ;;  %v236_v43 = vld [vmem:[%s1184_s25 + $0x518] sm:$0xff] }
  0x26   : > { %229 = vst [vmem:[%s1192_s26 + $0x138] sm:$0xff] %v228_v39  ;;  %231 = vst [vmem:[%s1192_s26 + $0x140] sm:$0xff] %v230_v40  ;;  %v238_v44 = vld [vmem:[%s1184_s25 + $0x520] sm:$0xff]  ;;  %v240_v45 = vld [vmem:[%s1184_s25 + $0x528] sm:$0xff] }
  0x27   : > { %233 = vst [vmem:[%s1192_s26 + $0x148] sm:$0xff] %v232_v41  ;;  %235 = vst [vmem:[%s1192_s26 + $0x150] sm:$0xff] %v234_v42  ;;  %v242_v46 = vld [vmem:[%s1184_s25 + $0x530] sm:$0xff]  ;;  %v244_v47 = vld [vmem:[%s1184_s25 + $0x538] sm:$0xff] }
  0x28   : > { %237 = vst [vmem:[%s1192_s26 + $0x158] sm:$0xff] %v236_v43  ;;  %239 = vst [vmem:[%s1192_s26 + $0x160] sm:$0xff] %v238_v44  ;;  %v246_v48 = vld [vmem:[%s1184_s25 + $0x600] sm:$0xff]  ;;  %v248_v49 = vld [vmem:[%s1184_s25 + $0x608] sm:$0xff] }
  0x29   : > { %241 = vst [vmem:[%s1192_s26 + $0x168] sm:$0xff] %v240_v45  ;;  %243 = vst [vmem:[%s1192_s26 + $0x170] sm:$0xff] %v242_v46  ;;  %v250_v50 = vld [vmem:[%s1184_s25 + $0x610] sm:$0xff]  ;;  %v252_v51 = vld [vmem:[%s1184_s25 + $0x618] sm:$0xff] }
  0x2a   : > { %245 = vst [vmem:[%s1192_s26 + $0x178] sm:$0xff] %v244_v47  ;;  %247 = vst [vmem:[%s1192_s26 + $0x180] sm:$0xff] %v246_v48  ;;  %v254_v52 = vld [vmem:[%s1184_s25 + $0x620] sm:$0xff]  ;;  %v256_v53 = vld [vmem:[%s1184_s25 + $0x628] sm:$0xff] }
  0x2b   : > { %249 = vst [vmem:[%s1192_s26 + $0x188] sm:$0xff] %v248_v49  ;;  %251 = vst [vmem:[%s1192_s26 + $0x190] sm:$0xff] %v250_v50  ;;  %v258_v54 = vld [vmem:[%s1184_s25 + $0x630] sm:$0xff]  ;;  %v260_v55 = vld [vmem:[%s1184_s25 + $0x638] sm:$0xff] }
  0x2c   : > { %253 = vst [vmem:[%s1192_s26 + $0x198] sm:$0xff] %v252_v51  ;;  %255 = vst [vmem:[%s1192_s26 + $0x1a0] sm:$0xff] %v254_v52  ;;  %v262_v56 = vld [vmem:[%s1184_s25 + $0x700] sm:$0xff]  ;;  %v264_v57 = vld [vmem:[%s1184_s25 + $0x708] sm:$0xff] }
  0x2d   : > { %257 = vst [vmem:[%s1192_s26 + $0x1a8] sm:$0xff] %v256_v53  ;;  %259 = vst [vmem:[%s1192_s26 + $0x1b0] sm:$0xff] %v258_v54  ;;  %v266_v58 = vld [vmem:[%s1184_s25 + $0x710] sm:$0xff]  ;;  %v268_v59 = vld [vmem:[%s1184_s25 + $0x718] sm:$0xff] }
  0x2e   : > { %261 = vst [vmem:[%s1192_s26 + $0x1b8] sm:$0xff] %v260_v55  ;;  %263 = vst [vmem:[%s1192_s26 + $0x1c0] sm:$0xff] %v262_v56  ;;  %v270_v60 = vld [vmem:[%s1184_s25 + $0x720] sm:$0xff]  ;;  %v272_v61 = vld [vmem:[%s1184_s25 + $0x728] sm:$0xff] }
  0x2f   : > { %265 = vst [vmem:[%s1192_s26 + $0x1c8] sm:$0xff] %v264_v57  ;;  %267 = vst [vmem:[%s1192_s26 + $0x1d0] sm:$0xff] %v266_v58  ;;  %v274_v62 = vld [vmem:[%s1184_s25 + $0x730] sm:$0xff]  ;;  %v276_v63 = vld [vmem:[%s1184_s25 + $0x738] sm:$0xff] }
  0x30   : > { %269 = vst [vmem:[%s1192_s26 + $0x1d8] sm:$0xff] %v268_v59  ;;  %271 = vst [vmem:[%s1192_s26 + $0x1e0] sm:$0xff] %v270_v60  ;;  %v278_v0 = vld [vmem:[%s1184_s25 + $0x800] sm:$0xff]  ;;  %v280_v1 = vld [vmem:[%s1184_s25 + $0x808] sm:$0xff] }
  0x31   : > { %273 = vst [vmem:[%s1192_s26 + $0x1e8] sm:$0xff] %v272_v61  ;;  %275 = vst [vmem:[%s1192_s26 + $0x1f0] sm:$0xff] %v274_v62  ;;  %v282_v2 = vld [vmem:[%s1184_s25 + $0x810] sm:$0xff]  ;;  %v284_v3 = vld [vmem:[%s1184_s25 + $0x818] sm:$0xff] }
  0x32   : > { %277 = vst [vmem:[%s1192_s26 + $0x1f8] sm:$0xff] %v276_v63  ;;  %279 = vst [vmem:[%s1192_s26 + $0x200] sm:$0xff] %v278_v0  ;;  %v286_v4 = vld [vmem:[%s1184_s25 + $0x820] sm:$0xff]  ;;  %v288_v5 = vld [vmem:[%s1184_s25 + $0x828] sm:$0xff] }
  0x33   : > { %281 = vst [vmem:[%s1192_s26 + $0x208] sm:$0xff] %v280_v1  ;;  %283 = vst [vmem:[%s1192_s26 + $0x210] sm:$0xff] %v282_v2  ;;  %v290_v6 = vld [vmem:[%s1184_s25 + $0x830] sm:$0xff]  ;;  %v292_v7 = vld [vmem:[%s1184_s25 + $0x838] sm:$0xff] }
  0x34   : > { %285 = vst [vmem:[%s1192_s26 + $0x218] sm:$0xff] %v284_v3  ;;  %287 = vst [vmem:[%s1192_s26 + $0x220] sm:$0xff] %v286_v4  ;;  %v294_v8 = vld [vmem:[%s1184_s25 + $0x900] sm:$0xff]  ;;  %v296_v9 = vld [vmem:[%s1184_s25 + $0x908] sm:$0xff] }
  0x35   : > { %289 = vst [vmem:[%s1192_s26 + $0x228] sm:$0xff] %v288_v5  ;;  %291 = vst [vmem:[%s1192_s26 + $0x230] sm:$0xff] %v290_v6  ;;  %v298_v10 = vld [vmem:[%s1184_s25 + $0x910] sm:$0xff]  ;;  %v300_v11 = vld [vmem:[%s1184_s25 + $0x918] sm:$0xff] }
  0x36   : > { %293 = vst [vmem:[%s1192_s26 + $0x238] sm:$0xff] %v292_v7  ;;  %295 = vst [vmem:[%s1192_s26 + $0x240] sm:$0xff] %v294_v8  ;;  %v302_v12 = vld [vmem:[%s1184_s25 + $0x920] sm:$0xff]  ;;  %v304_v13 = vld [vmem:[%s1184_s25 + $0x928] sm:$0xff] }
  0x37   : > { %297 = vst [vmem:[%s1192_s26 + $0x248] sm:$0xff] %v296_v9  ;;  %299 = vst [vmem:[%s1192_s26 + $0x250] sm:$0xff] %v298_v10  ;;  %v306_v14 = vld [vmem:[%s1184_s25 + $0x930] sm:$0xff]  ;;  %v308_v15 = vld [vmem:[%s1184_s25 + $0x938] sm:$0xff] }
  0x38   : > { %301 = vst [vmem:[%s1192_s26 + $0x258] sm:$0xff] %v300_v11  ;;  %303 = vst [vmem:[%s1192_s26 + $0x260] sm:$0xff] %v302_v12  ;;  %v310_v16 = vld [vmem:[%s1184_s25 + $0xa00] sm:$0xff]  ;;  %v312_v17 = vld [vmem:[%s1184_s25 + $0xa08] sm:$0xff] }
  0x39   : > { %305 = vst [vmem:[%s1192_s26 + $0x268] sm:$0xff] %v304_v13  ;;  %307 = vst [vmem:[%s1192_s26 + $0x270] sm:$0xff] %v306_v14  ;;  %v314_v18 = vld [vmem:[%s1184_s25 + $0xa10] sm:$0xff]  ;;  %v316_v19 = vld [vmem:[%s1184_s25 + $0xa18] sm:$0xff] }
  0x3a   : > { %309 = vst [vmem:[%s1192_s26 + $0x278] sm:$0xff] %v308_v15  ;;  %311 = vst [vmem:[%s1192_s26 + $0x280] sm:$0xff] %v310_v16  ;;  %v318_v20 = vld [vmem:[%s1184_s25 + $0xa20] sm:$0xff]  ;;  %v320_v21 = vld [vmem:[%s1184_s25 + $0xa28] sm:$0xff] }
  0x3b   : > { %313 = vst [vmem:[%s1192_s26 + $0x288] sm:$0xff] %v312_v17  ;;  %315 = vst [vmem:[%s1192_s26 + $0x290] sm:$0xff] %v314_v18  ;;  %v322_v22 = vld [vmem:[%s1184_s25 + $0xa30] sm:$0xff]  ;;  %v324_v23 = vld [vmem:[%s1184_s25 + $0xa38] sm:$0xff] }
  0x3c   : > { %317 = vst [vmem:[%s1192_s26 + $0x298] sm:$0xff] %v316_v19  ;;  %319 = vst [vmem:[%s1192_s26 + $0x2a0] sm:$0xff] %v318_v20  ;;  %v326_v24 = vld [vmem:[%s1184_s25 + $0xb00] sm:$0xff]  ;;  %v328_v25 = vld [vmem:[%s1184_s25 + $0xb08] sm:$0xff] }
  0x3d   : > { %321 = vst [vmem:[%s1192_s26 + $0x2a8] sm:$0xff] %v320_v21  ;;  %323 = vst [vmem:[%s1192_s26 + $0x2b0] sm:$0xff] %v322_v22  ;;  %v330_v26 = vld [vmem:[%s1184_s25 + $0xb10] sm:$0xff]  ;;  %v332_v27 = vld [vmem:[%s1184_s25 + $0xb18] sm:$0xff] }
  0x3e   : > { %325 = vst [vmem:[%s1192_s26 + $0x2b8] sm:$0xff] %v324_v23  ;;  %327 = vst [vmem:[%s1192_s26 + $0x2c0] sm:$0xff] %v326_v24  ;;  %v334_v28 = vld [vmem:[%s1184_s25 + $0xb20] sm:$0xff]  ;;  %v336_v29 = vld [vmem:[%s1184_s25 + $0xb28] sm:$0xff] }
  0x3f   : > { %329 = vst [vmem:[%s1192_s26 + $0x2c8] sm:$0xff] %v328_v25  ;;  %331 = vst [vmem:[%s1192_s26 + $0x2d0] sm:$0xff] %v330_v26  ;;  %v338_v30 = vld [vmem:[%s1184_s25 + $0xb30] sm:$0xff]  ;;  %v340_v31 = vld [vmem:[%s1184_s25 + $0xb38] sm:$0xff] }
  0x40   : > { %333 = vst [vmem:[%s1192_s26 + $0x2d8] sm:$0xff] %v332_v27  ;;  %335 = vst [vmem:[%s1192_s26 + $0x2e0] sm:$0xff] %v334_v28  ;;  %v342_v32 = vld [vmem:[%s1184_s25 + $0xc00] sm:$0xff]  ;;  %v344_v33 = vld [vmem:[%s1184_s25 + $0xc08] sm:$0xff] }
  0x41   : > { %337 = vst [vmem:[%s1192_s26 + $0x2e8] sm:$0xff] %v336_v29  ;;  %339 = vst [vmem:[%s1192_s26 + $0x2f0] sm:$0xff] %v338_v30  ;;  %v346_v34 = vld [vmem:[%s1184_s25 + $0xc10] sm:$0xff]  ;;  %v348_v35 = vld [vmem:[%s1184_s25 + $0xc18] sm:$0xff] }
  0x42   : > { %341 = vst [vmem:[%s1192_s26 + $0x2f8] sm:$0xff] %v340_v31  ;;  %343 = vst [vmem:[%s1192_s26 + $0x300] sm:$0xff] %v342_v32  ;;  %v350_v36 = vld [vmem:[%s1184_s25 + $0xc20] sm:$0xff]  ;;  %v352_v37 = vld [vmem:[%s1184_s25 + $0xc28] sm:$0xff] }
  0x43   : > { %345 = vst [vmem:[%s1192_s26 + $0x308] sm:$0xff] %v344_v33  ;;  %347 = vst [vmem:[%s1192_s26 + $0x310] sm:$0xff] %v346_v34  ;;  %v354_v38 = vld [vmem:[%s1184_s25 + $0xc30] sm:$0xff]  ;;  %v356_v39 = vld [vmem:[%s1184_s25 + $0xc38] sm:$0xff] }
  0x44   : > { %349 = vst [vmem:[%s1192_s26 + $0x318] sm:$0xff] %v348_v35  ;;  %351 = vst [vmem:[%s1192_s26 + $0x320] sm:$0xff] %v350_v36  ;;  %v358_v40 = vld [vmem:[%s1184_s25 + $0xd00] sm:$0xff]  ;;  %v360_v41 = vld [vmem:[%s1184_s25 + $0xd08] sm:$0xff] }
  0x45   : > { %353 = vst [vmem:[%s1192_s26 + $0x328] sm:$0xff] %v352_v37  ;;  %355 = vst [vmem:[%s1192_s26 + $0x330] sm:$0xff] %v354_v38  ;;  %v362_v42 = vld [vmem:[%s1184_s25 + $0xd10] sm:$0xff]  ;;  %v364_v43 = vld [vmem:[%s1184_s25 + $0xd18] sm:$0xff] }
  0x46   : > { %357 = vst [vmem:[%s1192_s26 + $0x338] sm:$0xff] %v356_v39  ;;  %359 = vst [vmem:[%s1192_s26 + $0x340] sm:$0xff] %v358_v40  ;;  %v366_v44 = vld [vmem:[%s1184_s25 + $0xd20] sm:$0xff]  ;;  %v368_v45 = vld [vmem:[%s1184_s25 + $0xd28] sm:$0xff] }
  0x47   : > { %361 = vst [vmem:[%s1192_s26 + $0x348] sm:$0xff] %v360_v41  ;;  %363 = vst [vmem:[%s1192_s26 + $0x350] sm:$0xff] %v362_v42  ;;  %v370_v46 = vld [vmem:[%s1184_s25 + $0xd30] sm:$0xff]  ;;  %v372_v47 = vld [vmem:[%s1184_s25 + $0xd38] sm:$0xff] }
  0x48   : > { %365 = vst [vmem:[%s1192_s26 + $0x358] sm:$0xff] %v364_v43  ;;  %367 = vst [vmem:[%s1192_s26 + $0x360] sm:$0xff] %v366_v44 }
  0x49   : > { %369 = vst [vmem:[%s1192_s26 + $0x368] sm:$0xff] %v368_v45  ;;  %371 = vst [vmem:[%s1192_s26 + $0x370] sm:$0xff] %v370_v46 }
  0x4a   : > { %373 = vst [vmem:[%s1192_s26 + $0x378] sm:$0xff] %v372_v47 }
  0x4b PF: > { %p935_p5 = scmp.ge.s32.totalorder %s1125_s14, 1  ;;  %p378_p6 = scmp.lt.s32.totalorder %s1125_s14, 5 }
  0x4d   : > { %p379_p7 = pnand %p935_p5, %p378_p6 }
  0x4e   : > { %s385_s27 = sand.u32 (!%p379_p7), 1, %s1117_s12   ;;  %v1127_v48 = vmov (!%p379_p7), 0.0   ;;  %v528_v49 = vld [vmem:[%s1586_s2] sm:$0xf] (!%p379_p7)  ;;  %v1128_v50 = vmov (!%p379_p7), 0   ;;  %vm538_vm0 = vcmask (!%p379_p7), 1043456  }
  0x4f   : > { %382 = sbr.rel (%p379_p7) target bundleno = 362 (0x16a), region = 51  ;;  %627 = vmatprep.mubr.f32.mxu0 (!%p379_p7), %v1127_v48  ;;  %698 = vmatprep.mubr.f32.mxu1 (!%p379_p7), %v1127_v48  ;;  %vm1129_vm1 = vmmov (!%p379_p7), 1   ;;  %vm534_vm3 = vcmask (!%p379_p7), 883712   ;;  %s936_s7 = sshll.u32 (!%p379_p7), %s929_s15, 3 }
  0x50   : > { %s1074_s28 = smul.u32 (!%p379_p7), 896, %s385_s27  ;;  %1102 = vset.pattern.permute.xlu0 (!%p379_p7), %v1128_v50  ;;  %vm1474_vm2 = vmpackc.low (!%p379_p7), %vm538_vm0, %vm1129_vm1  ;;  %p410_p8 = scmp.lt.s32.totalorder (!%p379_p7), %s936_s7, 31 }
  0x51   : > { %531 = vperm.xlu0 (!%p379_p7), %1102, %v528_v49  }
  0x52   : > { %s1420_s4 = scalar_lea.vmem (!%p379_p7), [#allocation2], %s1074_s28 }
  0x53   : > { %v417_v51 = vld [vmem:[%s1420_s4 + $0x8] sm:$0xff] (!%p379_p7)  ;;  %v419_v53 = vld [vmem:[%s1420_s4 + $0x18] sm:$0xff] (!%p379_p7)  ;;  %v416_v56 = vld [vmem:[%s1420_s4] sm:$0xff] (!%p379_p7) }
  0x54   : > { %v425_v52 = vld [vmem:[%s1420_s4 + $0x48] sm:$0xff] (!%p379_p7)  ;;  %v427_v55 = vld [vmem:[%s1420_s4 + $0x58] sm:$0xff] (!%p379_p7)  ;;  %v424_v57 = vld [vmem:[%s1420_s4 + $0x40] sm:$0xff] (!%p379_p7) }
  0x55   : > { %v953_v54 = vpack.c.bf16 (!%p379_p7), %v425_v52, %v417_v51  ;;  %v983_v58 = vpack.c.bf16 (!%p379_p7), %v427_v55, %v419_v53  ;;  %v955_v59 = vpack.c.bf16 (!%p379_p7), %v424_v57, %v416_v56  ;;  %v418_v60 = vld [vmem:[%s1420_s4 + $0x10] sm:$0xff] (!%p379_p7)  ;;  %v433_v62 = vld [vmem:[%s1420_s4 + $0x88] sm:$0xff] (!%p379_p7)  ;;  %v435_v1 = vld [vmem:[%s1420_s4 + $0x98] sm:$0xff] (!%p379_p7) }
  0x56   : > { %v426_v61 = vld [vmem:[%s1420_s4 + $0x50] sm:$0xff]  ;;  %v441_v0 = vld [vmem:[%s1420_s4 + $0xc8] sm:$0xff]  ;;  %v443_v2 = vld [vmem:[%s1420_s4 + $0xd8] sm:$0xff]  ;;  %s1594_s7 = smov (!%p410_p8, %s936_s7), 31 }
  0x57   : > { %954 = vmatprep.subr.bf16.mxu0 %v953_v54  ;;  %v985_v63 = vpack.c.bf16 %v426_v61, %v418_v60  ;;  %984 = vmatprep.subr.bf16.mxu1 %v983_v58  ;;  %v957_v3 = vpack.c.bf16 %v441_v0, %v433_v62  ;;  %v987_v4 = vpack.c.bf16 %v443_v2, %v435_v1  ;;  %v432_v5 = vld [vmem:[%s1420_s4 + $0x80] sm:$0xff]  ;;  %v434_v7 = vld [vmem:[%s1420_s4 + $0x90] sm:$0xff]  ;;  %v449_v10 = vld [vmem:[%s1420_s4 + $0x108] sm:$0xff]  ;;  %s937_s8 = sshll.u32 %s1594_s7, 2 }
  0x58   : > { %956 = vmatpush1.bf16.msra.mxu0 %v955_v59  ;;  %v440_v6 = vld [vmem:[%s1420_s4 + $0xc0] sm:$0xff]  ;;  %v442_v9 = vld [vmem:[%s1420_s4 + $0xd0] sm:$0xff]  ;;  %v457_v11 = vld [vmem:[%s1420_s4 + $0x148] sm:$0xff]  ;;  %s413_s11 = scalar_lea.vmem %s1587_s3, %s937_s8 }
  0x59   : > { %986 = vmatpush1.bf16.msra.mxu1 %v985_v63  ;;  %v959_v8 = vpack.c.bf16 %v440_v6, %v432_v5  ;;  %958 = vmatprep.subr.bf16.mxu0 %v957_v3  ;;  %v989_v12 = vpack.c.bf16 %v442_v9, %v434_v7  ;;  %v961_v13 = vpack.c.bf16 %v457_v11, %v449_v10  ;;  %v451_v14 = vld [vmem:[%s1420_s4 + $0x118] sm:$0xff]  ;;  %v448_v16 = vld [vmem:[%s1420_s4 + $0x100] sm:$0xff]  ;;  %v450_v19 = vld [vmem:[%s1420_s4 + $0x110] sm:$0xff] }
  0x5a   : > { %988 = vmatprep.subr.bf16.mxu1 %v987_v4  ;;  %v459_v15 = vld [vmem:[%s1420_s4 + $0x158] sm:$0xff]  ;;  %v456_v18 = vld [vmem:[%s1420_s4 + $0x140] sm:$0xff]  ;;  %v458_v20 = vld [vmem:[%s1420_s4 + $0x150] sm:$0xff] }
  0x5b   : > { %v991_v17 = vpack.c.bf16 %v459_v15, %v451_v14  ;;  %v963_v21 = vpack.c.bf16 %v456_v18, %v448_v16  ;;  %v465_v22 = vld [vmem:[%s1420_s4 + $0x188] sm:$0xff]  ;;  %v467_v24 = vld [vmem:[%s1420_s4 + $0x198] sm:$0xff]  ;;  %v993_v25 = vpack.c.bf16 %v458_v20, %v450_v19  ;;  %v464_v28 = vld [vmem:[%s1420_s4 + $0x180] sm:$0xff] }
  0x5c   : > { %960 = vmatpush1.bf16.msra.mxu0 %v959_v8  ;;  %v473_v23 = vld [vmem:[%s1420_s4 + $0x1c8] sm:$0xff]  ;;  %v475_v27 = vld [vmem:[%s1420_s4 + $0x1d8] sm:$0xff]  ;;  %v472_v29 = vld [vmem:[%s1420_s4 + $0x1c0] sm:$0xff] }
  0x5d   : > { %990 = vmatpush1.bf16.msra.mxu1 %v989_v12  ;;  %962 = vmatprep.subr.bf16.mxu0 %v961_v13  ;;  %v965_v26 = vpack.c.bf16 %v473_v23, %v465_v22  ;;  %v995_v30 = vpack.c.bf16 %v475_v27, %v467_v24  ;;  %v466_v31 = vld [vmem:[%s1420_s4 + $0x190] sm:$0xff]  ;;  %v481_v33 = vld [vmem:[%s1420_s4 + $0x208] sm:$0xff]  ;;  %v483_v35 = vld [vmem:[%s1420_s4 + $0x218] sm:$0xff]  ;;  %v967_v37 = vpack.c.bf16 %v472_v29, %v464_v28 }
  0x5e   : > { %992 = vmatprep.subr.bf16.mxu1 %v991_v17  ;;  %v474_v32 = vld [vmem:[%s1420_s4 + $0x1d0] sm:$0xff]  ;;  %v489_v34 = vld [vmem:[%s1420_s4 + $0x248] sm:$0xff]  ;;  %v491_v36 = vld [vmem:[%s1420_s4 + $0x258] sm:$0xff] }
  0x5f   : > { %v997_v38 = vpack.c.bf16 %v474_v32, %v466_v31  ;;  %v969_v39 = vpack.c.bf16 %v489_v34, %v481_v33  ;;  %v480_v40 = vld [vmem:[%s1420_s4 + $0x200] sm:$0xff]  ;;  %v482_v42 = vld [vmem:[%s1420_s4 + $0x210] sm:$0xff]  ;;  %v999_v43 = vpack.c.bf16 %v491_v36, %v483_v35  ;;  %v497_v45 = vld [vmem:[%s1420_s4 + $0x288] sm:$0xff] }
  0x60   : > { %964 = vmatpush1.bf16.msra.mxu0 %v963_v21  ;;  %v488_v41 = vld [vmem:[%s1420_s4 + $0x240] sm:$0xff]  ;;  %v490_v44 = vld [vmem:[%s1420_s4 + $0x250] sm:$0xff]  ;;  %v505_v46 = vld [vmem:[%s1420_s4 + $0x2c8] sm:$0xff] }
  0x61   : > { %994 = vmatpush1.bf16.msra.mxu1 %v993_v25  ;;  %966 = vmatprep.subr.bf16.mxu0 %v965_v26  ;;  %v499_v47 = vld [vmem:[%s1420_s4 + $0x298] sm:$0xff]  ;;  %v971_v50 = vpack.c.bf16 %v488_v41, %v480_v40  ;;  %v1001_v51 = vpack.c.bf16 %v490_v44, %v482_v42  ;;  %v973_v52 = vpack.c.bf16 %v505_v46, %v497_v45  ;;  %v496_v53 = vld [vmem:[%s1420_s4 + $0x280] sm:$0xff]  ;;  %v498_v55 = vld [vmem:[%s1420_s4 + $0x290] sm:$0xff] }
  0x62   : > { %996 = vmatprep.subr.bf16.mxu1 %v995_v30  ;;  %v507_v49 = vld [vmem:[%s1420_s4 + $0x2d8] sm:$0xff]  ;;  %v504_v54 = vld [vmem:[%s1420_s4 + $0x2c0] sm:$0xff]  ;;  %v506_v57 = vld [vmem:[%s1420_s4 + $0x2d0] sm:$0xff] }
  0x63   : > { %v1003_v56 = vpack.c.bf16 %v507_v49, %v499_v47  ;;  %v513_v58 = vld [vmem:[%s1420_s4 + $0x308] sm:$0xff]  ;;  %v515_v60 = vld [vmem:[%s1420_s4 + $0x318] sm:$0xff]  ;;  %v975_v62 = vpack.c.bf16 %v504_v54, %v496_v53  ;;  %v1005_v0 = vpack.c.bf16 %v506_v57, %v498_v55  ;;  %v512_v2 = vld [vmem:[%s1420_s4 + $0x300] sm:$0xff] }
  0x64   : > { %968 = vmatpush1.bf16.msra.mxu0 %v967_v37  ;;  %v521_v59 = vld [vmem:[%s1420_s4 + $0x348] sm:$0xf]  ;;  %v523_v61 = vld [vmem:[%s1420_s4 + $0x358] sm:$0xf]  ;;  %v520_v3 = vld [vmem:[%s1420_s4 + $0x340] sm:$0xf] }
  0x65   : > { %998 = vmatpush1.bf16.msra.mxu1 %v997_v38  ;;  %970 = vmatprep.subr.bf16.mxu0 %v969_v39  ;;  %v977_v1 = vpack.c.bf16 %v521_v59, %v513_v58  ;;  %v514_v4 = vld [vmem:[%s1420_s4 + $0x310] sm:$0xff]  ;;  %v1007_v5 = vpack.c.bf16 %v523_v61, %v515_v60  ;;  %v421_v7 = vld [vmem:[%s1420_s4 + $0x28] sm:$0xff]  ;;  %v423_v9 = vld [vmem:[%s1420_s4 + $0x38] sm:$0xff]  ;;  %v980_v11 = vpack.c.bf16 %v520_v3, %v512_v2 }
  0x66   : > { %1000 = vmatprep.subr.bf16.mxu1 %v999_v43  ;;  %v522_v6 = vld [vmem:[%s1420_s4 + $0x350] sm:$0xf]  ;;  %v429_v8 = vld [vmem:[%s1420_s4 + $0x68] sm:$0xff]  ;;  %v431_v10 = vld [vmem:[%s1420_s4 + $0x78] sm:$0xff] }
  0x67   : > { %v1010_v12 = vpack.c.bf16 %v522_v6, %v514_v4  ;;  %v1013_v13 = vpack.c.bf16 %v429_v8, %v421_v7  ;;  %v420_v14 = vld [vmem:[%s1420_s4 + $0x20] sm:$0xff]  ;;  %v422_v16 = vld [vmem:[%s1420_s4 + $0x30] sm:$0xff]  ;;  %v1043_v17 = vpack.c.bf16 %v431_v10, %v423_v9  ;;  %v437_v19 = vld [vmem:[%s1420_s4 + $0xa8] sm:$0xff] }
  0x68   : > { %972 = vmatpush1.bf16.msra.mxu0 %v971_v50  ;;  %v428_v15 = vld [vmem:[%s1420_s4 + $0x60] sm:$0xff]  ;;  %v430_v18 = vld [vmem:[%s1420_s4 + $0x70] sm:$0xff]  ;;  %v445_v20 = vld [vmem:[%s1420_s4 + $0xe8] sm:$0xff] }
  0x69   : > { %1002 = vmatpush1.bf16.msra.mxu1 %v1001_v51  ;;  %974 = vmatprep.subr.bf16.mxu0 %v973_v52  ;;  %v439_v21 = vld [vmem:[%s1420_s4 + $0xb8] sm:$0xff]  ;;  %v1503_v23 = vld [vmem:[%s1584_s0] sm:$0xf]  ;;  %v1015_v24 = vpack.c.bf16 %v428_v15, %v420_v14  ;;  %v1045_v25 = vpack.c.bf16 %v430_v18, %v422_v16  ;;  %v1017_v26 = vpack.c.bf16 %v445_v20, %v437_v19  ;;  %v438_v29 = vld [vmem:[%s1420_s4 + $0xb0] sm:$0xff] }
  0x6a   : > { %1004 = vmatprep.subr.bf16.mxu1 %v1003_v56  ;;  %v447_v22 = vld [vmem:[%s1420_s4 + $0xf8] sm:$0xff]  ;;  %v436_v27 = vld [vmem:[%s1420_s4 + $0xa0] sm:$0xff]  ;;  %v446_v31 = vld [vmem:[%s1420_s4 + $0xf0] sm:$0xff] }
  0x6b   : > { %v444_v28 = vld [vmem:[%s1420_s4 + $0xe0] sm:$0xff]  ;;  %v1047_v30 = vpack.c.bf16 %v447_v22, %v439_v21  ;;  %v453_v32 = vld [vmem:[%s1420_s4 + $0x128] sm:$0xff]  ;;  %v455_v34 = vld [vmem:[%s1420_s4 + $0x138] sm:$0xff]  ;;  %v1049_v37 = vpack.c.bf16 %v446_v31, %v438_v29 }
  0x6c   : > { %976 = vmatpush1.bf16.msra.mxu0 %v975_v62  ;;  %v461_v33 = vld [vmem:[%s1420_s4 + $0x168] sm:$0xff]  ;;  %v463_v35 = vld [vmem:[%s1420_s4 + $0x178] sm:$0xff]  ;;  %v1019_v36 = vpack.c.bf16 %v444_v28, %v436_v27  ;;  %v452_v39 = vld [vmem:[%s1420_s4 + $0x120] sm:$0xff] }
  0x6d   : > { %1006 = vmatpush1.bf16.msra.mxu1 %v1005_v0  ;;  %979 = vmatprep.subr.msk.bf16.mxu0 %vm1474_vm2, %v977_v1  ;;  %v1021_v38 = vpack.c.bf16 %v461_v33, %v453_v32  ;;  %v460_v40 = vld [vmem:[%s1420_s4 + $0x160] sm:$0xff]  ;;  %v454_v41 = vld [vmem:[%s1420_s4 + $0x130] sm:$0xff]  ;;  %v1051_v42 = vpack.c.bf16 %v463_v35, %v455_v34  ;;  %v469_v44 = vld [vmem:[%s1420_s4 + $0x1a8] sm:$0xff] }
  0x6e   : > { %1009 = vmatprep.subr.msk.bf16.mxu1 %vm1474_vm2, %v1007_v5  ;;  %v462_v43 = vld [vmem:[%s1420_s4 + $0x170] sm:$0xff]  ;;  %v477_v45 = vld [vmem:[%s1420_s4 + $0x1e8] sm:$0xff]  ;;  %v471_v46 = vld [vmem:[%s1420_s4 + $0x1b8] sm:$0xff]  ;;  %v1023_v49 = vpack.c.bf16 %v460_v40, %v452_v39 }
  0x6f   : > { %v479_v47 = vld [vmem:[%s1420_s4 + $0x1f8] sm:$0xff]  ;;  %v1053_v50 = vpack.c.bf16 %v462_v43, %v454_v41  ;;  %v1025_v51 = vpack.c.bf16 %v477_v45, %v469_v44  ;;  %v468_v52 = vld [vmem:[%s1420_s4 + $0x1a0] sm:$0xff]  ;;  %v470_v54 = vld [vmem:[%s1420_s4 + $0x1b0] sm:$0xff] }
  0x70   : > { %982 = vmatpush1.bf16.msk.msra.mxu0 %vm1474_vm2, %v980_v11  ;;  %v476_v53 = vld [vmem:[%s1420_s4 + $0x1e0] sm:$0xff]  ;;  %v1055_v55 = vpack.c.bf16 %v479_v47, %v471_v46  ;;  %v478_v56 = vld [vmem:[%s1420_s4 + $0x1f0] sm:$0xff]  ;;  %v485_v57 = vld [vmem:[%s1420_s4 + $0x228] sm:$0xff] }
  0x71   : > { %1012 = vmatpush1.bf16.msk.msra.mxu1 %vm1474_vm2, %v1010_v12  ;;  %1014 = vmatprep.subr.bf16.mxu0 %v1013_v13  ;;  %v487_v58 = vld [vmem:[%s1420_s4 + $0x238] sm:$0xff]  ;;  %v1027_v60 = vpack.c.bf16 %v476_v53, %v468_v52  ;;  %v1057_v61 = vpack.c.bf16 %v478_v56, %v470_v54  ;;  %v484_v0 = vld [vmem:[%s1420_s4 + $0x220] sm:$0xff]  ;;  %v486_v2 = vld [vmem:[%s1420_s4 + $0x230] sm:$0xff] }
  0x72   : > { %1044 = vmatprep.subr.bf16.mxu1 %v1043_v17  ;;  %v495_v59 = vld [vmem:[%s1420_s4 + $0x278] sm:$0xff]  ;;  %v492_v1 = vld [vmem:[%s1420_s4 + $0x260] sm:$0xff]  ;;  %v494_v4 = vld [vmem:[%s1420_s4 + $0x270] sm:$0xff] }
  0x73   : > { %940 = vmatmul.mubr.msk.f32.vlgmr.msra.gmra.mrb[0].mxu0 %vm534_vm3, %v1503_v23  ;;  %v1059_v3 = vpack.c.bf16 %v495_v59, %v487_v58  ;;  %v501_v5 = vld [vmem:[%s1420_s4 + $0x2a8] sm:$0xff]  ;;  %v503_v7 = vld [vmem:[%s1420_s4 + $0x2b8] sm:$0xff]  ;;  %v1031_v9 = vpack.c.bf16 %v492_v1, %v484_v0  ;;  %v1061_v10 = vpack.c.bf16 %v494_v4, %v486_v2  ;;  %v500_v12 = vld [vmem:[%s1420_s4 + $0x2a0] sm:$0xff] }
  0x74   : > { %943 = vmatmul.mubr.msk.f32.vlgmr.msra.gmra.mrb[0].mxu1 %vm534_vm3, %v1503_v23  ;;  %1016 = vmatpush1.bf16.msra.mxu0 %v1015_v24  ;;  %v509_v6 = vld [vmem:[%s1420_s4 + $0x2e8] sm:$0xff]  ;;  %v511_v8 = vld [vmem:[%s1420_s4 + $0x2f8] sm:$0xff]  ;;  %v508_v13 = vld [vmem:[%s1420_s4 + $0x2e0] sm:$0xff] }
  0x75   : > { %1046 = vmatpush1.bf16.msra.mxu1 %v1045_v25  ;;  %1018 = vmatprep.subr.bf16.mxu0 %v1017_v26  ;;  %v1033_v11 = vpack.c.bf16 %v509_v6, %v501_v5  ;;  %v502_v14 = vld [vmem:[%s1420_s4 + $0x2b0] sm:$0xff]  ;;  %v1063_v15 = vpack.c.bf16 %v511_v8, %v503_v7  ;;  %v517_v17 = vld [vmem:[%s1420_s4 + $0x328] sm:$0xff]  ;;  %v519_v19 = vld [vmem:[%s1420_s4 + $0x338] sm:$0xff]  ;;  %v1035_v21 = vpack.c.bf16 %v508_v13, %v500_v12 }
  0x76   : > { %1048 = vmatprep.subr.bf16.mxu1 %v1047_v30  ;;  %769 = vmatprep.mubr.f32.mxu0 %v1127_v48  ;;  %v510_v16 = vld [vmem:[%s1420_s4 + $0x2f0] sm:$0xff]  ;;  %v525_v18 = vld [vmem:[%s1420_s4 + $0x368] sm:$0xf]  ;;  %v527_v20 = vld [vmem:[%s1420_s4 + $0x378] sm:$0xf] }
  0x77   : > { %840 = vmatprep.mubr.f32.mxu1 %v1127_v48  ;;  %v493_v48 = vld [vmem:[%s1420_s4 + $0x268] sm:$0xff]  ;;  %v1065_v22 = vpack.c.bf16 %v510_v16, %v502_v14  ;;  %v1037_v24 = vpack.c.bf16 %v525_v18, %v517_v17  ;;  %v516_v25 = vld [vmem:[%s1420_s4 + $0x320] sm:$0xff]  ;;  %v1067_v27 = vpack.c.bf16 %v527_v20, %v519_v19  ;;  %v518_v28 = vld [vmem:[%s1420_s4 + $0x330] sm:$0xff] }
  0x78   : > { %1020 = vmatpush1.bf16.msra.mxu0 %v1019_v36  ;;  %v1029_v62 = vpack.c.bf16 %v493_v48, %v485_v57  ;;  %v524_v26 = vld [vmem:[%s1420_s4 + $0x360] sm:$0xf]  ;;  %v526_v29 = vld [vmem:[%s1420_s4 + $0x370] sm:$0xf] }
  0x79   : > { %1050 = vmatpush1.bf16.msra.mxu1 %v1049_v37  ;;  %1022 = vmatprep.subr.bf16.mxu0 %v1021_v38  ;;  %v1040_v30 = vpack.c.bf16 %v524_v26, %v516_v25  ;;  %v1070_v31 = vpack.c.bf16 %v526_v29, %v518_v28 }
  0x7a   : > { %1052 = vmatprep.subr.bf16.mxu1 %v1051_v42 }
  0x7c   : > { %1024 = vmatpush1.bf16.msra.mxu0 %v1023_v49 }
  0x7d   : > { %1054 = vmatpush1.bf16.msra.mxu1 %v1053_v50  ;;  %1026 = vmatprep.subr.bf16.mxu0 %v1025_v51 }
  0x7e   : > { %1056 = vmatprep.subr.bf16.mxu1 %v1055_v55 }
  0x80   : > { %1028 = vmatpush1.bf16.msra.mxu0 %v1027_v60 }
  0x81   : > { %1058 = vmatpush1.bf16.msra.mxu1 %v1057_v61  ;;  %1030 = vmatprep.subr.bf16.mxu0 %v1029_v62 }
  0x82   : > { %1060 = vmatprep.subr.bf16.mxu1 %v1059_v3 }
  0x84   : > { %1032 = vmatpush1.bf16.msra.mxu0 %v1031_v9 }
  0x85   : > { %1062 = vmatpush1.bf16.msra.mxu1 %v1061_v10  ;;  %1034 = vmatprep.subr.bf16.mxu0 %v1033_v11 }
  0x86   : > { %1064 = vmatprep.subr.bf16.mxu1 %v1063_v15 }
  0x88   : > { %1036 = vmatpush1.bf16.msra.mxu0 %v1035_v21 }
  0x89   : > { %1066 = vmatpush1.bf16.msra.mxu1 %v1065_v22  ;;  %1039 = vmatprep.subr.msk.bf16.mxu0 %vm1474_vm2, %v1037_v24 }
  0x8a   : > { %1069 = vmatprep.subr.msk.bf16.mxu1 %vm1474_vm2, %v1067_v27 }
  0x8c   : > { %1042 = vmatpush1.bf16.msk.msra.mxu0 %vm1474_vm2, %v1040_v30 }
  0x8d   : > { %1072 = vmatpush1.bf16.msk.msra.mxu1 %vm1474_vm2, %v1070_v31 }
  0x8f   : > { %946 = vmatmul.mubr.msk.f32.vlgmr.msra.gmra.mrb[2].mxu0 %vm534_vm3, %v1503_v23 }
  0x90   : > { %949 = vmatmul.mubr.msk.f32.vlgmr.msra.gmra.mrb[2].mxu1 %vm534_vm3, %v1503_v23 }
  0xd0   : > { %v532_v32 = vpop.permute.xlu0 %531 }
 0x146   : > { %v629_v33 = vpop.f32.mrb[0].mxu0 }
 0x147   : > { %v700_v34 = vpop.f32.mrb[0].mxu1  ;;  %v630_v35 = vadd.f32 %v629_v33, %v532_v32  ;;  %v631_v36 = vpop.f32.mrb[1].mxu0 }
 0x148   : > { %v632_v37 = vadd.f32 %v631_v36, %v532_v32  ;;  %v701_v38 = vadd.f32 %v700_v34, %v532_v32  ;;  %v702_v63 = vpop.f32.mrb[1].mxu1 }
 0x149   : > { %v703_v39 = vadd.f32 %v702_v63, %v532_v32 }
 0x14a   : > { %v855_v40 = vcombine.low %v630_v35, %v632_v37 }
 0x14b   : > { %v856_v23 = vcombine.low %v701_v38, %v703_v39 }
 0x14c   : > { %863 = vst [vmem:[%s413_s11] sm:$0xff] %v855_v40 }
 0x14d   : > { %864 = vst [vmem:[%s413_s11 + $0x8] sm:$0xff] %v856_v23 }
 0x162   : > { %v771_v41 = vpop.f32.mrb[2].mxu0 }
 0x163   : > { %v772_v42 = vadd.f32 %v771_v41, %v532_v32  ;;  %v842_v43 = vpop.f32.mrb[2].mxu1  ;;  %v773_v44 = vpop.f32.mrb[3].mxu0 }
 0x164   : > { %v843_v45 = vadd.f32 %v842_v43, %v532_v32  ;;  %v774_v46 = vadd.f32 %v773_v44, %v532_v32  ;;  %v844_v47 = vpop.f32.mrb[3].mxu1 }
 0x165   : > { %v845_v49 = vadd.f32 %v844_v47, %v532_v32 }
 0x166   : > { %v857_v50 = vcombine.low %v772_v42, %v774_v46 }
 0x167   : > { %v858_v51 = vcombine.low %v843_v45, %v845_v49 }
 0x168   : > { %865 = vst [vmem:[%s413_s11 + $0x10] sm:$0xff] %v857_v50 }
 0x169   : > { %866 = vst [vmem:[%s413_s11 + $0x18] sm:$0xff] %v858_v51 }
 0x16a PF: > { %p10_p9 = scmp.ge.s32.totalorder %s1167_s16, 6   ;;  %s1590_s12 = smov %s1121_s13 }
 0x16b   : > { %s1591_s13 = smov %s1176_s19  ;;  %s1592_s14 = smov %s1167_s16 }
 0x16c   :  { %12 = sbr.rel (!%p10_p9) target bundleno = 2 (0x2), region = 90 }

// kernel: vnet_forward.29
= control target key start
LH: loop header
LB: loop body
LE: loop exit
PB: predicated region body
PF: predicated region fallthrough
CT: control target
= control target key end

     0   :  { %v405_v3 = vmov 0   ;;  %s732_s1 = inlined_call_operand.vmem [shape: f32[256,384], index: 1, kind: input, shape index: {}]   ;;  %s733_s0 = inlined_call_operand.vmem [shape: f32[4,256], index: 0, kind: input, shape index: {}]   ;;  %s734_s2 = inlined_call_operand.vmem [shape: f32[4,1], index: 2, kind: input, shape index: {}]   ;;  %s735_s3 = inlined_call_operand.vmem [shape: f32[4,384], index: 3, kind: output, shape index: {}]  }
   0x1   :  { %v16_v0 = vld [vmem:[%s732_s1 + $0x8] sm:$0xff]  ;;  %v19_v1 = vld [vmem:[%s732_s1 + $0x20] sm:$0xff]  ;;  %403 = vset.pattern.permute.xlu0 %v405_v3  ;;  %v18_v5 = vld [vmem:[%s732_s1 + $0x18] sm:$0xff] }
   0x2   :  { %v15_v2 = vld [vmem:[%s732_s1] sm:$0xff]  ;;  %v306_v4 = vpack.c.bf16 %v19_v1, %v16_v0  ;;  %v22_v6 = vld [vmem:[%s732_s1 + $0x38] sm:$0xff]  ;;  %v25_v7 = vld [vmem:[%s732_s1 + $0x50] sm:$0xff] }
   0x3   :  { %v308_v8 = vpack.c.bf16 %v18_v5, %v15_v2  ;;  %v310_v9 = vpack.c.bf16 %v25_v7, %v22_v6  ;;  %v21_v10 = vld [vmem:[%s732_s1 + $0x30] sm:$0xff]  ;;  %v24_v11 = vld [vmem:[%s732_s1 + $0x48] sm:$0xff]  ;;  %v31_v13 = vld [vmem:[%s732_s1 + $0x80] sm:$0xff] }
   0x4   :  { %v28_v12 = vld [vmem:[%s732_s1 + $0x68] sm:$0xff]  ;;  %307 = vmatprep.subr.bf16.mxu0 %v306_v4  ;;  %v312_v14 = vpack.c.bf16 %v24_v11, %v21_v10  ;;  %v27_v16 = vld [vmem:[%s732_s1 + $0x60] sm:$0xff]  ;;  %v30_v17 = vld [vmem:[%s732_s1 + $0x78] sm:$0xff] }
   0x5   :  { %309 = vmatpush1.bf16.msra.mxu0 %v308_v8  ;;  %v314_v15 = vpack.c.bf16 %v31_v13, %v28_v12  ;;  %v34_v18 = vld [vmem:[%s732_s1 + $0x98] sm:$0xff]  ;;  %v37_v19 = vld [vmem:[%s732_s1 + $0xb0] sm:$0xff]  ;;  %v316_v20 = vpack.c.bf16 %v30_v17, %v27_v16  ;;  %v36_v23 = vld [vmem:[%s732_s1 + $0xa8] sm:$0xff] }
   0x6   :  { %311 = vmatprep.subr.bf16.mxu0 %v310_v9  ;;  %v318_v21 = vpack.c.bf16 %v37_v19, %v34_v18  ;;  %v33_v22 = vld [vmem:[%s732_s1 + $0x90] sm:$0xff]  ;;  %v40_v24 = vld [vmem:[%s732_s1 + $0xc8] sm:$0xff]  ;;  %v43_v25 = vld [vmem:[%s732_s1 + $0xe0] sm:$0xff] }
   0x7   :  { %v65_v26 = vld [vmem:[%s732_s1 + $0x190] sm:$0xff]  ;;  %v68_v27 = vld [vmem:[%s732_s1 + $0x1a8] sm:$0xff]  ;;  %v320_v30 = vpack.c.bf16 %v36_v23, %v33_v22  ;;  %v39_v31 = vld [vmem:[%s732_s1 + $0xc0] sm:$0xff]  ;;  %v322_v35 = vpack.c.bf16 %v43_v25, %v40_v24 }
   0x8   :  { %v17_v28 = vld [vmem:[%s732_s1 + $0x10] sm:$0xff]  ;;  %v20_v29 = vld [vmem:[%s732_s1 + $0x28] sm:$0xff]  ;;  %v42_v32 = vld [vmem:[%s732_s1 + $0xd8] sm:$0xff]  ;;  %v370_v33 = vpack.c.bf16 %v68_v27, %v65_v26 }
   0x9   :  { %313 = vmatpush1.bf16.msra.mxu0 %v312_v14  ;;  %v372_v34 = vpack.c.bf16 %v20_v29, %v17_v28  ;;  %v46_v36 = vld [vmem:[%s732_s1 + $0xf8] sm:$0xff]  ;;  %v71_v37 = vld [vmem:[%s732_s1 + $0x1c0] sm:$0xff]  ;;  %v49_v39 = vld [vmem:[%s732_s1 + $0x110] sm:$0xff]  ;;  %v324_v44 = vpack.c.bf16 %v42_v32, %v39_v31 }
   0xa   :  { %315 = vmatprep.subr.bf16.mxu0 %v314_v15  ;;  %v74_v38 = vld [vmem:[%s732_s1 + $0x1d8] sm:$0xff]  ;;  %371 = vmatprep.subr.bf16.mxu1 %v370_v33  ;;  %v23_v41 = vld [vmem:[%s732_s1 + $0x40] sm:$0xff]  ;;  %v77_v45 = vld [vmem:[%s732_s1 + $0x1f0] sm:$0xff]  ;;  %v326_v48 = vpack.c.bf16 %v49_v39, %v46_v36 }
   0xb   :  { %v374_v40 = vpack.c.bf16 %v74_v38, %v71_v37  ;;  %v26_v42 = vld [vmem:[%s732_s1 + $0x58] sm:$0xff]  ;;  %373 = vmatpush3.bf16.msra.mxu1 %v372_v34  ;;  %v80_v46 = vld [vmem:[%s732_s1 + $0x208] sm:$0xff]  ;;  %v29_v47 = vld [vmem:[%s732_s1 + $0x70] sm:$0xff] }
   0xc   :  { %v376_v43 = vpack.c.bf16 %v26_v42, %v23_v41  ;;  %v45_v49 = vld [vmem:[%s732_s1 + $0xf0] sm:$0xff]  ;;  %v48_v50 = vld [vmem:[%s732_s1 + $0x108] sm:$0xff]  ;;  %v378_v51 = vpack.c.bf16 %v80_v46, %v77_v45  ;;  %v55_v54 = vld [vmem:[%s732_s1 + $0x140] sm:$0xff] }
   0xd   :  { %317 = vmatpush1.bf16.msra.mxu0 %v316_v20  ;;  %375 = vmatprep.subr.bf16.mxu1 %v374_v40  ;;  %v32_v52 = vld [vmem:[%s732_s1 + $0x88] sm:$0xff]  ;;  %v83_v55 = vld [vmem:[%s732_s1 + $0x220] sm:$0xff]  ;;  %v86_v57 = vld [vmem:[%s732_s1 + $0x238] sm:$0xff]  ;;  %v328_v58 = vpack.c.bf16 %v48_v50, %v45_v49 }
   0xe   :  { %319 = vmatprep.subr.bf16.mxu0 %v318_v21  ;;  %v52_v53 = vld [vmem:[%s732_s1 + $0x128] sm:$0xff]  ;;  %v380_v56 = vpack.c.bf16 %v32_v52, %v29_v47  ;;  %v51_v59 = vld [vmem:[%s732_s1 + $0x120] sm:$0xff]  ;;  %v382_v60 = vpack.c.bf16 %v86_v57, %v83_v55  ;;  %v38_v62 = vld [vmem:[%s732_s1 + $0xb8] sm:$0xff] }
   0xf   :  { %377 = vmatpush3.bf16.msra.mxu1 %v376_v43  ;;  %v35_v61 = vld [vmem:[%s732_s1 + $0xa0] sm:$0xff]  ;;  %v330_v63 = vpack.c.bf16 %v55_v54, %v52_v53  ;;  %v54_v0 = vld [vmem:[%s732_s1 + $0x138] sm:$0xff]  ;;  %v89_v1 = vld [vmem:[%s732_s1 + $0x250] sm:$0xff] }
  0x10   :  { %379 = vmatprep.subr.bf16.mxu1 %v378_v51  ;;  %v92_v2 = vld [vmem:[%s732_s1 + $0x268] sm:$0xff]  ;;  %v58_v3 = vld [vmem:[%s732_s1 + $0x158] sm:$0xff]  ;;  %v61_v4 = vld [vmem:[%s732_s1 + $0x170] sm:$0xff]  ;;  %v384_v5 = vpack.c.bf16 %v38_v62, %v35_v61  ;;  %v332_v6 = vpack.c.bf16 %v54_v0, %v51_v59 }
  0x11   :  { %321 = vmatpush1.bf16.msra.mxu0 %v320_v30  ;;  %v57_v7 = vld [vmem:[%s732_s1 + $0x150] sm:$0xff]  ;;  %v386_v8 = vpack.c.bf16 %v92_v2, %v89_v1  ;;  %v44_v10 = vld [vmem:[%s732_s1 + $0xe8] sm:$0xff]  ;;  %v334_v11 = vpack.c.bf16 %v61_v4, %v58_v3  ;;  %v95_v13 = vld [vmem:[%s732_s1 + $0x280] sm:$0xff] }
  0x12   :  { %323 = vmatprep.subr.bf16.mxu0 %v322_v35  ;;  %v41_v9 = vld [vmem:[%s732_s1 + $0xd0] sm:$0xff]  ;;  %v60_v12 = vld [vmem:[%s732_s1 + $0x168] sm:$0xff]  ;;  %v98_v14 = vld [vmem:[%s732_s1 + $0x298] sm:$0xff] }
  0x13   :  { %381 = vmatpush3.bf16.msra.mxu1 %v380_v56  ;;  %v64_v15 = vld [vmem:[%s732_s1 + $0x188] sm:$0xff]  ;;  %v67_v16 = vld [vmem:[%s732_s1 + $0x1a0] sm:$0xff]  ;;  %v388_v17 = vpack.c.bf16 %v44_v10, %v41_v9  ;;  %v336_v18 = vpack.c.bf16 %v60_v12, %v57_v7  ;;  %v390_v20 = vpack.c.bf16 %v98_v14, %v95_v13  ;;  %v50_v22 = vld [vmem:[%s732_s1 + $0x118] sm:$0xff] }
  0x14   :  { %383 = vmatprep.subr.bf16.mxu1 %v382_v60  ;;  %v63_v19 = vld [vmem:[%s732_s1 + $0x180] sm:$0xff]  ;;  %v338_v23 = vpack.c.bf16 %v67_v16, %v64_v15  ;;  %v66_v24 = vld [vmem:[%s732_s1 + $0x198] sm:$0xff]  ;;  %v101_v25 = vld [vmem:[%s732_s1 + $0x2b0] sm:$0xff] }
  0x15   :  { %325 = vmatpush1.bf16.msra.mxu0 %v324_v44  ;;  %v47_v21 = vld [vmem:[%s732_s1 + $0x100] sm:$0xff]  ;;  %v104_v26 = vld [vmem:[%s732_s1 + $0x2c8] sm:$0xff]  ;;  %v70_v27 = vld [vmem:[%s732_s1 + $0x1b8] sm:$0xff]  ;;  %v340_v32 = vpack.c.bf16 %v66_v24, %v63_v19 }
  0x16   :  { %327 = vmatprep.subr.bf16.mxu0 %v326_v48  ;;  %v73_v28 = vld [vmem:[%s732_s1 + $0x1d0] sm:$0xff]  ;;  %v392_v30 = vpack.c.bf16 %v50_v22, %v47_v21  ;;  %v394_v33 = vpack.c.bf16 %v104_v26, %v101_v25  ;;  %v56_v34 = vld [vmem:[%s732_s1 + $0x148] sm:$0xff]  ;;  %v630_v35 = vld [vmem:[%s733_s0] sm:$0xff] }
  0x17   :  { %385 = vmatpush3.bf16.msra.mxu1 %v384_v5  ;;  %v69_v29 = vld [vmem:[%s732_s1 + $0x1b0] sm:$0xff]  ;;  %v111_v36 = vld [vmem:[%s734_s2] sm:$0xf]  ;;  %v342_v37 = vpack.c.bf16 %v73_v28, %v70_v27  ;;  %v72_v38 = vld [vmem:[%s732_s1 + $0x1c8] sm:$0xff]  ;;  %v118_v41 = vcombine.high %v630_v35, %v630_v35 }
  0x18   :  { %387 = vmatprep.subr.bf16.mxu1 %v386_v8  ;;  %v53_v31 = vld [vmem:[%s732_s1 + $0x130] sm:$0xff]  ;;  %v107_v39 = vld [vmem:[%s732_s1 + $0x2e0] sm:$0xff]  ;;  %v110_v40 = vld [vmem:[%s732_s1 + $0x2f8] sm:$0xff]  ;;  %114 = vperm.xlu0 %403, %v111_v36   ;;  %v344_v45 = vpack.c.bf16 %v72_v38, %v69_v29 }
  0x19   :  { %329 = vmatpush1.bf16.msra.mxu0 %v328_v58  ;;  %v76_v42 = vld [vmem:[%s732_s1 + $0x1e8] sm:$0xff]  ;;  %v79_v43 = vld [vmem:[%s732_s1 + $0x200] sm:$0xff]  ;;  %v396_v44 = vpack.c.bf16 %v56_v34, %v53_v31  ;;  %255 = vmatprep.mubr.f32.mxu1 %v118_v41  ;;  %v398_v46 = vpack.c.bf16 %v110_v40, %v107_v39  ;;  %v62_v48 = vld [vmem:[%s732_s1 + $0x178] sm:$0xff] }
  0x1a   :  { %331 = vmatprep.subr.bf16.mxu0 %v330_v63  ;;  %v59_v47 = vld [vmem:[%s732_s1 + $0x160] sm:$0xff]  ;;  %v346_v49 = vpack.c.bf16 %v79_v43, %v76_v42  ;;  %v78_v51 = vld [vmem:[%s732_s1 + $0x1f8] sm:$0xff]  ;;  %184 = vmatprep.mubr.f32.mxu0 %v118_v41  ;;  %v85_v53 = vld [vmem:[%s732_s1 + $0x230] sm:$0xff] }
  0x1b   :  { %389 = vmatpush3.bf16.msra.mxu1 %v388_v17  ;;  %v75_v50 = vld [vmem:[%s732_s1 + $0x1e0] sm:$0xff]  ;;  %v82_v52 = vld [vmem:[%s732_s1 + $0x218] sm:$0xff]  ;;  %v400_v54 = vpack.c.bf16 %v62_v48, %v59_v47  ;;  %v81_v57 = vld [vmem:[%s732_s1 + $0x210] sm:$0xff] }
  0x1c   :  { %391 = vmatprep.subr.bf16.mxu1 %v390_v20  ;;  %v348_v55 = vpack.c.bf16 %v78_v51, %v75_v50  ;;  %v350_v56 = vpack.c.bf16 %v85_v53, %v82_v52  ;;  %v84_v58 = vld [vmem:[%s732_s1 + $0x228] sm:$0xff]  ;;  %v91_v60 = vld [vmem:[%s732_s1 + $0x260] sm:$0xff]  ;;  %v90_v0 = vld [vmem:[%s732_s1 + $0x258] sm:$0xff] }
  0x1d   :  { %333 = vmatpush1.bf16.msra.mxu0 %v332_v6  ;;  %v88_v59 = vld [vmem:[%s732_s1 + $0x248] sm:$0xff]  ;;  %v352_v61 = vpack.c.bf16 %v84_v58, %v81_v57  ;;  %v87_v63 = vld [vmem:[%s732_s1 + $0x240] sm:$0xff]  ;;  %v94_v1 = vld [vmem:[%s732_s1 + $0x278] sm:$0xff] }
  0x1e   :  { %335 = vmatprep.subr.bf16.mxu0 %v334_v11  ;;  %v354_v62 = vpack.c.bf16 %v91_v60, %v88_v59  ;;  %v97_v2 = vld [vmem:[%s732_s1 + $0x290] sm:$0xff]  ;;  %v356_v3 = vpack.c.bf16 %v90_v0, %v87_v63  ;;  %v96_v6 = vld [vmem:[%s732_s1 + $0x288] sm:$0xff]  ;;  %v103_v8 = vld [vmem:[%s732_s1 + $0x2c0] sm:$0xff] }
  0x1f   :  { %393 = vmatpush3.bf16.msra.mxu1 %v392_v30  ;;  %v358_v4 = vpack.c.bf16 %v97_v2, %v94_v1  ;;  %v93_v5 = vld [vmem:[%s732_s1 + $0x270] sm:$0xff]  ;;  %v100_v7 = vld [vmem:[%s732_s1 + $0x2a8] sm:$0xff]  ;;  %v99_v11 = vld [vmem:[%s732_s1 + $0x2a0] sm:$0xff] }
  0x20   :  { %395 = vmatprep.subr.bf16.mxu1 %v394_v33  ;;  %v360_v9 = vpack.c.bf16 %v96_v6, %v93_v5  ;;  %v362_v10 = vpack.c.bf16 %v103_v8, %v100_v7  ;;  %v102_v12 = vld [vmem:[%s732_s1 + $0x2b8] sm:$0xff]  ;;  %v109_v14 = vld [vmem:[%s732_s1 + $0x2f0] sm:$0xff] }
  0x21   :  { %337 = vmatpush1.bf16.msra.mxu0 %v336_v18  ;;  %v106_v13 = vld [vmem:[%s732_s1 + $0x2d8] sm:$0xff]  ;;  %v364_v15 = vpack.c.bf16 %v102_v12, %v99_v11  ;;  %v105_v17 = vld [vmem:[%s732_s1 + $0x2d0] sm:$0xff]  ;;  %v108_v18 = vld [vmem:[%s732_s1 + $0x2e8] sm:$0xff] }
  0x22   :  { %339 = vmatprep.subr.bf16.mxu0 %v338_v23  ;;  %v366_v16 = vpack.c.bf16 %v109_v14, %v106_v13  ;;  %v368_v19 = vpack.c.bf16 %v108_v18, %v105_v17 }
  0x23   :  { %397 = vmatpush3.bf16.msra.mxu1 %v396_v44 }
  0x24   :  { %399 = vmatprep.subr.bf16.mxu1 %v398_v46 }
  0x25   :  { %341 = vmatpush1.bf16.msra.mxu0 %v340_v32 }
  0x26   :  { %343 = vmatprep.subr.bf16.mxu0 %v342_v37 }
  0x27   :  { %401 = vmatpush3.bf16.msra.mxu1 %v400_v54 }
  0x29   :  { %345 = vmatpush1.bf16.msra.mxu0 %v344_v45 }
  0x2a   :  { %347 = vmatprep.subr.bf16.mxu0 %v346_v49  ;;  %256 = vmatmul.mubr.f32.vlgmr.msra.gmra.mrb[0].mxu1 %v630_v35 }
  0x2d   :  { %349 = vmatpush1.bf16.msra.mxu0 %v348_v55 }
  0x2e   :  { %351 = vmatprep.subr.bf16.mxu0 %v350_v56 }
  0x31   :  { %353 = vmatpush1.bf16.msra.mxu0 %v352_v61 }
  0x32   :  { %355 = vmatprep.subr.bf16.mxu0 %v354_v62 }
  0x35   :  { %357 = vmatpush1.bf16.msra.mxu0 %v356_v3 }
  0x36   :  { %359 = vmatprep.subr.bf16.mxu0 %v358_v4 }
  0x39   :  { %361 = vmatpush1.bf16.msra.mxu0 %v360_v9 }
  0x3a   :  { %363 = vmatprep.subr.bf16.mxu0 %v362_v10 }
  0x3d   :  { %365 = vmatpush1.bf16.msra.mxu0 %v364_v15 }
  0x3e   :  { %367 = vmatprep.subr.bf16.mxu0 %v366_v16 }
  0x41   :  { %369 = vmatpush1.bf16.msra.mxu0 %v368_v19 }
  0x44   :  { %185 = vmatmul.mubr.f32.vlgmr.msra.gmra.mrb[0].mxu0 %v630_v35 }
  0x97   :  { %v115_v22 = vpop.permute.xlu0 %114 }
  0xfd   :  { %v303_v20 = vpop.f32.mrb[0].mxu1 }
  0xfe   :  { %v304_v21 = vpop.f32.mrb[1].mxu1 }
  0xff   :  { %v305_v23 = vadd.f32 %v304_v21, %v303_v20 }
 0x101   :  { %v258_v24 = vadd.f32 %v305_v23, %v115_v22 }
 0x103   :  { %266 = vst [vmem:[%s735_s3 + $0x8] sm:$0xf] %v258_v24 }
 0x117   :  { %v186_v25 = vpop.f32.mrb[0].mxu0 }
 0x118   :  { %v187_v26 = vadd.f32 %v186_v25, %v115_v22  ;;  %v188_v27 = vpop.f32.mrb[1].mxu0 }
 0x119   :  { %v189_v28 = vadd.f32 %v188_v27, %v115_v22 }
 0x11b   :  { %v263_v29 = vcombine.low %v187_v26, %v189_v28 }
 0x11d   :  { %265 = vst [vmem:[%s735_s3] sm:$0xff] %v263_v29 }

// kernel: vnet_forward.31
= control target key start
LH: loop header
LB: loop body
LE: loop exit
PB: predicated region body
PF: predicated region fallthrough
CT: control target
= control target key end

     0   :  { %vm12_vm0 = vcmask 711680   ;;  %s85_s0 = inlined_call_operand.vmem [shape: f32[8,343], index: 0, kind: input, shape index: {}]   ;;  %s86_s1 = inlined_call_operand.vmem [shape: f32[8,343], index: 1, kind: output, shape index: {}]  }
   0x1   :  { %v8_v0 = vld [vmem:[%s85_s0] sm:$0xff]  ;;  %v9_v1 = vld [vmem:[%s85_s0 + $0x8] sm:$0xff]  ;;  %v10_v2 = vld [vmem:[%s85_s0 + $0x10] sm:$0xff] }
   0x2   :  { %v11_v3 = vadd.f32 %v9_v1, %v8_v0  ;;  %v13_v4 = vsel %vm12_vm0, %v10_v2, 0.0 }
   0x4   :  { %v14_v5 = vadd.f32 %v13_v4, %v11_v3 }
   0x6   :  { %15 = vadd.xlane.f32.xlu0 %v14_v5 }
  0x93   :  { %v16_v6 = vpop.xlane.xlu0 %15 }
  0x94   :  { %v18_v7 = vmul.f32 0.002915452, %v16_v6 }
  0x96   :  { %v19_v8 = vsub.f32 %v8_v0, %v18_v7  ;;  %v20_v9 = vsub.f32 %v9_v1, %v18_v7  ;;  %v21_v10 = vsub.f32 %v10_v2, %v18_v7 }
  0x98   :  { %v22_v11 = vmul.f32 %v19_v8, %v19_v8  ;;  %v23_v12 = vmul.f32 %v20_v9, %v20_v9  ;;  %v24_v13 = vmul.f32 %v21_v10, %v21_v10 }
  0x9a   :  { %v25_v14 = vadd.f32 %v23_v12, %v22_v11  ;;  %v26_v15 = vsel %vm12_vm0, %v24_v13, 0.0 }
  0x9c   :  { %v27_v16 = vadd.f32 %v26_v15, %v25_v14 }
  0x9e   :  { %28 = vadd.xlane.f32.xlu0 %v27_v16 }
 0x12b   :  { %v29_v17 = vpop.xlane.xlu0 %28 }
 0x12c   :  { %v30_v18 = vmul.f32 0.002915452, %v29_v17 }
 0x12e   :  { %v31_v19 = vadd.f32 1e-05, %v30_v18 }
 0x130   :  { %52 = vrsqrt.f32 %v31_v19 }
 0x13a   :  { %v53_v20 = vpop.eup %52 }
 0x13b   :  { %v33_v21 = vmul.f32 %v53_v20, %v19_v8  ;;  %v34_v22 = vmul.f32 %v53_v20, %v20_v9  ;;  %v35_v23 = vmul.f32 %v53_v20, %v21_v10 }
 0x13d   :  { %vm36_vm1 = vcmp.ge.f32.partialorder %v33_v21, 0.0  ;;  %vm37_vm2 = vcmp.ge.f32.partialorder %v34_v22, 0.0  ;;  %vm38_vm3 = vcmp.ge.f32.partialorder %v35_v23, 0.0  ;;  %v39_v24 = vmul.f32 0.01, %v33_v21 }
 0x13e   :  { %v40_v25 = vmul.f32 0.01, %v34_v22  ;;  %v41_v26 = vmul.f32 0.01, %v35_v23 }
 0x13f   :  { %v42_v27 = vsel %vm36_vm1, %v33_v21, %v39_v24 }
 0x140   :  { %v43_v28 = vsel %vm37_vm2, %v34_v22, %v40_v25  ;;  %v44_v29 = vsel %vm38_vm3, %v35_v23, %v41_v26  ;;  %45 = vst [vmem:[%s86_s1] sm:$0xff] %v42_v27 }
 0x141   :  { %46 = vst [vmem:[%s86_s1 + $0x8] sm:$0xff] %v43_v28  ;;  %47 = vst.msk [vmem:[%s86_s1 + $0x10] sm:$0xff] %vm12_vm0, %v44_v29 }

// kernel: vnet_forward.30
= control target key start
LH: loop header
LB: loop body
LE: loop exit
PB: predicated region body
PF: predicated region fallthrough
CT: control target
= control target key end

     0   :  { %v334_v2 = vmov 0.0|0.0   ;;  %v335_v4 = vmov 0.0   ;;  %vm336_vm0 = vmmov 0   ;;  %v337_v9 = vmov 0   ;;  %s507_s1 = inlined_call_operand.vmem [shape: f32[108,384], index: 1, kind: input, shape index: {}]   ;;  %s508_s2 = inlined_call_operand.vmem [shape: f32[8,1], index: 2, kind: input, shape index: {}]   ;;  %s509_s0 = inlined_call_operand.vmem [shape: f32[8,108], index: 0, kind: input, shape index: {}]   ;;  %s510_s3 = inlined_call_operand.vmem [shape: f32[8,384], index: 3, kind: output, shape index: {}]  }
   0x1   :  { %v16_v0 = vld [vmem:[%s507_s1 + $0x8] sm:$0xff]  ;;  %v19_v1 = vld [vmem:[%s507_s1 + $0x20] sm:$0xff]  ;;  %306 = vmatprep.subr.bf16.mxu1 %v334_v2  ;;  %141 = vmatprep.mubr.f32.mxu0 %v335_v4  ;;  %v18_v6 = vld [vmem:[%s507_s1 + $0x18] sm:$0xff]  ;;  %vm67_vm1 = vcmask 1043456   ;;  %vm338_vm2 = vmmov 1   ;;  %vm63_vm4 = vcmask 883712  }
   0x2   :  { %v15_v3 = vld [vmem:[%s507_s1] sm:$0xff]  ;;  %v276_v5 = vpack.c.bf16 %v19_v1, %v16_v0  ;;  %v17_v7 = vld [vmem:[%s507_s1 + $0x10] sm:$0xff]  ;;  %v20_v8 = vld [vmem:[%s507_s1 + $0x28] sm:$0xff]  ;;  %273 = vmatprep.mubr.msk.f32.mxu1 %vm336_vm0, %v335_v4  ;;  %333 = vset.pattern.permute.xlu0 %v337_v9 }
   0x3   :  { %v278_v10 = vpack.c.bf16 %v18_v6, %v15_v3  ;;  %v307_v11 = vpack.c.bf16 %v20_v8, %v17_v7  ;;  %v22_v12 = vld [vmem:[%s507_s1 + $0x38] sm:$0xff]  ;;  %v25_v13 = vld [vmem:[%s507_s1 + $0x50] sm:$0xff]  ;;  %v24_v16 = vld [vmem:[%s507_s1 + $0x48] sm:$0xff] }
   0x4   :  { %v21_v14 = vld [vmem:[%s507_s1 + $0x30] sm:$0xff]  ;;  %277 = vmatprep.subr.bf16.mxu0 %v276_v5  ;;  %v280_v15 = vpack.c.bf16 %v25_v13, %v22_v12  ;;  %v23_v17 = vld [vmem:[%s507_s1 + $0x40] sm:$0xff]  ;;  %v26_v18 = vld [vmem:[%s507_s1 + $0x58] sm:$0xff] }
   0x5   :  { %279 = vmatpush1.bf16.msra.mxu0 %v278_v10  ;;  %308 = vmatpush3.bf16.msra.mxu1 %v307_v11  ;;  %v282_v19 = vpack.c.bf16 %v24_v16, %v21_v14  ;;  %v310_v20 = vpack.c.bf16 %v26_v18, %v23_v17  ;;  %v28_v21 = vld [vmem:[%s507_s1 + $0x68] sm:$0xff]  ;;  %v31_v22 = vld [vmem:[%s507_s1 + $0x80] sm:$0xff]  ;;  %v30_v25 = vld [vmem:[%s507_s1 + $0x78] sm:$0xff] }
   0x6   :  { %v27_v23 = vld [vmem:[%s507_s1 + $0x60] sm:$0xff]  ;;  %281 = vmatprep.subr.bf16.mxu0 %v280_v15  ;;  %309 = vmatprep.subr.bf16.mxu1 %v334_v2  ;;  %v284_v24 = vpack.c.bf16 %v31_v22, %v28_v21  ;;  %v29_v26 = vld [vmem:[%s507_s1 + $0x70] sm:$0xff]  ;;  %v32_v27 = vld [vmem:[%s507_s1 + $0x88] sm:$0xff] }
   0x7   :  { %v34_v28 = vld [vmem:[%s507_s1 + $0x98] sm:$0xff]  ;;  %v37_v29 = vld [vmem:[%s507_s1 + $0xb0] sm:$0xff]  ;;  %v286_v30 = vpack.c.bf16 %v30_v25, %v27_v23  ;;  %v313_v31 = vpack.c.bf16 %v32_v27, %v29_v26  ;;  %v36_v34 = vld [vmem:[%s507_s1 + $0xa8] sm:$0xff] }
   0x8   :  { %v33_v32 = vld [vmem:[%s507_s1 + $0x90] sm:$0xff]  ;;  %v288_v33 = vpack.c.bf16 %v37_v29, %v34_v28  ;;  %v35_v35 = vld [vmem:[%s507_s1 + $0xa0] sm:$0xff]  ;;  %v38_v36 = vld [vmem:[%s507_s1 + $0xb8] sm:$0xff] }
   0x9   :  { %283 = vmatpush1.bf16.msra.mxu0 %v282_v19  ;;  %311 = vmatpush3.bf16.msra.mxu1 %v310_v20  ;;  %v40_v37 = vld [vmem:[%s507_s1 + $0xc8] sm:$0xff]  ;;  %v43_v38 = vld [vmem:[%s507_s1 + $0xe0] sm:$0xff]  ;;  %v290_v39 = vpack.c.bf16 %v36_v34, %v33_v32  ;;  %v316_v40 = vpack.c.bf16 %v38_v36, %v35_v35  ;;  %v42_v43 = vld [vmem:[%s507_s1 + $0xd8] sm:$0xff] }
   0xa   :  { %285 = vmatprep.subr.bf16.mxu0 %v284_v24  ;;  %312 = vmatprep.subr.bf16.mxu1 %v334_v2  ;;  %v39_v41 = vld [vmem:[%s507_s1 + $0xc0] sm:$0xff]  ;;  %v292_v42 = vpack.c.bf16 %v43_v38, %v40_v37  ;;  %v41_v44 = vld [vmem:[%s507_s1 + $0xd0] sm:$0xff]  ;;  %v44_v45 = vld [vmem:[%s507_s1 + $0xe8] sm:$0xff] }
   0xb   :  { %v46_v46 = vld [vmem:[%s507_s1 + $0xf8] sm:$0xff]  ;;  %v49_v47 = vld [vmem:[%s507_s1 + $0x110] sm:$0xff]  ;;  %v57_v48 = vld [vmem:[%s508_s2] sm:$0xff]  ;;  %v294_v49 = vpack.c.bf16 %v42_v43, %v39_v41  ;;  %v319_v50 = vpack.c.bf16 %v44_v45, %v41_v44 }
   0xc   :  { %60 = vperm.xlu0 %333, %v57_v48   ;;  %v45_v51 = vld [vmem:[%s507_s1 + $0xf0] sm:$0xff]  ;;  %v296_v52 = vpack.c.bf16 %v49_v47, %v46_v46  ;;  %v48_v53 = vld [vmem:[%s507_s1 + $0x108] sm:$0xff]  ;;  %v47_v54 = vld [vmem:[%s507_s1 + $0x100] sm:$0xff] }
   0xd   :  { %287 = vmatpush1.bf16.msra.mxu0 %v286_v30  ;;  %314 = vmatpush3.bf16.msra.mxu1 %v313_v31  ;;  %v50_v55 = vld [vmem:[%s507_s1 + $0x118] sm:$0xff]  ;;  %v52_v56 = vld [vmem:[%s507_s1 + $0x128] sm:$0xff]  ;;  %v55_v57 = vld [vmem:[%s507_s1 + $0x140] sm:$0xf]  ;;  %v298_v58 = vpack.c.bf16 %v48_v53, %v45_v51 }
   0xe   :  { %289 = vmatprep.subr.bf16.mxu0 %v288_v33  ;;  %315 = vmatprep.subr.bf16.mxu1 %v334_v2  ;;  %v322_v59 = vpack.c.bf16 %v50_v55, %v47_v54  ;;  %v51_v60 = vld [vmem:[%s507_s1 + $0x120] sm:$0xff]  ;;  %v300_v61 = vpack.c.bf16 %v55_v57, %v52_v56  ;;  %v54_v62 = vld [vmem:[%s507_s1 + $0x138] sm:$0xf]  ;;  %v53_v63 = vld [vmem:[%s507_s1 + $0x130] sm:$0xff] }
   0xf   :  { %v56_v0 = vld [vmem:[%s507_s1 + $0x148] sm:$0xf]  ;;  %vm301_vm3 = vmpackc.low %vm67_vm1, %vm338_vm2  ;;  %v303_v1 = vpack.c.bf16 %v54_v62, %v51_v60  ;;  %v14_v4 = vld [vmem:[%s509_s0] sm:$0xff] }
  0x10   :  { %v325_v3 = vpack.c.bf16 %v56_v0, %v53_v63 }
  0x11   :  { %291 = vmatpush1.bf16.msra.mxu0 %v290_v39  ;;  %317 = vmatpush3.bf16.msra.mxu1 %v316_v40 }
  0x12   :  { %293 = vmatprep.subr.bf16.mxu0 %v292_v42  ;;  %318 = vmatprep.subr.bf16.mxu1 %v334_v2 }
  0x15   :  { %295 = vmatpush1.bf16.msra.mxu0 %v294_v49  ;;  %320 = vmatpush3.bf16.msra.mxu1 %v319_v50 }
  0x16   :  { %297 = vmatprep.subr.bf16.mxu0 %v296_v52  ;;  %321 = vmatprep.subr.bf16.mxu1 %v334_v2 }
  0x19   :  { %299 = vmatpush1.bf16.msra.mxu0 %v298_v58  ;;  %323 = vmatpush3.bf16.msra.mxu1 %v322_v59 }
  0x1a   :  { %302 = vmatprep.subr.msk.bf16.mxu0 %vm301_vm3, %v300_v61  ;;  %324 = vmatprep.subr.bf16.mxu1 %v334_v2 }
  0x1d   :  { %305 = vmatpush1.bf16.msk.msra.mxu0 %vm301_vm3, %v303_v1  ;;  %327 = vmatpush3.bf16.msk.msra.mxu1 %vm301_vm3, %v325_v3 }
  0x20   :  { %227 = vmatmul.mubr.msk.f32.vlgmr.msra.gmra.mrb[0].mxu0 %vm63_vm4, %v14_v4  ;;  %274 = vmatmul.mubr.msk.f32.vlgmr.msra.gmra.mrb[0].mxu1 %vm63_vm4, %v14_v4 }
  0x8b   :  { %v61_v5 = vpop.permute.xlu0 %60 }
  0xf3   :  { %v143_v6 = vpop.f32.mrb[0].mxu0  ;;  %v214_v7 = vpop.f32.mrb[0].mxu1 }
  0xf4   :  { %v144_v8 = vadd.f32 %v143_v6, %v61_v5  ;;  %v215_v9 = vadd.f32 %v214_v7, %v61_v5  ;;  %v145_v10 = vpop.f32.mrb[1].mxu0  ;;  %v275_v11 = vpop.f32.mrb[1].mxu1 }
  0xf5   :  { %v146_v12 = vadd.f32 %v145_v10, %v61_v5 }
  0xf6   :  { %218 = vst [vmem:[%s510_s3] sm:$0xff] %v144_v8  ;;  %220 = vst [vmem:[%s510_s3 + $0x10] sm:$0xff] %v215_v9 }
  0xf7   :  { %219 = vst [vmem:[%s510_s3 + $0x8] sm:$0xff] %v146_v12 }

// kernel: vnet_forward.32
= control target key start
LH: loop header
LB: loop body
LE: loop exit
PB: predicated region body
PF: predicated region fallthrough
CT: control target
= control target key end

     0   :  { %v352_v2 = vmov 0.0|0.0   ;;  %v353_v4 = vmov 0   ;;  %vm103_vm0 = vcmask 719872   ;;  %s649_s1 = inlined_call_operand.vmem [shape: f32[216,384], index: 1, kind: input, shape index: {}]   ;;  %s650_s0 = inlined_call_operand.vmem [shape: f32[8,216], index: 0, kind: input, shape index: {}]   ;;  %s651_s2 = inlined_call_operand.vmem [shape: f32[8,1], index: 2, kind: input, shape index: {}]   ;;  %s652_s3 = inlined_call_operand.vmem [shape: f32[8,384], index: 3, kind: output, shape index: {}]  }
   0x1   :  { %v17_v0 = vld [vmem:[%s649_s1 + $0x8] sm:$0xff]  ;;  %v20_v1 = vld [vmem:[%s649_s1 + $0x20] sm:$0xff]  ;;  %309 = vmatprep.subr.bf16.mxu1 %v352_v2  ;;  %351 = vset.pattern.permute.xlu0 %v353_v4  ;;  %v19_v6 = vld [vmem:[%s649_s1 + $0x18] sm:$0xff] }
   0x2   :  { %v16_v3 = vld [vmem:[%s649_s1] sm:$0xff]  ;;  %v257_v5 = vpack.c.bf16 %v20_v1, %v17_v0  ;;  %v18_v7 = vld [vmem:[%s649_s1 + $0x10] sm:$0xff]  ;;  %v21_v8 = vld [vmem:[%s649_s1 + $0x28] sm:$0xff] }
   0x3   :  { %v259_v9 = vpack.c.bf16 %v19_v6, %v16_v3  ;;  %v310_v10 = vpack.c.bf16 %v21_v8, %v18_v7  ;;  %v23_v11 = vld [vmem:[%s649_s1 + $0x38] sm:$0xff]  ;;  %v26_v12 = vld [vmem:[%s649_s1 + $0x50] sm:$0xff]  ;;  %v25_v15 = vld [vmem:[%s649_s1 + $0x48] sm:$0xff] }
   0x4   :  { %v22_v13 = vld [vmem:[%s649_s1 + $0x30] sm:$0xff]  ;;  %258 = vmatprep.subr.bf16.mxu0 %v257_v5  ;;  %v261_v14 = vpack.c.bf16 %v26_v12, %v23_v11  ;;  %v24_v16 = vld [vmem:[%s649_s1 + $0x40] sm:$0xff]  ;;  %v27_v17 = vld [vmem:[%s649_s1 + $0x58] sm:$0xff] }
   0x5   :  { %260 = vmatpush1.bf16.msra.mxu0 %v259_v9  ;;  %311 = vmatpush1.bf16.msra.mxu1 %v310_v10  ;;  %v263_v18 = vpack.c.bf16 %v25_v15, %v22_v13  ;;  %v313_v19 = vpack.c.bf16 %v27_v17, %v24_v16  ;;  %v29_v20 = vld [vmem:[%s649_s1 + $0x68] sm:$0xff]  ;;  %v32_v21 = vld [vmem:[%s649_s1 + $0x80] sm:$0xff]  ;;  %v31_v24 = vld [vmem:[%s649_s1 + $0x78] sm:$0xff] }
   0x6   :  { %v28_v22 = vld [vmem:[%s649_s1 + $0x60] sm:$0xff]  ;;  %262 = vmatprep.subr.bf16.mxu0 %v261_v14  ;;  %312 = vmatprep.subr.bf16.mxu1 %v352_v2  ;;  %v265_v23 = vpack.c.bf16 %v32_v21, %v29_v20  ;;  %v30_v25 = vld [vmem:[%s649_s1 + $0x70] sm:$0xff]  ;;  %v33_v26 = vld [vmem:[%s649_s1 + $0x88] sm:$0xff] }
   0x7   :  { %v35_v27 = vld [vmem:[%s649_s1 + $0x98] sm:$0xff]  ;;  %v38_v28 = vld [vmem:[%s649_s1 + $0xb0] sm:$0xff]  ;;  %v267_v29 = vpack.c.bf16 %v31_v24, %v28_v22  ;;  %v316_v30 = vpack.c.bf16 %v33_v26, %v30_v25  ;;  %v37_v33 = vld [vmem:[%s649_s1 + $0xa8] sm:$0xff] }
   0x8   :  { %v34_v31 = vld [vmem:[%s649_s1 + $0x90] sm:$0xff]  ;;  %v269_v32 = vpack.c.bf16 %v38_v28, %v35_v27  ;;  %v36_v34 = vld [vmem:[%s649_s1 + $0xa0] sm:$0xff]  ;;  %v39_v35 = vld [vmem:[%s649_s1 + $0xb8] sm:$0xff] }
   0x9   :  { %264 = vmatpush1.bf16.msra.mxu0 %v263_v18  ;;  %314 = vmatpush1.bf16.msra.mxu1 %v313_v19  ;;  %v41_v36 = vld [vmem:[%s649_s1 + $0xc8] sm:$0xff]  ;;  %v44_v37 = vld [vmem:[%s649_s1 + $0xe0] sm:$0xff]  ;;  %v271_v38 = vpack.c.bf16 %v37_v33, %v34_v31  ;;  %v319_v39 = vpack.c.bf16 %v39_v35, %v36_v34  ;;  %v43_v42 = vld [vmem:[%s649_s1 + $0xd8] sm:$0xff] }
   0xa   :  { %266 = vmatprep.subr.bf16.mxu0 %v265_v23  ;;  %315 = vmatprep.subr.bf16.mxu1 %v352_v2  ;;  %v40_v40 = vld [vmem:[%s649_s1 + $0xc0] sm:$0xff]  ;;  %v273_v41 = vpack.c.bf16 %v44_v37, %v41_v36  ;;  %v42_v43 = vld [vmem:[%s649_s1 + $0xd0] sm:$0xff]  ;;  %v45_v44 = vld [vmem:[%s649_s1 + $0xe8] sm:$0xff] }
   0xb   :  { %v47_v45 = vld [vmem:[%s649_s1 + $0xf8] sm:$0xff]  ;;  %v50_v46 = vld [vmem:[%s649_s1 + $0x110] sm:$0xff]  ;;  %v275_v47 = vpack.c.bf16 %v43_v42, %v40_v40  ;;  %v322_v48 = vpack.c.bf16 %v45_v44, %v42_v43  ;;  %v49_v51 = vld [vmem:[%s649_s1 + $0x108] sm:$0xff] }
   0xc   :  { %v46_v49 = vld [vmem:[%s649_s1 + $0xf0] sm:$0xff]  ;;  %v277_v50 = vpack.c.bf16 %v50_v46, %v47_v45  ;;  %v48_v52 = vld [vmem:[%s649_s1 + $0x100] sm:$0xff]  ;;  %v51_v53 = vld [vmem:[%s649_s1 + $0x118] sm:$0xff] }
   0xd   :  { %268 = vmatpush1.bf16.msra.mxu0 %v267_v29  ;;  %317 = vmatpush1.bf16.msra.mxu1 %v316_v30  ;;  %v53_v54 = vld [vmem:[%s649_s1 + $0x128] sm:$0xff]  ;;  %v56_v55 = vld [vmem:[%s649_s1 + $0x140] sm:$0xff]  ;;  %v279_v56 = vpack.c.bf16 %v49_v51, %v46_v49  ;;  %v325_v57 = vpack.c.bf16 %v51_v53, %v48_v52  ;;  %v55_v60 = vld [vmem:[%s649_s1 + $0x138] sm:$0xff] }
   0xe   :  { %270 = vmatprep.subr.bf16.mxu0 %v269_v32  ;;  %318 = vmatprep.subr.bf16.mxu1 %v352_v2  ;;  %v52_v58 = vld [vmem:[%s649_s1 + $0x120] sm:$0xff]  ;;  %v281_v59 = vpack.c.bf16 %v56_v55, %v53_v54  ;;  %v54_v61 = vld [vmem:[%s649_s1 + $0x130] sm:$0xff]  ;;  %v57_v62 = vld [vmem:[%s649_s1 + $0x148] sm:$0xff] }
   0xf   :  { %v59_v63 = vld [vmem:[%s649_s1 + $0x158] sm:$0xff]  ;;  %v62_v0 = vld [vmem:[%s649_s1 + $0x170] sm:$0xff]  ;;  %v283_v1 = vpack.c.bf16 %v55_v60, %v52_v58  ;;  %v328_v3 = vpack.c.bf16 %v57_v62, %v54_v61  ;;  %v61_v6 = vld [vmem:[%s649_s1 + $0x168] sm:$0xff] }
  0x10   :  { %v58_v4 = vld [vmem:[%s649_s1 + $0x150] sm:$0xff]  ;;  %v285_v5 = vpack.c.bf16 %v62_v0, %v59_v63  ;;  %v60_v7 = vld [vmem:[%s649_s1 + $0x160] sm:$0xff]  ;;  %v63_v8 = vld [vmem:[%s649_s1 + $0x178] sm:$0xff] }
  0x11   :  { %272 = vmatpush1.bf16.msra.mxu0 %v271_v38  ;;  %320 = vmatpush1.bf16.msra.mxu1 %v319_v39  ;;  %v65_v9 = vld [vmem:[%s649_s1 + $0x188] sm:$0xff]  ;;  %v68_v10 = vld [vmem:[%s649_s1 + $0x1a0] sm:$0xff]  ;;  %v287_v13 = vpack.c.bf16 %v61_v6, %v58_v4  ;;  %v331_v14 = vpack.c.bf16 %v63_v8, %v60_v7  ;;  %v67_v17 = vld [vmem:[%s649_s1 + $0x198] sm:$0xff] }
  0x12   :  { %274 = vmatprep.subr.bf16.mxu0 %v273_v41  ;;  %321 = vmatprep.subr.bf16.mxu1 %v352_v2  ;;  %v15_v11 = vld [vmem:[%s650_s0 + $0x8] sm:$0xff]  ;;  %v97_v12 = vld [vmem:[%s651_s2] sm:$0xff]  ;;  %v289_v16 = vpack.c.bf16 %v68_v10, %v65_v9  ;;  %v66_v18 = vld [vmem:[%s649_s1 + $0x190] sm:$0xff] }
  0x13   :  { %255 = vmatprep.mubr.msk.f32.mxu0 %vm103_vm0, %v15_v11  ;;  %256 = vmatprep.mubr.msk.f32.mxu1 %vm103_vm0, %v15_v11  ;;  %v64_v15 = vld [vmem:[%s649_s1 + $0x180] sm:$0xff]  ;;  %v69_v19 = vld [vmem:[%s649_s1 + $0x1a8] sm:$0xff]  ;;  %v71_v20 = vld [vmem:[%s649_s1 + $0x1b8] sm:$0xff] }
  0x14   :  { %v74_v21 = vld [vmem:[%s649_s1 + $0x1d0] sm:$0xff]  ;;  %100 = vperm.xlu0 %351, %v97_v12   ;;  %v291_v22 = vpack.c.bf16 %v67_v17, %v64_v15  ;;  %v334_v23 = vpack.c.bf16 %v69_v19, %v66_v18  ;;  %v73_v26 = vld [vmem:[%s649_s1 + $0x1c8] sm:$0xff]  ;;  %v72_v27 = vld [vmem:[%s649_s1 + $0x1c0] sm:$0xff] }
  0x15   :  { %276 = vmatpush1.bf16.msra.mxu0 %v275_v47  ;;  %323 = vmatpush1.bf16.msra.mxu1 %v322_v48  ;;  %v70_v24 = vld [vmem:[%s649_s1 + $0x1b0] sm:$0xff]  ;;  %v293_v25 = vpack.c.bf16 %v74_v21, %v71_v20  ;;  %v75_v28 = vld [vmem:[%s649_s1 + $0x1d8] sm:$0xff]  ;;  %v77_v29 = vld [vmem:[%s649_s1 + $0x1e8] sm:$0xff] }
  0x16   :  { %278 = vmatprep.subr.bf16.mxu0 %v277_v50  ;;  %324 = vmatprep.subr.bf16.mxu1 %v352_v2  ;;  %v80_v30 = vld [vmem:[%s649_s1 + $0x200] sm:$0xff]  ;;  %v295_v31 = vpack.c.bf16 %v73_v26, %v70_v24  ;;  %v337_v32 = vpack.c.bf16 %v75_v28, %v72_v27  ;;  %v79_v35 = vld [vmem:[%s649_s1 + $0x1f8] sm:$0xff]  ;;  %v78_v36 = vld [vmem:[%s649_s1 + $0x1f0] sm:$0xff] }
  0x17   :  { %v76_v33 = vld [vmem:[%s649_s1 + $0x1e0] sm:$0xff]  ;;  %v297_v34 = vpack.c.bf16 %v80_v30, %v77_v29  ;;  %v81_v37 = vld [vmem:[%s649_s1 + $0x208] sm:$0xff]  ;;  %v83_v38 = vld [vmem:[%s649_s1 + $0x218] sm:$0xff] }
  0x18   :  { %v86_v39 = vld [vmem:[%s649_s1 + $0x230] sm:$0xff]  ;;  %v299_v40 = vpack.c.bf16 %v79_v35, %v76_v33  ;;  %v340_v41 = vpack.c.bf16 %v81_v37, %v78_v36  ;;  %v85_v44 = vld [vmem:[%s649_s1 + $0x228] sm:$0xff]  ;;  %v84_v45 = vld [vmem:[%s649_s1 + $0x220] sm:$0xff] }
  0x19   :  { %280 = vmatpush1.bf16.msra.mxu0 %v279_v56  ;;  %326 = vmatpush1.bf16.msra.mxu1 %v325_v57  ;;  %v82_v42 = vld [vmem:[%s649_s1 + $0x210] sm:$0xff]  ;;  %v301_v43 = vpack.c.bf16 %v86_v39, %v83_v38  ;;  %v87_v46 = vld [vmem:[%s649_s1 + $0x238] sm:$0xff]  ;;  %v89_v47 = vld [vmem:[%s649_s1 + $0x248] sm:$0xff] }
  0x1a   :  { %282 = vmatprep.subr.bf16.mxu0 %v281_v59  ;;  %327 = vmatprep.subr.bf16.mxu1 %v352_v2  ;;  %v92_v48 = vld [vmem:[%s649_s1 + $0x260] sm:$0xff]  ;;  %v303_v49 = vpack.c.bf16 %v85_v44, %v82_v42  ;;  %v343_v50 = vpack.c.bf16 %v87_v46, %v84_v45  ;;  %v91_v53 = vld [vmem:[%s649_s1 + $0x258] sm:$0xff]  ;;  %v90_v54 = vld [vmem:[%s649_s1 + $0x250] sm:$0xff]  ;;  %v354_v59 = vmov 0.0  }
  0x1b   :  { %v88_v51 = vld [vmem:[%s649_s1 + $0x240] sm:$0xff]  ;;  %v305_v52 = vpack.c.bf16 %v92_v48, %v89_v47  ;;  %v93_v55 = vld [vmem:[%s649_s1 + $0x268] sm:$0xff]  ;;  %v95_v58 = vld [vmem:[%s649_s1 + $0x278] sm:$0xff] }
  0x1c   :  { %v307_v56 = vpack.c.bf16 %v91_v53, %v88_v51  ;;  %v346_v57 = vpack.c.bf16 %v93_v55, %v90_v54  ;;  %v94_v60 = vld [vmem:[%s649_s1 + $0x270] sm:$0xff]  ;;  %v96_v61 = vld [vmem:[%s649_s1 + $0x280] sm:$0xff] }
  0x1d   :  { %284 = vmatpush1.bf16.msra.mxu0 %v283_v1  ;;  %329 = vmatpush1.bf16.msra.mxu1 %v328_v3 }
  0x1e   :  { %286 = vmatprep.subr.bf16.mxu0 %v285_v5  ;;  %330 = vmatprep.subr.bf16.mxu1 %v352_v2 }
  0x21   :  { %288 = vmatpush1.bf16.msra.mxu0 %v287_v13  ;;  %332 = vmatpush1.bf16.msra.mxu1 %v331_v14 }
  0x22   :  { %290 = vmatprep.subr.bf16.mxu0 %v289_v16  ;;  %333 = vmatprep.subr.bf16.mxu1 %v352_v2 }
  0x25   :  { %292 = vmatpush1.bf16.msra.mxu0 %v291_v22  ;;  %335 = vmatpush1.bf16.msra.mxu1 %v334_v23 }
  0x26   :  { %294 = vmatprep.subr.bf16.mxu0 %v293_v25  ;;  %336 = vmatprep.subr.bf16.mxu1 %v352_v2 }
  0x29   :  { %296 = vmatpush1.bf16.msra.mxu0 %v295_v31  ;;  %338 = vmatpush1.bf16.msra.mxu1 %v337_v32 }
  0x2a   :  { %298 = vmatprep.subr.bf16.mxu0 %v297_v34  ;;  %339 = vmatprep.subr.bf16.mxu1 %v352_v2 }
  0x2d   :  { %300 = vmatpush1.bf16.msra.mxu0 %v299_v40  ;;  %341 = vmatpush1.bf16.msra.mxu1 %v340_v41 }
  0x2e   :  { %302 = vmatprep.subr.bf16.mxu0 %v301_v43  ;;  %342 = vmatprep.subr.bf16.mxu1 %v352_v2 }
  0x31   :  { %304 = vmatpush1.bf16.msra.mxu0 %v303_v49  ;;  %344 = vmatpush1.bf16.msra.mxu1 %v343_v50 }
  0x32   :  { %306 = vmatprep.subr.bf16.mxu0 %v305_v52  ;;  %345 = vmatprep.subr.bf16.mxu1 %v352_v2  ;;  %v14_v2 = vld [vmem:[%s650_s0] sm:$0xff] }
  0x35   :  { %308 = vmatpush1.bf16.msra.mxu0 %v307_v56  ;;  %347 = vmatpush1.bf16.msra.mxu1 %v346_v57 }
  0x36   :  { %159 = vmatprep.subr.mxu0 %v95_v58  ;;  %230 = vmatprep.subr.mxu1 %v354_v59 }
  0x39   :  { %160 = vmatpush1.msra.mxu0 %v94_v60  ;;  %231 = vmatpush1.msra.mxu1 %v96_v61 }
  0x3a   :  { %172 = vmatmul.mubr.f32.vlgmr.msra.gmra.mrb[0].mxu0 %v14_v2  ;;  %243 = vmatmul.mubr.f32.vlgmr.msra.gmra.mrb[0].mxu1 %v14_v2 }
  0x93   :  { %v101_v62 = vpop.permute.xlu0 %100 }
 0x10d   :  { %v173_v63 = vpop.f32.mrb[0].mxu0  ;;  %v244_v0 = vpop.f32.mrb[0].mxu1 }
 0x10e   :  { %v174_v1 = vadd.f32 %v173_v63, %v101_v62  ;;  %v245_v3 = vadd.f32 %v244_v0, %v101_v62  ;;  %v175_v4 = vpop.f32.mrb[1].mxu0  ;;  %v246_v5 = vpop.f32.mrb[1].mxu1 }
 0x10f   :  { %v176_v6 = vadd.f32 %v175_v4, %v101_v62 }
 0x110   :  { %248 = vst [vmem:[%s652_s3] sm:$0xff] %v174_v1  ;;  %250 = vst [vmem:[%s652_s3 + $0x10] sm:$0xff] %v245_v3 }
 0x111   :  { %249 = vst [vmem:[%s652_s3 + $0x8] sm:$0xff] %v176_v6 }

// kernel: vnet_forward.34
= control target key start
LH: loop header
LB: loop body
LE: loop exit
PB: predicated region body
PF: predicated region fallthrough
CT: control target
= control target key end

     0   :  { %v369_v3 = vmov 0   ;;  %s600_s1 = inlined_call_operand.vmem [shape: f32[512,128], index: 1, kind: input, shape index: {}]   ;;  %s601_s0 = inlined_call_operand.vmem [shape: f32[8,512], index: 0, kind: input, shape index: {}]   ;;  %s602_s2 = inlined_call_operand.vmem [shape: f32[8,1], index: 2, kind: input, shape index: {}]   ;;  %s603_s3 = inlined_call_operand.vmem [shape: f32[8,128], index: 3, kind: output, shape index: {}]  }
   0x1   :  { %v34_v0 = vld [vmem:[%s600_s1 + $0x80] sm:$0xff]  ;;  %v35_v1 = vld [vmem:[%s600_s1 + $0x88] sm:$0xff]  ;;  %368 = vset.pattern.permute.xlu0 %v369_v3  ;;  %v36_v12 = vld [vmem:[%s600_s1 + $0x90] sm:$0xff] }
   0x2   :  { %v18_v2 = vld [vmem:[%s600_s1] sm:$0xff]  ;;  %v303_v4 = vpack.c.bf16 %v35_v1, %v34_v0  ;;  %v19_v5 = vld [vmem:[%s600_s1 + $0x8] sm:$0xff]  ;;  %v37_v14 = vld [vmem:[%s600_s1 + $0x98] sm:$0xff] }
   0x3   :  { %v66_v6 = vld [vmem:[%s600_s1 + $0x180] sm:$0xff]  ;;  %v67_v7 = vld [vmem:[%s600_s1 + $0x188] sm:$0xff]  ;;  %v305_v8 = vpack.c.bf16 %v19_v5, %v18_v2  ;;  %v20_v15 = vld [vmem:[%s600_s1 + $0x10] sm:$0xff]  ;;  %v307_v17 = vpack.c.bf16 %v37_v14, %v36_v12 }
   0x4   :  { %v335_v9 = vpack.c.bf16 %v67_v7, %v66_v6  ;;  %v50_v10 = vld [vmem:[%s600_s1 + $0x100] sm:$0xff]  ;;  %v51_v11 = vld [vmem:[%s600_s1 + $0x108] sm:$0xff]  ;;  %304 = vmatprep.subr.bf16.mxu0 %v303_v4  ;;  %v21_v16 = vld [vmem:[%s600_s1 + $0x18] sm:$0xff] }
   0x5   :  { %v337_v13 = vpack.c.bf16 %v51_v11, %v50_v10  ;;  %306 = vmatpush3.bf16.msra.mxu0 %v305_v8  ;;  %v309_v18 = vpack.c.bf16 %v21_v16, %v20_v15  ;;  %v68_v19 = vld [vmem:[%s600_s1 + $0x190] sm:$0xff]  ;;  %v69_v20 = vld [vmem:[%s600_s1 + $0x198] sm:$0xff]  ;;  %v38_v24 = vld [vmem:[%s600_s1 + $0xa0] sm:$0xff] }
   0x6   :  { %336 = vmatprep.subr.bf16.mxu1 %v335_v9  ;;  %v52_v21 = vld [vmem:[%s600_s1 + $0x110] sm:$0xff]  ;;  %v339_v22 = vpack.c.bf16 %v69_v20, %v68_v19  ;;  %v53_v23 = vld [vmem:[%s600_s1 + $0x118] sm:$0xff]  ;;  %v39_v25 = vld [vmem:[%s600_s1 + $0xa8] sm:$0xff]  ;;  %308 = vmatprep.subr.bf16.mxu0 %v307_v17 }
   0x7   :  { %338 = vmatpush3.bf16.msra.mxu1 %v337_v13  ;;  %v341_v26 = vpack.c.bf16 %v53_v23, %v52_v21  ;;  %v311_v27 = vpack.c.bf16 %v39_v25, %v38_v24  ;;  %v22_v28 = vld [vmem:[%s600_s1 + $0x20] sm:$0xff]  ;;  %v23_v29 = vld [vmem:[%s600_s1 + $0x28] sm:$0xff]  ;;  %v40_v36 = vld [vmem:[%s600_s1 + $0xb0] sm:$0xff] }
   0x8   :  { %v70_v30 = vld [vmem:[%s600_s1 + $0x1a0] sm:$0xff]  ;;  %340 = vmatprep.subr.bf16.mxu1 %v339_v22  ;;  %v71_v31 = vld [vmem:[%s600_s1 + $0x1a8] sm:$0xff]  ;;  %v313_v34 = vpack.c.bf16 %v23_v29, %v22_v28  ;;  %v41_v37 = vld [vmem:[%s600_s1 + $0xb8] sm:$0xff] }
   0x9   :  { %v54_v32 = vld [vmem:[%s600_s1 + $0x120] sm:$0xff]  ;;  %v55_v33 = vld [vmem:[%s600_s1 + $0x128] sm:$0xff]  ;;  %310 = vmatpush3.bf16.msra.mxu0 %v309_v18  ;;  %v343_v35 = vpack.c.bf16 %v71_v31, %v70_v30  ;;  %v24_v38 = vld [vmem:[%s600_s1 + $0x30] sm:$0xff]  ;;  %v315_v40 = vpack.c.bf16 %v41_v37, %v40_v36 }
   0xa   :  { %312 = vmatprep.subr.bf16.mxu0 %v311_v27  ;;  %v345_v39 = vpack.c.bf16 %v55_v33, %v54_v32  ;;  %v25_v41 = vld [vmem:[%s600_s1 + $0x38] sm:$0xff]  ;;  %v72_v42 = vld [vmem:[%s600_s1 + $0x1b0] sm:$0xff]  ;;  %v42_v47 = vld [vmem:[%s600_s1 + $0xc0] sm:$0xff] }
   0xb   :  { %342 = vmatpush3.bf16.msra.mxu1 %v341_v26  ;;  %v73_v43 = vld [vmem:[%s600_s1 + $0x1b8] sm:$0xff]  ;;  %v56_v45 = vld [vmem:[%s600_s1 + $0x130] sm:$0xff]  ;;  %v43_v48 = vld [vmem:[%s600_s1 + $0xc8] sm:$0xff]  ;;  %v317_v49 = vpack.c.bf16 %v25_v41, %v24_v38 }
   0xc   :  { %344 = vmatprep.subr.bf16.mxu1 %v343_v35  ;;  %v347_v44 = vpack.c.bf16 %v73_v43, %v72_v42  ;;  %v57_v46 = vld [vmem:[%s600_s1 + $0x138] sm:$0xff]  ;;  %v74_v50 = vld [vmem:[%s600_s1 + $0x1c0] sm:$0xff]  ;;  %v75_v51 = vld [vmem:[%s600_s1 + $0x1c8] sm:$0xff]  ;;  %v319_v53 = vpack.c.bf16 %v43_v48, %v42_v47 }
   0xd   :  { %314 = vmatpush3.bf16.msra.mxu0 %v313_v34  ;;  %v349_v52 = vpack.c.bf16 %v57_v46, %v56_v45  ;;  %v26_v54 = vld [vmem:[%s600_s1 + $0x40] sm:$0xff]  ;;  %v27_v55 = vld [vmem:[%s600_s1 + $0x48] sm:$0xff]  ;;  %v351_v57 = vpack.c.bf16 %v75_v51, %v74_v50  ;;  %v44_v59 = vld [vmem:[%s600_s1 + $0xd0] sm:$0xff] }
   0xe   :  { %316 = vmatprep.subr.bf16.mxu0 %v315_v40  ;;  %v58_v56 = vld [vmem:[%s600_s1 + $0x140] sm:$0xff]  ;;  %v59_v58 = vld [vmem:[%s600_s1 + $0x148] sm:$0xff]  ;;  %v45_v60 = vld [vmem:[%s600_s1 + $0xd8] sm:$0xff]  ;;  %v321_v63 = vpack.c.bf16 %v27_v55, %v26_v54 }
   0xf   :  { %346 = vmatpush3.bf16.msra.mxu1 %v345_v39  ;;  %v76_v61 = vld [vmem:[%s600_s1 + $0x1d0] sm:$0xff]  ;;  %v77_v62 = vld [vmem:[%s600_s1 + $0x1d8] sm:$0xff]  ;;  %v353_v0 = vpack.c.bf16 %v59_v58, %v58_v56  ;;  %v323_v1 = vpack.c.bf16 %v45_v60, %v44_v59  ;;  %v46_v7 = vld [vmem:[%s600_s1 + $0xe0] sm:$0xff] }
  0x10   :  { %348 = vmatprep.subr.bf16.mxu1 %v347_v44  ;;  %v28_v2 = vld [vmem:[%s600_s1 + $0x50] sm:$0xff]  ;;  %v29_v3 = vld [vmem:[%s600_s1 + $0x58] sm:$0xff]  ;;  %v355_v5 = vpack.c.bf16 %v77_v62, %v76_v61  ;;  %v47_v8 = vld [vmem:[%s600_s1 + $0xe8] sm:$0xff] }
  0x11   :  { %318 = vmatpush3.bf16.msra.mxu0 %v317_v49  ;;  %v60_v4 = vld [vmem:[%s600_s1 + $0x150] sm:$0xff]  ;;  %v61_v6 = vld [vmem:[%s600_s1 + $0x158] sm:$0xff]  ;;  %v78_v9 = vld [vmem:[%s600_s1 + $0x1e0] sm:$0xff]  ;;  %v325_v11 = vpack.c.bf16 %v29_v3, %v28_v2  ;;  %v327_v16 = vpack.c.bf16 %v47_v8, %v46_v7 }
  0x12   :  { %320 = vmatprep.subr.bf16.mxu0 %v319_v53  ;;  %v79_v10 = vld [vmem:[%s600_s1 + $0x1e8] sm:$0xff]  ;;  %v30_v12 = vld [vmem:[%s600_s1 + $0x60] sm:$0xff]  ;;  %v357_v15 = vpack.c.bf16 %v61_v6, %v60_v4  ;;  %v48_v18 = vld [vmem:[%s600_s1 + $0xf0] sm:$0xff] }
  0x13   :  { %350 = vmatpush3.bf16.msra.mxu1 %v349_v52  ;;  %v31_v13 = vld [vmem:[%s600_s1 + $0x68] sm:$0xff]  ;;  %v62_v14 = vld [vmem:[%s600_s1 + $0x160] sm:$0xff]  ;;  %v359_v20 = vpack.c.bf16 %v79_v10, %v78_v9  ;;  %v49_v21 = vld [vmem:[%s600_s1 + $0xf8] sm:$0xff] }
  0x14   :  { %352 = vmatprep.subr.bf16.mxu1 %v351_v57  ;;  %v63_v17 = vld [vmem:[%s600_s1 + $0x168] sm:$0xff]  ;;  %v17_v22 = vld [vmem:[%s601_s0 + $0x18] sm:$0xff]  ;;  %v82_v23 = vld [vmem:[%s602_s2] sm:$0xff]  ;;  %v329_v26 = vpack.c.bf16 %v31_v13, %v30_v12  ;;  %v331_v28 = vpack.c.bf16 %v49_v21, %v48_v18 }
  0x15   :  { %322 = vmatpush3.bf16.msra.mxu0 %v321_v63  ;;  %v15_v19 = vld [vmem:[%s601_s0 + $0x8] sm:$0xff]  ;;  %v80_v24 = vld [vmem:[%s600_s1 + $0x1f0] sm:$0xff]  ;;  %v81_v25 = vld [vmem:[%s600_s1 + $0x1f8] sm:$0xff]  ;;  %222 = vmatprep.mubr.f32.mxu1 %v17_v22  ;;  %v361_v27 = vpack.c.bf16 %v63_v17, %v62_v14 }
  0x16   :  { %324 = vmatprep.subr.bf16.mxu0 %v323_v1  ;;  %152 = vmatprep.mubr.f32.mxu0 %v15_v19  ;;  %v32_v29 = vld [vmem:[%s600_s1 + $0x70] sm:$0xff]  ;;  %v33_v30 = vld [vmem:[%s600_s1 + $0x78] sm:$0xff]  ;;  %v363_v31 = vpack.c.bf16 %v81_v25, %v80_v24  ;;  %v14_v36 = vld [vmem:[%s601_s0] sm:$0xff] }
  0x17   :  { %354 = vmatpush3.bf16.msra.mxu1 %v353_v0  ;;  %85 = vperm.xlu0 %368, %v82_v23   ;;  %v64_v32 = vld [vmem:[%s600_s1 + $0x170] sm:$0xff]  ;;  %v65_v33 = vld [vmem:[%s600_s1 + $0x178] sm:$0xff]  ;;  %v333_v34 = vpack.c.bf16 %v33_v30, %v32_v29 }
  0x18   :  { %356 = vmatprep.subr.bf16.mxu1 %v355_v5  ;;  %v365_v35 = vpack.c.bf16 %v65_v33, %v64_v32  ;;  %v16_v37 = vld [vmem:[%s601_s0 + $0x10] sm:$0xff] }
  0x19   :  { %326 = vmatpush3.bf16.msra.mxu0 %v325_v11 }
  0x1a   :  { %328 = vmatprep.subr.bf16.mxu0 %v327_v16 }
  0x1b   :  { %358 = vmatpush3.bf16.msra.mxu1 %v357_v15 }
  0x1c   :  { %360 = vmatprep.subr.bf16.mxu1 %v359_v20 }
  0x1d   :  { %330 = vmatpush3.bf16.msra.mxu0 %v329_v26 }
  0x1e   :  { %332 = vmatprep.subr.bf16.mxu0 %v331_v28 }
  0x1f   :  { %362 = vmatpush3.bf16.msra.mxu1 %v361_v27 }
  0x20   :  { %364 = vmatprep.subr.bf16.mxu1 %v363_v31 }
  0x21   :  { %334 = vmatpush3.bf16.msra.mxu0 %v333_v34 }
  0x23   :  { %366 = vmatpush3.bf16.msra.mxu1 %v365_v35 }
  0x24   :  { %153 = vmatmul.mubr.f32.vlgmr.msra.gmra.mrb[0].mxu0 %v14_v36 }
  0x26   :  { %223 = vmatmul.mubr.f32.vlgmr.msra.gmra.mrb[0].mxu1 %v16_v37 }
  0x96   :  { %v86_v39 = vpop.permute.xlu0 %85 }
  0xf7   :  { %v265_v38 = vpop.f32.mrb[0].mxu0 }
  0xf8   :  { %v266_v40 = vpop.f32.mrb[1].mxu0 }
  0xf9   :  { %v300_v41 = vpop.f32.mrb[0].mxu1  ;;  %v267_v42 = vadd.f32 %v266_v40, %v265_v38 }
  0xfa   :  { %v301_v43 = vpop.f32.mrb[1].mxu1 }
  0xfb   :  { %v302_v44 = vadd.f32 %v301_v43, %v300_v41  ;;  %v155_v45 = vadd.f32 %v267_v42, %v86_v39 }
  0xfd   :  { %v225_v46 = vadd.f32 %v302_v44, %v155_v45 }
  0xff   :  { %228 = vst [vmem:[%s603_s3] sm:$0xff] %v225_v46 }

// kernel: vnet_forward.36
= control target key start
LH: loop header
LB: loop body
LE: loop exit
PB: predicated region body
PF: predicated region fallthrough
CT: control target
= control target key end

     0   :  { %s222_s6 = smov 0   ;;  %s242_s0 = inlined_call_operand.vmem [shape: f32[16,8], index: 0, kind: input, shape index: {}]   ;;  %s243_s1 = inlined_call_operand.vmem [shape: f32[16,8], index: 1, kind: output, shape index: {}]  }
   0x1 LB: > { %s185_s7 = sadd.s32 4294967295, %s210_s6   ;;  %p189_p0 = scmp.ge.s32.totalorder %s210_s6, 1  ;;  %s210_s6 = sphi %s222_s6, %s11_s6  }
   0x2   : > { %p86_p1 = scmp.lt.s32.totalorder %s210_s6, 3 }
   0x4   : > { %p87_p2 = pnand %p189_p0, %p86_p1 }
   0x5   : > { %p104_p3 = scmp.lt.s32.totalorder (!%p87_p2), %s185_s7, 1  ;;  %vm113_vm0 = vcmask (!%p87_p2), 64512  }
   0x6   : > { %90 = sbr.rel (%p87_p2) target bundleno = 330 (0x14a), region = 24 }
   0xd   : > { %s245_s7 = smov (!%p104_p3, %s185_s7), 1 }
   0xe   : > { %s190_s8 = sshll.u32 %s245_s7, 3 }
   0xf   : > { %s107_s11 = scalar_lea.vmem %s242_s0, %s190_s8  ;;  %s111_s14 = scalar_lea.vmem %s243_s1, %s190_s8 }
  0x10   : > { %v112_v0 = vld [vmem:[%s107_s11] sm:$0xff] }
  0x11   : > { %v114_v1 = vsel %vm113_vm0, %v112_v0, 0.0 }
  0x12   : > { %115 = vadd.xlane.f32.xlu0 %v114_v1 }
  0x9f   : > { %v116_v2 = vpop.xlane.xlu0 %115 }
  0xa0   : > { %v118_v3 = vmul.f32 0.125, %v116_v2 }
  0xa2   : > { %v119_v4 = vsub.f32 %v112_v0, %v118_v3 }
  0xa4   : > { %v120_v5 = vmul.f32 %v119_v4, %v119_v4 }
  0xa6   : > { %v121_v6 = vsel %vm113_vm0, %v120_v5, 0.0 }
  0xa7   : > { %122 = vadd.xlane.f32.xlu0 %v121_v6 }
 0x134   : > { %v123_v7 = vpop.xlane.xlu0 %122 }
 0x135   : > { %v124_v8 = vmul.f32 0.125, %v123_v7 }
 0x137   : > { %v125_v9 = vadd.f32 1e-05, %v124_v8 }
 0x139   : > { %202 = vrsqrt.f32 %v125_v9 }
 0x143   : > { %v203_v10 = vpop.eup %202 }
 0x144   : > { %v127_v11 = vmul.f32 %v203_v10, %v119_v4 }
 0x146   : > { %vm128_vm1 = vcmp.ge.f32.partialorder %v127_v11, 0.0  ;;  %v129_v12 = vmul.f32 0.01, %v127_v11 }
 0x148   : > { %v130_v13 = vsel %vm128_vm1, %v127_v11, %v129_v12 }
 0x149   : > { %131 = vst.msk [vmem:[%s111_s14] sm:$0xff] %vm113_vm0, %v130_v13 }
 0x14a PF: > { %s11_s6 = sadd.s32 1, %s210_s6  }
 0x14b   : > { %p8_p4 = scmp.ge.s32.totalorder %s11_s6, 4  }
 0x14d   :  { %10 = sbr.rel (!%p8_p4) target bundleno = 1 (0x1), region = 54 }

// kernel: vnet_forward.35
= control target key start
LH: loop header
LB: loop body
LE: loop exit
PB: predicated region body
PF: predicated region fallthrough
CT: control target
= control target key end

     0   :  { %v218_v0 = vmov 0.0|0.0   ;;  %v219_v6 = vmov 0   ;;  %vm57_vm0 = vcmask 719872   ;;  %v220_v45 = vmov 0.0   ;;  %s372_s1 = inlined_call_operand.vmem [shape: f32[216,128], index: 1, kind: input, shape index: {}]   ;;  %s373_s0 = inlined_call_operand.vmem [shape: f32[16,216], index: 0, kind: input, shape index: {}]   ;;  %s374_s2 = inlined_call_operand.vmem [shape: f32[16,1], index: 2, kind: input, shape index: {}]   ;;  %s375_s3 = inlined_call_operand.vmem [shape: f32[16,128], index: 3, kind: output, shape index: {}]  }
   0x1   :  { %147 = vmatprep.subr.bf16.mxu0 %v218_v0  ;;  %186 = vmatprep.subr.bf16.mxu1 %v218_v0  ;;  %v18_v1 = vld [vmem:[%s372_s1] sm:$0xff]  ;;  %v19_v2 = vld [vmem:[%s372_s1 + $0x8] sm:$0xff]  ;;  %v20_v3 = vld [vmem:[%s372_s1 + $0x10] sm:$0xff] }
   0x2   :  { %v148_v4 = vpack.c.bf16 %v19_v2, %v18_v1  ;;  %v21_v5 = vld [vmem:[%s372_s1 + $0x18] sm:$0xff]  ;;  %217 = vset.pattern.permute.xlu0 %v219_v6  ;;  %v22_v8 = vld [vmem:[%s372_s1 + $0x20] sm:$0xff]  ;;  %v23_v9 = vld [vmem:[%s372_s1 + $0x28] sm:$0xff] }
   0x3   :  { %v151_v7 = vpack.c.bf16 %v21_v5, %v20_v3  ;;  %v154_v10 = vpack.c.bf16 %v23_v9, %v22_v8  ;;  %v24_v11 = vld [vmem:[%s372_s1 + $0x30] sm:$0xff]  ;;  %v25_v12 = vld [vmem:[%s372_s1 + $0x38] sm:$0xff]  ;;  %v15_v13 = vld [vmem:[%s373_s0 + $0x8] sm:$0xff] }
   0x4   :  { %149 = vmatpush1.bf16.msra.mxu0 %v148_v4  ;;  %200 = vmatpush1.bf16.msra.mxu1 %v148_v4  ;;  %v17_v14 = vld [vmem:[%s373_s0 + $0x18] sm:$0xff]  ;;  %v45_v15 = vld [vmem:[%s374_s2] sm:$0xff]  ;;  %v157_v16 = vpack.c.bf16 %v25_v12, %v24_v11  ;;  %v27_v18 = vld [vmem:[%s372_s1 + $0x48] sm:$0xff] }
   0x5   :  { %150 = vmatprep.subr.bf16.mxu0 %v218_v0  ;;  %187 = vmatprep.subr.bf16.mxu1 %v218_v0  ;;  %v26_v17 = vld [vmem:[%s372_s1 + $0x40] sm:$0xff]  ;;  %v46_v19 = vld [vmem:[%s374_s2 + $0x8] sm:$0xff]  ;;  %v28_v21 = vld [vmem:[%s372_s1 + $0x50] sm:$0xff] }
   0x6   :  { %145 = vmatprep.mubr.msk.f32.mxu0 %vm57_vm0, %v15_v13  ;;  %146 = vmatprep.mubr.msk.f32.mxu1 %vm57_vm0, %v17_v14  ;;  %v160_v20 = vpack.c.bf16 %v27_v18, %v26_v17  ;;  %v29_v22 = vld [vmem:[%s372_s1 + $0x58] sm:$0xff]  ;;  %v30_v24 = vld [vmem:[%s372_s1 + $0x60] sm:$0xff]  ;;  %v31_v25 = vld [vmem:[%s372_s1 + $0x68] sm:$0xff] }
   0x7   :  { %49 = vperm.xlu0 %217, %v45_v15   ;;  %v163_v23 = vpack.c.bf16 %v29_v22, %v28_v21  ;;  %v166_v26 = vpack.c.bf16 %v31_v25, %v30_v24  ;;  %v32_v27 = vld [vmem:[%s372_s1 + $0x70] sm:$0xff]  ;;  %v33_v28 = vld [vmem:[%s372_s1 + $0x78] sm:$0xff]  ;;  %v34_v30 = vld [vmem:[%s372_s1 + $0x80] sm:$0xff] }
   0x8   :  { %152 = vmatpush1.bf16.msra.mxu0 %v151_v7  ;;  %201 = vmatpush1.bf16.msra.mxu1 %v151_v7  ;;  %v169_v29 = vpack.c.bf16 %v33_v28, %v32_v27  ;;  %v35_v31 = vld [vmem:[%s372_s1 + $0x88] sm:$0xff]  ;;  %v36_v33 = vld [vmem:[%s372_s1 + $0x90] sm:$0xff]  ;;  %v37_v34 = vld [vmem:[%s372_s1 + $0x98] sm:$0xff] }
   0x9   :  { %153 = vmatprep.subr.bf16.mxu0 %v218_v0  ;;  %188 = vmatprep.subr.bf16.mxu1 %v218_v0  ;;  %v172_v32 = vpack.c.bf16 %v35_v31, %v34_v30  ;;  %v175_v35 = vpack.c.bf16 %v37_v34, %v36_v33  ;;  %v38_v36 = vld [vmem:[%s372_s1 + $0xa0] sm:$0xff]  ;;  %v39_v37 = vld [vmem:[%s372_s1 + $0xa8] sm:$0xff]  ;;  %v40_v39 = vld [vmem:[%s372_s1 + $0xb0] sm:$0xff] }
   0xa   :  { %v178_v38 = vpack.c.bf16 %v39_v37, %v38_v36  ;;  %v41_v40 = vld [vmem:[%s372_s1 + $0xb8] sm:$0xff]  ;;  %v42_v42 = vld [vmem:[%s372_s1 + $0xc0] sm:$0xff]  ;;  %v43_v43 = vld [vmem:[%s372_s1 + $0xc8] sm:$0xff] }
   0xb   :  { %54 = vperm.xlu0 %217, %v46_v19   ;;  %v181_v41 = vpack.c.bf16 %v41_v40, %v40_v39  ;;  %v184_v44 = vpack.c.bf16 %v43_v43, %v42_v42  ;;  %v44_v46 = vld [vmem:[%s372_s1 + $0xd0] sm:$0xff]  ;;  %v14_v47 = vld [vmem:[%s373_s0] sm:$0xff] }
   0xc   :  { %155 = vmatpush1.bf16.msra.mxu0 %v154_v10  ;;  %202 = vmatpush1.bf16.msra.mxu1 %v154_v10  ;;  %v16_v48 = vld [vmem:[%s373_s0 + $0x10] sm:$0xff] }
   0xd   :  { %156 = vmatprep.subr.bf16.mxu0 %v218_v0  ;;  %189 = vmatprep.subr.bf16.mxu1 %v218_v0 }
  0x10   :  { %158 = vmatpush1.bf16.msra.mxu0 %v157_v16  ;;  %203 = vmatpush1.bf16.msra.mxu1 %v157_v16 }
  0x11   :  { %159 = vmatprep.subr.bf16.mxu0 %v218_v0  ;;  %190 = vmatprep.subr.bf16.mxu1 %v218_v0 }
  0x14   :  { %161 = vmatpush1.bf16.msra.mxu0 %v160_v20  ;;  %204 = vmatpush1.bf16.msra.mxu1 %v160_v20 }
  0x15   :  { %162 = vmatprep.subr.bf16.mxu0 %v218_v0  ;;  %191 = vmatprep.subr.bf16.mxu1 %v218_v0 }
  0x18   :  { %164 = vmatpush1.bf16.msra.mxu0 %v163_v23  ;;  %205 = vmatpush1.bf16.msra.mxu1 %v163_v23 }
  0x19   :  { %165 = vmatprep.subr.bf16.mxu0 %v218_v0  ;;  %192 = vmatprep.subr.bf16.mxu1 %v218_v0 }
  0x1c   :  { %167 = vmatpush1.bf16.msra.mxu0 %v166_v26  ;;  %206 = vmatpush1.bf16.msra.mxu1 %v166_v26 }
  0x1d   :  { %168 = vmatprep.subr.bf16.mxu0 %v218_v0  ;;  %193 = vmatprep.subr.bf16.mxu1 %v218_v0 }
  0x20   :  { %170 = vmatpush1.bf16.msra.mxu0 %v169_v29  ;;  %207 = vmatpush1.bf16.msra.mxu1 %v169_v29 }
  0x21   :  { %171 = vmatprep.subr.bf16.mxu0 %v218_v0  ;;  %194 = vmatprep.subr.bf16.mxu1 %v218_v0 }
  0x24   :  { %173 = vmatpush1.bf16.msra.mxu0 %v172_v32  ;;  %208 = vmatpush1.bf16.msra.mxu1 %v172_v32 }
  0x25   :  { %174 = vmatprep.subr.bf16.mxu0 %v218_v0  ;;  %195 = vmatprep.subr.bf16.mxu1 %v218_v0 }
  0x28   :  { %176 = vmatpush1.bf16.msra.mxu0 %v175_v35  ;;  %209 = vmatpush1.bf16.msra.mxu1 %v175_v35 }
  0x29   :  { %177 = vmatprep.subr.bf16.mxu0 %v218_v0  ;;  %196 = vmatprep.subr.bf16.mxu1 %v218_v0 }
  0x2c   :  { %179 = vmatpush1.bf16.msra.mxu0 %v178_v38  ;;  %210 = vmatpush1.bf16.msra.mxu1 %v178_v38 }
  0x2d   :  { %180 = vmatprep.subr.bf16.mxu0 %v218_v0  ;;  %197 = vmatprep.subr.bf16.mxu1 %v218_v0 }
  0x30   :  { %182 = vmatpush1.bf16.msra.mxu0 %v181_v41  ;;  %211 = vmatpush1.bf16.msra.mxu1 %v181_v41 }
  0x31   :  { %183 = vmatprep.subr.bf16.mxu0 %v218_v0  ;;  %198 = vmatprep.subr.bf16.mxu1 %v218_v0 }
  0x34   :  { %185 = vmatpush1.bf16.msra.mxu0 %v184_v44  ;;  %212 = vmatpush1.bf16.msra.mxu1 %v184_v44 }
  0x35   :  { %116 = vmatprep.subr.mxu0 %v220_v45  ;;  %199 = vmatprep.subr.mxu1 %v220_v45 }
  0x38   :  { %117 = vmatpush1.msra.mxu0 %v44_v46  ;;  %213 = vmatpush1.msra.mxu1 %v44_v46 }
  0x39   :  { %129 = vmatmul.mubr.f32.vlgmr.msra.gmra.mrb[0].mxu0 %v14_v47  ;;  %134 = vmatmul.mubr.f32.vlgmr.msra.gmra.mrb[0].mxu1 %v16_v48 }
  0x86   :  { %v50_v49 = vpop.permute.xlu0 %49 }
  0x8a   :  { %v55_v50 = vpop.permute.xlu0 %54 }
 0x10c   :  { %v130_v51 = vpop.f32.mrb[0].mxu0  ;;  %v135_v52 = vpop.f32.mrb[0].mxu1 }
 0x10d   :  { %v131_v53 = vadd.f32 %v130_v51, %v50_v49  ;;  %v136_v54 = vadd.f32 %v135_v52, %v55_v50  ;;  %v132_v55 = vpop.f32.mrb[1].mxu0  ;;  %v137_v56 = vpop.f32.mrb[1].mxu1 }
 0x10f   :  { %139 = vst [vmem:[%s375_s3] sm:$0xff] %v131_v53  ;;  %140 = vst [vmem:[%s375_s3 + $0x8] sm:$0xff] %v136_v54 }

// kernel: vnet_forward.37
= control target key start
LH: loop header
LB: loop body
LE: loop exit
PB: predicated region body
PF: predicated region fallthrough
CT: control target
= control target key end

     0   :  { %v359_v0 = vmov 0.0|0.0   ;;  %v360_v4 = vmov 0   ;;  %vm88_vm0 = vcmask 392192   ;;  %s592_s1 = inlined_call_operand.vmem [shape: f32[432,128], index: 1, kind: input, shape index: {}]   ;;  %s593_s0 = inlined_call_operand.vmem [shape: f32[16,432], index: 0, kind: input, shape index: {}]   ;;  %s594_s2 = inlined_call_operand.vmem [shape: f32[16,1], index: 2, kind: input, shape index: {}]   ;;  %s595_s3 = inlined_call_operand.vmem [shape: f32[16,128], index: 3, kind: output, shape index: {}]  }
   0x1   :  { %323 = vmatprep.subr.bf16.mxu1 %v359_v0  ;;  %v54_v1 = vld [vmem:[%s592_s1 + $0x100] sm:$0xff]  ;;  %v55_v2 = vld [vmem:[%s592_s1 + $0x108] sm:$0xff]  ;;  %358 = vset.pattern.permute.xlu0 %v360_v4  ;;  %v56_v11 = vld [vmem:[%s592_s1 + $0x110] sm:$0xff] }
   0x2   :  { %v38_v3 = vld [vmem:[%s592_s1 + $0x80] sm:$0xff]  ;;  %v324_v5 = vpack.c.bf16 %v55_v2, %v54_v1  ;;  %v39_v6 = vld [vmem:[%s592_s1 + $0x88] sm:$0xff]  ;;  %v57_v12 = vld [vmem:[%s592_s1 + $0x118] sm:$0xff] }
   0x3   :  { %v22_v7 = vld [vmem:[%s592_s1] sm:$0xff]  ;;  %v23_v8 = vld [vmem:[%s592_s1 + $0x8] sm:$0xff]  ;;  %v291_v9 = vpack.c.bf16 %v39_v6, %v38_v3  ;;  %v40_v13 = vld [vmem:[%s592_s1 + $0x90] sm:$0xff]  ;;  %v327_v14 = vpack.c.bf16 %v57_v12, %v56_v11 }
   0x4   :  { %v293_v10 = vpack.c.bf16 %v23_v8, %v22_v7  ;;  %325 = vmatpush1.bf16.msra.mxu1 %v324_v5  ;;  %v41_v15 = vld [vmem:[%s592_s1 + $0x98] sm:$0xff]  ;;  %v24_v16 = vld [vmem:[%s592_s1 + $0x10] sm:$0xff]  ;;  %v58_v19 = vld [vmem:[%s592_s1 + $0x120] sm:$0xff] }
   0x5   :  { %v25_v17 = vld [vmem:[%s592_s1 + $0x18] sm:$0xff]  ;;  %292 = vmatprep.subr.bf16.mxu0 %v291_v9  ;;  %326 = vmatprep.subr.bf16.mxu1 %v359_v0  ;;  %v295_v18 = vpack.c.bf16 %v41_v15, %v40_v13  ;;  %v59_v20 = vld [vmem:[%s592_s1 + $0x128] sm:$0xff]  ;;  %v42_v21 = vld [vmem:[%s592_s1 + $0xa0] sm:$0xff] }
   0x6   :  { %294 = vmatpush3.bf16.msra.mxu0 %v293_v10  ;;  %v297_v22 = vpack.c.bf16 %v25_v17, %v24_v16  ;;  %v43_v23 = vld [vmem:[%s592_s1 + $0xa8] sm:$0xff]  ;;  %v26_v25 = vld [vmem:[%s592_s1 + $0x20] sm:$0xff]  ;;  %v330_v27 = vpack.c.bf16 %v59_v20, %v58_v19  ;;  %v44_v28 = vld [vmem:[%s592_s1 + $0xb0] sm:$0xff] }
   0x7   :  { %296 = vmatprep.subr.bf16.mxu0 %v295_v18  ;;  %v299_v24 = vpack.c.bf16 %v43_v23, %v42_v21  ;;  %v27_v26 = vld [vmem:[%s592_s1 + $0x28] sm:$0xff]  ;;  %v45_v29 = vld [vmem:[%s592_s1 + $0xb8] sm:$0xff]  ;;  %v60_v30 = vld [vmem:[%s592_s1 + $0x130] sm:$0xff] }
   0x8   :  { %328 = vmatpush1.bf16.msra.mxu1 %v327_v14  ;;  %v61_v31 = vld [vmem:[%s592_s1 + $0x138] sm:$0xff]  ;;  %v301_v32 = vpack.c.bf16 %v27_v26, %v26_v25  ;;  %v303_v33 = vpack.c.bf16 %v45_v29, %v44_v28  ;;  %v28_v34 = vld [vmem:[%s592_s1 + $0x30] sm:$0xff]  ;;  %v46_v37 = vld [vmem:[%s592_s1 + $0xc0] sm:$0xff] }
   0x9   :  { %329 = vmatprep.subr.bf16.mxu1 %v359_v0  ;;  %v29_v35 = vld [vmem:[%s592_s1 + $0x38] sm:$0xff]  ;;  %v333_v36 = vpack.c.bf16 %v61_v31, %v60_v30  ;;  %v47_v38 = vld [vmem:[%s592_s1 + $0xc8] sm:$0xff]  ;;  %v62_v39 = vld [vmem:[%s592_s1 + $0x140] sm:$0xff] }
   0xa   :  { %298 = vmatpush3.bf16.msra.mxu0 %v297_v22  ;;  %v63_v40 = vld [vmem:[%s592_s1 + $0x148] sm:$0xff]  ;;  %v305_v41 = vpack.c.bf16 %v29_v35, %v28_v34  ;;  %v307_v42 = vpack.c.bf16 %v47_v38, %v46_v37  ;;  %v30_v43 = vld [vmem:[%s592_s1 + $0x40] sm:$0xff]  ;;  %v48_v46 = vld [vmem:[%s592_s1 + $0xd0] sm:$0xff] }
   0xb   :  { %300 = vmatprep.subr.bf16.mxu0 %v299_v24  ;;  %v31_v44 = vld [vmem:[%s592_s1 + $0x48] sm:$0xff]  ;;  %v336_v45 = vpack.c.bf16 %v63_v40, %v62_v39  ;;  %v49_v47 = vld [vmem:[%s592_s1 + $0xd8] sm:$0xff]  ;;  %v64_v48 = vld [vmem:[%s592_s1 + $0x150] sm:$0xff] }
   0xc   :  { %331 = vmatpush1.bf16.msra.mxu1 %v330_v27  ;;  %v65_v49 = vld [vmem:[%s592_s1 + $0x158] sm:$0xff]  ;;  %v15_v50 = vld [vmem:[%s593_s0 + $0x8] sm:$0xff]  ;;  %v309_v51 = vpack.c.bf16 %v31_v44, %v30_v43  ;;  %v311_v52 = vpack.c.bf16 %v49_v47, %v48_v46  ;;  %v32_v53 = vld [vmem:[%s592_s1 + $0x50] sm:$0xff] }
   0xd   :  { %332 = vmatprep.subr.bf16.mxu1 %v359_v0  ;;  %159 = vmatprep.mubr.f32.mxu0 %v15_v50  ;;  %v33_v54 = vld [vmem:[%s592_s1 + $0x58] sm:$0xff]  ;;  %v339_v55 = vpack.c.bf16 %v65_v49, %v64_v48  ;;  %v50_v56 = vld [vmem:[%s592_s1 + $0xe0] sm:$0xff]  ;;  %v51_v57 = vld [vmem:[%s592_s1 + $0xe8] sm:$0xff] }
   0xe   :  { %302 = vmatpush3.bf16.msra.mxu0 %v301_v32  ;;  %v17_v58 = vld [vmem:[%s593_s0 + $0x18] sm:$0xff]  ;;  %v66_v59 = vld [vmem:[%s592_s1 + $0x160] sm:$0xff]  ;;  %v67_v60 = vld [vmem:[%s592_s1 + $0x168] sm:$0xff]  ;;  %v313_v62 = vpack.c.bf16 %v33_v54, %v32_v53  ;;  %v315_v63 = vpack.c.bf16 %v51_v57, %v50_v56 }
   0xf   :  { %304 = vmatprep.subr.bf16.mxu0 %v303_v33  ;;  %251 = vmatprep.mubr.msk.f32.mxu1 %vm88_vm0, %v17_v58  ;;  %v76_v61 = vld [vmem:[%s594_s2] sm:$0xff]  ;;  %v35_v2 = vld [vmem:[%s592_s1 + $0x68] sm:$0xff]  ;;  %v342_v4 = vpack.c.bf16 %v67_v60, %v66_v59  ;;  %v52_v5 = vld [vmem:[%s592_s1 + $0xf0] sm:$0xff] }
  0x10   :  { %334 = vmatpush1.bf16.msra.mxu1 %v333_v36  ;;  %80 = vperm.xlu0 %358, %v76_v61   ;;  %v34_v1 = vld [vmem:[%s592_s1 + $0x60] sm:$0xff]  ;;  %v77_v3 = vld [vmem:[%s594_s2 + $0x8] sm:$0xff]  ;;  %v53_v6 = vld [vmem:[%s592_s1 + $0xf8] sm:$0xff] }
  0x11   :  { %335 = vmatprep.subr.bf16.mxu1 %v359_v0  ;;  %v68_v7 = vld [vmem:[%s592_s1 + $0x170] sm:$0xff]  ;;  %v69_v8 = vld [vmem:[%s592_s1 + $0x178] sm:$0xff]  ;;  %v317_v9 = vpack.c.bf16 %v35_v2, %v34_v1  ;;  %v319_v10 = vpack.c.bf16 %v53_v6, %v52_v5  ;;  %v70_v14 = vld [vmem:[%s592_s1 + $0x180] sm:$0xff] }
  0x12   :  { %306 = vmatpush3.bf16.msra.mxu0 %v305_v41  ;;  %v36_v11 = vld [vmem:[%s592_s1 + $0x70] sm:$0xff]  ;;  %v37_v12 = vld [vmem:[%s592_s1 + $0x78] sm:$0xff]  ;;  %v345_v13 = vpack.c.bf16 %v69_v8, %v68_v7  ;;  %v71_v15 = vld [vmem:[%s592_s1 + $0x188] sm:$0xff] }
  0x13   :  { %308 = vmatprep.subr.bf16.mxu0 %v307_v42  ;;  %v321_v16 = vpack.c.bf16 %v37_v12, %v36_v11  ;;  %v348_v17 = vpack.c.bf16 %v71_v15, %v70_v14  ;;  %v72_v18 = vld [vmem:[%s592_s1 + $0x190] sm:$0xff]  ;;  %v73_v19 = vld [vmem:[%s592_s1 + $0x198] sm:$0xff]  ;;  %v14_v20 = vld [vmem:[%s593_s0] sm:$0xff] }
  0x14   :  { %337 = vmatpush1.bf16.msra.mxu1 %v336_v45  ;;  %85 = vperm.xlu0 %358, %v77_v3   ;;  %v19_v21 = vld [vmem:[%s593_s0 + $0x28] sm:$0xff]  ;;  %v351_v22 = vpack.c.bf16 %v73_v19, %v72_v18  ;;  %v74_v23 = vld [vmem:[%s592_s1 + $0x1a0] sm:$0xff]  ;;  %v16_v27 = vld [vmem:[%s593_s0 + $0x10] sm:$0xff] }
  0x15   :  { %338 = vmatprep.subr.bf16.mxu1 %v359_v0  ;;  %v75_v24 = vld [vmem:[%s592_s1 + $0x1a8] sm:$0xff]  ;;  %v18_v25 = vld [vmem:[%s593_s0 + $0x20] sm:$0xff]  ;;  %v21_v28 = vld [vmem:[%s593_s0 + $0x38] sm:$0xff] }
  0x16   :  { %310 = vmatpush3.bf16.msra.mxu0 %v309_v51  ;;  %v354_v26 = vpack.c.bf16 %v75_v24, %v74_v23  ;;  %v20_v29 = vld [vmem:[%s593_s0 + $0x30] sm:$0xff] }
  0x17   :  { %312 = vmatprep.subr.bf16.mxu0 %v311_v52 }
  0x18   :  { %340 = vmatpush1.bf16.msra.mxu1 %v339_v55 }
  0x19   :  { %341 = vmatprep.subr.bf16.mxu1 %v359_v0 }
  0x1a   :  { %314 = vmatpush3.bf16.msra.mxu0 %v313_v62 }
  0x1b   :  { %316 = vmatprep.subr.bf16.mxu0 %v315_v63 }
  0x1c   :  { %343 = vmatpush1.bf16.msra.mxu1 %v342_v4 }
  0x1d   :  { %344 = vmatprep.subr.bf16.mxu1 %v359_v0 }
  0x1e   :  { %318 = vmatpush3.bf16.msra.mxu0 %v317_v9 }
  0x1f   :  { %320 = vmatprep.subr.bf16.mxu0 %v319_v10 }
  0x20   :  { %346 = vmatpush1.bf16.msra.mxu1 %v345_v13 }
  0x21   :  { %347 = vmatprep.subr.bf16.mxu1 %v359_v0 }
  0x22   :  { %322 = vmatpush3.bf16.msra.mxu0 %v321_v16 }
  0x24   :  { %349 = vmatpush1.bf16.msra.mxu1 %v348_v17 }
  0x25   :  { %160 = vmatmul.mubr.f32.vlgmr.msra.gmra.mrb[0].mxu0 %v14_v20  ;;  %350 = vmatprep.subr.bf16.mxu1 %v359_v0 }
  0x26   :  { %164 = vmatprep.mubr.f32.mxu0 %v19_v21 }
  0x28   :  { %352 = vmatpush1.bf16.msra.mxu1 %v351_v22 }
  0x29   :  { %165 = vmatmul.mubr.f32.gmra.mrb[2].mxu0 %v18_v25  ;;  %353 = vmatprep.subr.bf16.mxu1 %v359_v0 }
  0x2c   :  { %355 = vmatpush1.bf16.msra.mxu1 %v354_v26 }
  0x2f   :  { %235 = vmatmul.mubr.f32.vlgmr.msra.gmra.mrb[0].mxu1 %v16_v27 }
  0x30   :  { %252 = vmatprep.mubr.msk.f32.mxu1 %vm88_vm0, %v21_v28 }
  0x33   :  { %240 = vmatmul.mubr.f32.gmra.mrb[2].mxu1 %v20_v29 }
  0x8f   :  { %v81_v32 = vpop.permute.xlu0 %80 }
  0x93   :  { %v86_v37 = vpop.permute.xlu0 %85 }
  0xf8   :  { %v285_v30 = vpop.f32.mrb[0].mxu0 }
  0xf9   :  { %v286_v31 = vpop.f32.mrb[1].mxu0 }
  0xfa   :  { %v287_v0 = vadd.f32 %v286_v31, %v285_v30 }
  0xfc   :  { %v288_v33 = vpop.f32.mrb[2].mxu0  ;;  %v162_v36 = vadd.f32 %v287_v0, %v81_v32 }
  0xfd   :  { %v289_v34 = vpop.f32.mrb[3].mxu0 }
  0xfe   :  { %v290_v35 = vadd.f32 %v289_v34, %v288_v33 }
 0x100   :  { %v167_v41 = vadd.f32 %v290_v35, %v86_v37 }
 0x102   :  { %v236_v38 = vpop.f32.mrb[0].mxu1 }
 0x103   :  { %v237_v39 = vadd.f32 %v236_v38, %v162_v36  ;;  %v238_v40 = vpop.f32.mrb[1].mxu1 }
 0x105   :  { %245 = vst [vmem:[%s595_s3] sm:$0xff] %v237_v39 }
 0x106   :  { %v241_v42 = vpop.f32.mrb[2].mxu1 }
 0x107   :  { %v242_v43 = vadd.f32 %v241_v42, %v167_v41  ;;  %v243_v44 = vpop.f32.mrb[3].mxu1 }
 0x109   :  { %246 = vst [vmem:[%s595_s3 + $0x8] sm:$0xff] %v242_v43 }

// kernel: tile.13
= control target key start
LH: loop header
LB: loop body
LE: loop exit
PB: predicated region body
PF: predicated region fallthrough
CT: control target
= control target key end

     0   :  { %s22_s0 = inlined_call_operand.vmem [shape: f32[8], index: 0, kind: input, shape index: {}]   ;;  %s23_s1 = inlined_call_operand.vmem [shape: f32[8,8], index: 1, kind: output, shape index: {}]  }
   0x1   :  { %v4_v0 = vld [vmem:[%s22_s0] ss:$0 sm:$0xff] }
   0x2   :  { %5 = vst [vmem:[%s23_s1] sm:$0xff] %v4_v0 }

// kernel: tile.0
= control target key start
LH: loop header
LB: loop body
LE: loop exit
PB: predicated region body
PF: predicated region fallthrough
CT: control target
= control target key end

     0   :  { %vm3_vm0 = vcmask 7168   ;;  %s84_s8 = smov 125   ;;  %s85_s13 = smov 126   ;;  %s167_s0 = inlined_call_operand.vmem [shape: f32[8,8], index: 0, kind: input, shape index: {}]   ;;  %s168_s1 = inlined_call_operand.vmem [shape: f32[64,1], index: 1, kind: output, shape index: {}]  }
   0x1   :  { %v6_v0 = vld [vmem:[%s167_s0] sm:$0xff]   ;;  %s83_s0 = smov 127   ;;  %s86_s14 = smov 124  }
   0x2   :  { %7 = vrot.lane.b32.xlu0 %v6_v0, %s83_s0  ;;  %23 = vrot.lane.b32.xlu1 %v6_v0, %s84_s8  ;;  %4 = vst.msk [vmem:[%s168_s1] ss:$8 sm:$0xf] %vm3_vm0, %v6_v0   ;;  %5 = vst.msk [vmem:[%s168_s1] ss:$8 sm:$0xf0] %vm3_vm0, %v6_v0  }
   0x3   :  { %s87_s15 = smov 123   ;;  %s88_s16 = smov 122  }
   0x4   :  { %s89_s17 = smov 121  }
   0x6   :  { %15 = vrot.lane.b32.xlu0 %v6_v0, %s85_s13  ;;  %31 = vrot.lane.b32.xlu1 %v6_v0, %s86_s14 }
   0xa   :  { %39 = vrot.lane.b32.xlu0 %v6_v0, %s87_s15  ;;  %47 = vrot.lane.b32.xlu1 %v6_v0, %s88_s16 }
   0xe   :  { %55 = vrot.lane.b32.xlu0 %v6_v0, %s89_s17 }
  0x74   :  { %v8_v1 = vpop.permute.xlu0 %7   ;;  %v24_v2 = vpop.permute.xlu1 %23  }
  0x75   :  { %62 = vst.msk [vmem:[%s168_s1 + $0x1] ss:$8 sm:$0xf] %vm3_vm0, %v8_v1   ;;  %63 = vst.msk [vmem:[%s168_s1 + $0x1] ss:$8 sm:$0xf0] %vm3_vm0, %v8_v1  }
  0x76   :  { %66 = vst.msk [vmem:[%s168_s1 + $0x3] ss:$8 sm:$0xf] %vm3_vm0, %v24_v2   ;;  %67 = vst.msk [vmem:[%s168_s1 + $0x3] ss:$8 sm:$0xf0] %vm3_vm0, %v24_v2  }
  0x78   :  { %v16_v3 = vpop.permute.xlu0 %15   ;;  %v32_v4 = vpop.permute.xlu1 %31  }
  0x79   :  { %64 = vst.msk [vmem:[%s168_s1 + $0x2] ss:$8 sm:$0xf] %vm3_vm0, %v16_v3   ;;  %65 = vst.msk [vmem:[%s168_s1 + $0x2] ss:$8 sm:$0xf0] %vm3_vm0, %v16_v3  }
  0x7a   :  { %68 = vst.msk [vmem:[%s168_s1 + $0x4] ss:$8 sm:$0xf] %vm3_vm0, %v32_v4   ;;  %69 = vst.msk [vmem:[%s168_s1 + $0x4] ss:$8 sm:$0xf0] %vm3_vm0, %v32_v4  }
  0x7c   :  { %v40_v5 = vpop.permute.xlu0 %39   ;;  %v48_v6 = vpop.permute.xlu1 %47  }
  0x7d   :  { %70 = vst.msk [vmem:[%s168_s1 + $0x5] ss:$8 sm:$0xf] %vm3_vm0, %v40_v5   ;;  %71 = vst.msk [vmem:[%s168_s1 + $0x5] ss:$8 sm:$0xf0] %vm3_vm0, %v40_v5  }
  0x7e   :  { %72 = vst.msk [vmem:[%s168_s1 + $0x6] ss:$8 sm:$0xf] %vm3_vm0, %v48_v6   ;;  %73 = vst.msk [vmem:[%s168_s1 + $0x6] ss:$8 sm:$0xf0] %vm3_vm0, %v48_v6  }
  0x80   :  { %v56_v7 = vpop.permute.xlu0 %55  }
  0x81   :  { %74 = vst.msk [vmem:[%s168_s1 + $0x7] ss:$8 sm:$0xf] %vm3_vm0, %v56_v7   ;;  %75 = vst.msk [vmem:[%s168_s1 + $0x7] ss:$8 sm:$0xf0] %vm3_vm0, %v56_v7  }

// kernel: vnet_forward.39
= control target key start
LH: loop header
LB: loop body
LE: loop exit
PB: predicated region body
PF: predicated region fallthrough
CT: control target
= control target key end

     0   :  { %v322_v3 = vmov 0   ;;  %s463_s1 = inlined_call_operand.vmem [shape: f32[128,128], index: 1, kind: input, shape index: {}]   ;;  %s464_s0 = inlined_call_operand.vmem [shape: f32[64,128], index: 0, kind: input, shape index: {}]   ;;  %s465_s2 = inlined_call_operand.vmem [shape: f32[64,1], index: 2, kind: input, shape index: {}]   ;;  %s466_s3 = inlined_call_operand.vmem [shape: f32[64,128], index: 3, kind: output, shape index: {}]  }
   0x1   :  { %v22_v0 = vld [vmem:[%s463_s1] sm:$0xff]  ;;  %v23_v1 = vld [vmem:[%s463_s1 + $0x8] sm:$0xff]  ;;  %v24_v2 = vld [vmem:[%s463_s1 + $0x10] sm:$0xff]  ;;  %321 = vset.pattern.permute.xlu1 %v322_v3  ;;  %320 = vset.pattern.permute.xlu0 %v322_v3 }
   0x2   :  { %v271_v4 = vpack.c.bf16 %v23_v1, %v22_v0  ;;  %v25_v5 = vld [vmem:[%s463_s1 + $0x18] sm:$0xff]  ;;  %v26_v7 = vld [vmem:[%s463_s1 + $0x20] sm:$0xff]  ;;  %v27_v8 = vld [vmem:[%s463_s1 + $0x28] sm:$0xff] }
   0x3   :  { %v275_v6 = vpack.c.bf16 %v25_v5, %v24_v2  ;;  %v279_v9 = vpack.c.bf16 %v27_v8, %v26_v7  ;;  %v14_v10 = vld [vmem:[%s464_s0] sm:$0xff]  ;;  %v28_v12 = vld [vmem:[%s463_s1 + $0x30] sm:$0xff]  ;;  %v29_v13 = vld [vmem:[%s463_s1 + $0x38] sm:$0xff] }
   0x4   :  { %272 = vmatprep.subr.bf16.mxu0 %v271_v4  ;;  %303 = vmatprep.subr.bf16.mxu1 %v271_v4  ;;  %v18_v11 = vld [vmem:[%s464_s0 + $0x20] sm:$0xff]  ;;  %v40_v14 = vld [vmem:[%s465_s2 + $0x10] sm:$0xff]  ;;  %v283_v16 = vpack.c.bf16 %v29_v13, %v28_v12  ;;  %v31_v18 = vld [vmem:[%s463_s1 + $0x48] sm:$0xff] }
   0x5   :  { %274 = vmatpush3.bf16.msra.mxu0 %v271_v4  ;;  %311 = vmatpush3.bf16.msra.mxu1 %v271_v4  ;;  %v38_v15 = vld [vmem:[%s465_s2] sm:$0xff]  ;;  %v41_v19 = vld [vmem:[%s465_s2 + $0x18] sm:$0xff]  ;;  %v39_v20 = vld [vmem:[%s465_s2 + $0x8] sm:$0xff] }
   0x6   :  { %276 = vmatprep.subr.bf16.mxu0 %v275_v6  ;;  %304 = vmatprep.subr.bf16.mxu1 %v275_v6  ;;  %v30_v17 = vld [vmem:[%s463_s1 + $0x40] sm:$0xff]  ;;  %v32_v22 = vld [vmem:[%s463_s1 + $0x50] sm:$0xff]  ;;  %v33_v23 = vld [vmem:[%s463_s1 + $0x58] sm:$0xff] }
   0x7   :  { %259 = vmatprep.mubr.f32.mxu0 %v14_v10  ;;  %265 = vmatprep.mubr.f32.mxu1 %v18_v11  ;;  %v287_v21 = vpack.c.bf16 %v31_v18, %v30_v17  ;;  %v43_v24 = vld [vmem:[%s465_s2 + $0x28] sm:$0xff]  ;;  %v42_v25 = vld [vmem:[%s465_s2 + $0x20] sm:$0xff]  ;;  %v291_v26 = vpack.c.bf16 %v33_v23, %v32_v22  ;;  %v45_v29 = vld [vmem:[%s465_s2 + $0x38] sm:$0xff] }
   0x8   :  { %58 = vperm.xlu1 %321, %v40_v14   ;;  %48 = vperm.xlu0 %320, %v38_v15   ;;  %v34_v27 = vld [vmem:[%s463_s1 + $0x60] sm:$0xff]  ;;  %v35_v28 = vld [vmem:[%s463_s1 + $0x68] sm:$0xff]  ;;  %v44_v30 = vld [vmem:[%s465_s2 + $0x30] sm:$0xff] }
   0x9   :  { %278 = vmatpush3.bf16.msra.mxu0 %v275_v6  ;;  %312 = vmatpush3.bf16.msra.mxu1 %v275_v6  ;;  %v295_v31 = vpack.c.bf16 %v35_v28, %v34_v27  ;;  %v36_v32 = vld [vmem:[%s463_s1 + $0x70] sm:$0xff]  ;;  %v37_v33 = vld [vmem:[%s463_s1 + $0x78] sm:$0xff]  ;;  %v15_v35 = vld [vmem:[%s464_s0 + $0x8] sm:$0xff] }
   0xa   :  { %280 = vmatprep.subr.bf16.mxu0 %v279_v9  ;;  %305 = vmatprep.subr.bf16.mxu1 %v279_v9  ;;  %v299_v34 = vpack.c.bf16 %v37_v33, %v36_v32  ;;  %v19_v36 = vld [vmem:[%s464_s0 + $0x28] sm:$0xff]  ;;  %v16_v37 = vld [vmem:[%s464_s0 + $0x10] sm:$0xff]  ;;  %v17_v39 = vld [vmem:[%s464_s0 + $0x18] sm:$0xff] }
   0xb   :  { %v20_v38 = vld [vmem:[%s464_s0 + $0x30] sm:$0xff]  ;;  %v21_v40 = vld [vmem:[%s464_s0 + $0x38] sm:$0xff] }
   0xc   :  { %63 = vperm.xlu1 %321, %v41_v19   ;;  %53 = vperm.xlu0 %320, %v39_v20  }
   0xd   :  { %282 = vmatpush3.bf16.msra.mxu0 %v279_v9  ;;  %313 = vmatpush3.bf16.msra.mxu1 %v279_v9 }
   0xe   :  { %284 = vmatprep.subr.bf16.mxu0 %v283_v16  ;;  %306 = vmatprep.subr.bf16.mxu1 %v283_v16 }
  0x10   :  { %73 = vperm.xlu1 %321, %v43_v24   ;;  %68 = vperm.xlu0 %320, %v42_v25  }
  0x11   :  { %286 = vmatpush3.bf16.msra.mxu0 %v283_v16  ;;  %314 = vmatpush3.bf16.msra.mxu1 %v283_v16 }
  0x12   :  { %288 = vmatprep.subr.bf16.mxu0 %v287_v21  ;;  %307 = vmatprep.subr.bf16.mxu1 %v287_v21 }
  0x14   :  { %83 = vperm.xlu1 %321, %v45_v29   ;;  %78 = vperm.xlu0 %320, %v44_v30  }
  0x15   :  { %290 = vmatpush3.bf16.msra.mxu0 %v287_v21  ;;  %315 = vmatpush3.bf16.msra.mxu1 %v287_v21 }
  0x16   :  { %292 = vmatprep.subr.bf16.mxu0 %v291_v26  ;;  %308 = vmatprep.subr.bf16.mxu1 %v291_v26 }
  0x19   :  { %294 = vmatpush3.bf16.msra.mxu0 %v291_v26  ;;  %316 = vmatpush3.bf16.msra.mxu1 %v291_v26 }
  0x1a   :  { %296 = vmatprep.subr.bf16.mxu0 %v295_v31  ;;  %309 = vmatprep.subr.bf16.mxu1 %v295_v31 }
  0x1d   :  { %298 = vmatpush3.bf16.msra.mxu0 %v295_v31  ;;  %317 = vmatpush3.bf16.msra.mxu1 %v295_v31 }
  0x1e   :  { %300 = vmatprep.subr.bf16.mxu0 %v299_v34  ;;  %310 = vmatprep.subr.bf16.mxu1 %v299_v34 }
  0x21   :  { %302 = vmatpush3.bf16.msra.mxu0 %v299_v34  ;;  %318 = vmatpush3.bf16.msra.mxu1 %v299_v34 }
  0x24   :  { %260 = vmatmul.mubr.f32.vlgmr.msra.gmra.mrb[0].mxu0 %v15_v35  ;;  %266 = vmatmul.mubr.f32.vlgmr.msra.gmra.mrb[0].mxu1 %v19_v36 }
  0x25   :  { %262 = vmatprep.mubr.f32.mxu0 %v16_v37  ;;  %268 = vmatprep.mubr.f32.mxu1 %v20_v38 }
  0x28   :  { %263 = vmatmul.mubr.f32.gmra.mrb[2].mxu0 %v17_v39  ;;  %269 = vmatmul.mubr.f32.gmra.mrb[2].mxu1 %v21_v40 }
  0x87   :  { %v59_v41 = vpop.permute.xlu1 %58  ;;  %v49_v42 = vpop.permute.xlu0 %48 }
  0x8b   :  { %v64_v43 = vpop.permute.xlu1 %63  ;;  %v54_v44 = vpop.permute.xlu0 %53 }
  0x8f   :  { %v74_v45 = vpop.permute.xlu1 %73  ;;  %v69_v46 = vpop.permute.xlu0 %68 }
  0x93   :  { %v84_v55 = vpop.permute.xlu1 %83  ;;  %v79_v56 = vpop.permute.xlu0 %78 }
  0xf7   :  { %v261_v47 = vpop.f32.mrb[0].mxu0  ;;  %v267_v48 = vpop.f32.mrb[0].mxu1 }
  0xf8   :  { %v158_v49 = vadd.f32 %v261_v47, %v54_v44  ;;  %v178_v50 = vadd.f32 %v267_v48, %v74_v45  ;;  %v152_v51 = vpop.f32.mrb[1].mxu0  ;;  %v172_v52 = vpop.f32.mrb[1].mxu1 }
  0xf9   :  { %v153_v53 = vadd.f32 %v152_v51, %v49_v42  ;;  %v173_v54 = vadd.f32 %v172_v52, %v69_v46 }
  0xfa   :  { %192 = vst [vmem:[%s466_s3 + $0x8] sm:$0xff] %v158_v49  ;;  %196 = vst [vmem:[%s466_s3 + $0x28] sm:$0xff] %v178_v50 }
  0xfb   :  { %191 = vst [vmem:[%s466_s3] sm:$0xff] %v153_v53  ;;  %195 = vst [vmem:[%s466_s3 + $0x20] sm:$0xff] %v173_v54  ;;  %v264_v57 = vpop.f32.mrb[2].mxu0  ;;  %v270_v58 = vpop.f32.mrb[2].mxu1 }
  0xfc   :  { %v168_v59 = vadd.f32 %v264_v57, %v64_v43  ;;  %v188_v60 = vadd.f32 %v270_v58, %v84_v55  ;;  %v162_v61 = vpop.f32.mrb[3].mxu0  ;;  %v182_v62 = vpop.f32.mrb[3].mxu1 }
  0xfd   :  { %v163_v63 = vadd.f32 %v162_v61, %v59_v41  ;;  %v183_v0 = vadd.f32 %v182_v62, %v79_v56 }
  0xfe   :  { %194 = vst [vmem:[%s466_s3 + $0x18] sm:$0xff] %v168_v59  ;;  %198 = vst [vmem:[%s466_s3 + $0x38] sm:$0xff] %v188_v60 }
  0xff   :  { %193 = vst [vmem:[%s466_s3 + $0x10] sm:$0xff] %v163_v63  ;;  %197 = vst [vmem:[%s466_s3 + $0x30] sm:$0xff] %v183_v0 }

// kernel: tile.18
= control target key start
LH: loop header
LB: loop body
LE: loop exit
PB: predicated region body
PF: predicated region fallthrough
CT: control target
= control target key end

     0   :  { %s22_s0 = inlined_call_operand.vmem [shape: f32[4], index: 0, kind: input, shape index: {}]   ;;  %s23_s1 = inlined_call_operand.vmem [shape: f32[8,4], index: 1, kind: output, shape index: {}]  }
   0x1   :  { %v4_v0 = vld [vmem:[%s22_s0] ss:$0 sm:$0xff] }
   0x2   :  { %5 = vst [vmem:[%s23_s1] sm:$0xff] %v4_v0 }

// kernel: tile.1
= control target key start
LH: loop header
LB: loop body
LE: loop exit
PB: predicated region body
PF: predicated region fallthrough
CT: control target
= control target key end

     0   :  { %vm3_vm0 = vcmask 7168   ;;  %s30_s8 = smov 125   ;;  %s31_s11 = smov 126   ;;  %s57_s0 = inlined_call_operand.vmem [shape: f32[8,4], index: 0, kind: input, shape index: {}]   ;;  %s58_s1 = inlined_call_operand.vmem [shape: f32[32,1], index: 1, kind: output, shape index: {}]  }
   0x1   :  { %v5_v0 = vld [vmem:[%s57_s0] sm:$0xff]   ;;  %s29_s0 = smov 127  }
   0x2   :  { %6 = vrot.lane.b32.xlu0 %v5_v0, %s29_s0  ;;  %18 = vrot.lane.b32.xlu1 %v5_v0, %s30_s8  ;;  %4 = vst.msk [vmem:[%s58_s1] ss:$4 sm:$0xff] %vm3_vm0, %v5_v0  }
   0x6   :  { %12 = vrot.lane.b32.xlu0 %v5_v0, %s31_s11 }
  0x74   :  { %v7_v1 = vpop.permute.xlu0 %6   ;;  %v19_v2 = vpop.permute.xlu1 %18  }
  0x75   :  { %23 = vst.msk [vmem:[%s58_s1 + $0x1] ss:$4 sm:$0xff] %vm3_vm0, %v7_v1   ;;  %25 = vst.msk [vmem:[%s58_s1 + $0x3] ss:$4 sm:$0xff] %vm3_vm0, %v19_v2  }
  0x78   :  { %v13_v3 = vpop.permute.xlu0 %12  }
  0x79   :  { %24 = vst.msk [vmem:[%s58_s1 + $0x2] ss:$4 sm:$0xff] %vm3_vm0, %v13_v3  }

// kernel: vnet_forward.44
= control target key start
LH: loop header
LB: loop body
LE: loop exit
PB: predicated region body
PF: predicated region fallthrough
CT: control target
= control target key end

     0   :  { %v329_v3 = vmov 0.0   ;;  %v330_v8 = vmov 0   ;;  %vm74_vm0 = vcmask 523264   ;;  %s535_s1 = inlined_call_operand.vmem [shape: f32[64,512], index: 1, kind: input, shape index: {}]   ;;  %s536_s2 = inlined_call_operand.vmem [shape: f32[32,1], index: 2, kind: input, shape index: {}]   ;;  %s537_s0 = inlined_call_operand.vmem [shape: f32[32,64], index: 0, kind: input, shape index: {}]   ;;  %s538_s3 = inlined_call_operand.vmem [shape: f32[32,512], index: 3, kind: output, shape index: {}]  }
   0x1   :  { %v19_v0 = vld [vmem:[%s535_s1 + $0x8] sm:$0xff]  ;;  %v21_v2 = vld [vmem:[%s535_s1 + $0x18] sm:$0xff]  ;;  %151 = vmatprep.mubr.f32.mxu0 %v329_v3  ;;  %240 = vmatprep.mubr.f32.mxu1 %v329_v3  ;;  %v18_v6 = vld [vmem:[%s535_s1] sm:$0xff] }
   0x2   :  { %v23_v1 = vld [vmem:[%s535_s1 + $0x28] sm:$0xff]  ;;  %v25_v5 = vld [vmem:[%s535_s1 + $0x38] sm:$0xff]  ;;  %v22_v7 = vld [vmem:[%s535_s1 + $0x20] sm:$0xff]  ;;  %327 = vset.pattern.permute.xlu0 %v330_v8  ;;  %328 = vset.pattern.permute.xlu1 %v330_v8 }
   0x3   :  { %v293_v4 = vpack.c.bf16 %v23_v1, %v19_v0  ;;  %v309_v9 = vpack.c.bf16 %v25_v5, %v21_v2  ;;  %v295_v10 = vpack.c.bf16 %v22_v7, %v18_v6  ;;  %v20_v11 = vld [vmem:[%s535_s1 + $0x10] sm:$0xff]  ;;  %v27_v13 = vld [vmem:[%s535_s1 + $0x48] sm:$0xff]  ;;  %v29_v16 = vld [vmem:[%s535_s1 + $0x58] sm:$0xff] }
   0x4   :  { %v24_v12 = vld [vmem:[%s535_s1 + $0x30] sm:$0xff]  ;;  %v31_v15 = vld [vmem:[%s535_s1 + $0x68] sm:$0xff]  ;;  %v33_v17 = vld [vmem:[%s535_s1 + $0x78] sm:$0xff] }
   0x5   :  { %294 = vmatprep.subr.bf16.mxu0 %v293_v4  ;;  %v311_v14 = vpack.c.bf16 %v24_v12, %v20_v11  ;;  %310 = vmatprep.subr.bf16.mxu1 %v309_v9  ;;  %v297_v18 = vpack.c.bf16 %v31_v15, %v27_v13  ;;  %v313_v19 = vpack.c.bf16 %v33_v17, %v29_v16  ;;  %v26_v20 = vld [vmem:[%s535_s1 + $0x40] sm:$0xff]  ;;  %v28_v22 = vld [vmem:[%s535_s1 + $0x50] sm:$0xff]  ;;  %v35_v25 = vld [vmem:[%s535_s1 + $0x88] sm:$0xff] }
   0x6   :  { %296 = vmatpush1.bf16.msra.mxu0 %v295_v10  ;;  %v30_v21 = vld [vmem:[%s535_s1 + $0x60] sm:$0xff]  ;;  %v32_v24 = vld [vmem:[%s535_s1 + $0x70] sm:$0xff]  ;;  %v39_v26 = vld [vmem:[%s535_s1 + $0xa8] sm:$0xff] }
   0x7   :  { %312 = vmatpush1.bf16.msra.mxu1 %v311_v14  ;;  %v299_v23 = vpack.c.bf16 %v30_v21, %v26_v20  ;;  %298 = vmatprep.subr.bf16.mxu0 %v297_v18  ;;  %v315_v27 = vpack.c.bf16 %v32_v24, %v28_v22  ;;  %v301_v28 = vpack.c.bf16 %v39_v26, %v35_v25  ;;  %v37_v29 = vld [vmem:[%s535_s1 + $0x98] sm:$0xff]  ;;  %v34_v31 = vld [vmem:[%s535_s1 + $0x80] sm:$0xff]  ;;  %v36_v34 = vld [vmem:[%s535_s1 + $0x90] sm:$0xff] }
   0x8   :  { %314 = vmatprep.subr.bf16.mxu1 %v313_v19  ;;  %v41_v30 = vld [vmem:[%s535_s1 + $0xb8] sm:$0xff]  ;;  %v38_v33 = vld [vmem:[%s535_s1 + $0xa0] sm:$0xff]  ;;  %v40_v35 = vld [vmem:[%s535_s1 + $0xb0] sm:$0xff] }
   0x9   :  { %v317_v32 = vpack.c.bf16 %v41_v30, %v37_v29  ;;  %v303_v36 = vpack.c.bf16 %v38_v33, %v34_v31  ;;  %v43_v37 = vld [vmem:[%s535_s1 + $0xc8] sm:$0xff]  ;;  %v45_v39 = vld [vmem:[%s535_s1 + $0xd8] sm:$0xff]  ;;  %v319_v40 = vpack.c.bf16 %v40_v35, %v36_v34  ;;  %v42_v43 = vld [vmem:[%s535_s1 + $0xc0] sm:$0xff] }
   0xa   :  { %300 = vmatpush1.bf16.msra.mxu0 %v299_v23  ;;  %v47_v38 = vld [vmem:[%s535_s1 + $0xe8] sm:$0xff]  ;;  %v49_v42 = vld [vmem:[%s535_s1 + $0xf8] sm:$0xff]  ;;  %v46_v44 = vld [vmem:[%s535_s1 + $0xe0] sm:$0xff] }
   0xb   :  { %316 = vmatpush1.bf16.msra.mxu1 %v315_v27  ;;  %302 = vmatprep.subr.bf16.mxu0 %v301_v28  ;;  %v305_v41 = vpack.c.bf16 %v47_v38, %v43_v37  ;;  %v321_v45 = vpack.c.bf16 %v49_v42, %v45_v39  ;;  %v44_v46 = vld [vmem:[%s535_s1 + $0xd0] sm:$0xff]  ;;  %v307_v48 = vpack.c.bf16 %v46_v44, %v42_v43  ;;  %v50_v49 = vld [vmem:[%s536_s2] sm:$0xff]  ;;  %v51_v52 = vld [vmem:[%s536_s2 + $0x8] sm:$0xff] }
   0xc   :  { %318 = vmatprep.subr.bf16.mxu1 %v317_v32  ;;  %v48_v47 = vld [vmem:[%s535_s1 + $0xf0] sm:$0xff]  ;;  %56 = vperm.xlu0 %327, %v50_v49   ;;  %v14_v53 = vld [vmem:[%s537_s0] sm:$0xff]  ;;  %v53_v54 = vld [vmem:[%s536_s2 + $0x18] sm:$0xff] }
   0xd   :  { %v52_v50 = vld [vmem:[%s536_s2 + $0x10] sm:$0xff]  ;;  %v323_v51 = vpack.c.bf16 %v48_v47, %v44_v46  ;;  %v15_v55 = vld [vmem:[%s537_s0 + $0x8] sm:$0xff]  ;;  %v17_v57 = vld [vmem:[%s537_s0 + $0x18] sm:$0xff] }
   0xe   :  { %304 = vmatpush1.bf16.msra.mxu0 %v303_v36  ;;  %66 = vperm.xlu1 %328, %v52_v50   ;;  %v16_v56 = vld [vmem:[%s537_s0 + $0x10] sm:$0xff] }
   0xf   :  { %320 = vmatpush1.bf16.msra.mxu1 %v319_v40  ;;  %306 = vmatprep.subr.bf16.mxu0 %v305_v41 }
  0x10   :  { %322 = vmatprep.subr.bf16.mxu1 %v321_v45  ;;  %61 = vperm.xlu0 %327, %v51_v52  }
  0x12   :  { %308 = vmatpush1.bf16.msra.mxu0 %v307_v48  ;;  %71 = vperm.xlu1 %328, %v53_v54  }
  0x13   :  { %324 = vmatpush1.bf16.msra.mxu1 %v323_v51 }
  0x15   :  { %285 = vmatmul.mubr.msk.f32.vlgmr.msra.gmra.mrb[0].mxu0 %vm74_vm0, %v14_v53 }
  0x16   :  { %289 = vmatmul.mubr.msk.f32.vlgmr.msra.gmra.mrb[0].mxu1 %vm74_vm0, %v14_v53  ;;  %157 = vmatprep.mubr.f32.mxu0 %v329_v3 }
  0x17   :  { %246 = vmatprep.mubr.f32.mxu1 %v329_v3 }
  0x19   :  { %286 = vmatmul.mubr.msk.f32.gmra.mrb[2].mxu0 %vm74_vm0, %v15_v55 }
  0x1a   :  { %290 = vmatmul.mubr.msk.f32.gmra.mrb[2].mxu1 %vm74_vm0, %v15_v55  ;;  %163 = vmatprep.mubr.f32.mxu0 %v329_v3 }
  0x1b   :  { %252 = vmatprep.mubr.f32.mxu1 %v329_v3 }
  0x1d   :  { %287 = vmatmul.mubr.msk.f32.gmra.mrb[4].mxu0 %vm74_vm0, %v16_v56 }
  0x1e   :  { %291 = vmatmul.mubr.msk.f32.gmra.mrb[4].mxu1 %vm74_vm0, %v16_v56  ;;  %169 = vmatprep.mubr.f32.mxu0 %v329_v3 }
  0x1f   :  { %258 = vmatprep.mubr.f32.mxu1 %v329_v3 }
  0x21   :  { %288 = vmatmul.mubr.msk.f32.gmra.mrb[6].mxu0 %vm74_vm0, %v17_v57 }
  0x22   :  { %292 = vmatmul.mubr.msk.f32.gmra.mrb[6].mxu1 %vm74_vm0, %v17_v57 }
  0x8b   :  { %v57_v58 = vpop.permute.xlu0 %56 }
  0x8d   :  { %v67_v9 = vpop.permute.xlu1 %66 }
  0x8f   :  { %v62_v2 = vpop.permute.xlu0 %61 }
  0x91   :  { %v72_v21 = vpop.permute.xlu1 %71 }
  0xe8   :  { %v153_v59 = vpop.f32.mrb[0].mxu0 }
  0xe9   :  { %v154_v60 = vadd.f32 %v153_v59, %v57_v58  ;;  %v242_v61 = vpop.f32.mrb[0].mxu1  ;;  %v155_v62 = vpop.f32.mrb[1].mxu0 }
  0xea   :  { %v243_v63 = vadd.f32 %v242_v61, %v57_v58  ;;  %v156_v0 = vadd.f32 %v155_v62, %v57_v58  ;;  %v244_v1 = vpop.f32.mrb[1].mxu1 }
  0xeb   :  { %265 = vst [vmem:[%s538_s3] sm:$0xff] %v154_v60  ;;  %v245_v4 = vadd.f32 %v244_v1, %v57_v58 }
  0xec   :  { %267 = vst [vmem:[%s538_s3 + $0x10] sm:$0xff] %v243_v63  ;;  %266 = vst [vmem:[%s538_s3 + $0x8] sm:$0xff] %v156_v0  ;;  %v159_v3 = vpop.f32.mrb[2].mxu0 }
  0xed   :  { %268 = vst [vmem:[%s538_s3 + $0x18] sm:$0xff] %v245_v4  ;;  %v160_v5 = vadd.f32 %v159_v3, %v62_v2  ;;  %v248_v6 = vpop.f32.mrb[2].mxu1  ;;  %v161_v7 = vpop.f32.mrb[3].mxu0 }
  0xee   :  { %v249_v8 = vadd.f32 %v248_v6, %v62_v2  ;;  %v162_v10 = vadd.f32 %v161_v7, %v62_v2  ;;  %v250_v11 = vpop.f32.mrb[3].mxu1 }
  0xef   :  { %269 = vst [vmem:[%s538_s3 + $0x20] sm:$0xff] %v160_v5  ;;  %v251_v12 = vadd.f32 %v250_v11, %v62_v2 }
  0xf0   :  { %271 = vst [vmem:[%s538_s3 + $0x30] sm:$0xff] %v249_v8  ;;  %270 = vst [vmem:[%s538_s3 + $0x28] sm:$0xff] %v162_v10  ;;  %v165_v13 = vpop.f32.mrb[4].mxu0 }
  0xf1   :  { %272 = vst [vmem:[%s538_s3 + $0x38] sm:$0xff] %v251_v12  ;;  %v166_v14 = vadd.f32 %v165_v13, %v67_v9  ;;  %v254_v15 = vpop.f32.mrb[4].mxu1  ;;  %v167_v16 = vpop.f32.mrb[5].mxu0 }
  0xf2   :  { %v255_v17 = vadd.f32 %v254_v15, %v67_v9  ;;  %v168_v18 = vadd.f32 %v167_v16, %v67_v9  ;;  %v256_v19 = vpop.f32.mrb[5].mxu1 }
  0xf3   :  { %273 = vst [vmem:[%s538_s3 + $0x40] sm:$0xff] %v166_v14  ;;  %v257_v20 = vadd.f32 %v256_v19, %v67_v9 }
  0xf4   :  { %275 = vst [vmem:[%s538_s3 + $0x50] sm:$0xff] %v255_v17  ;;  %274 = vst [vmem:[%s538_s3 + $0x48] sm:$0xff] %v168_v18  ;;  %v171_v22 = vpop.f32.mrb[6].mxu0 }
  0xf5   :  { %276 = vst [vmem:[%s538_s3 + $0x58] sm:$0xff] %v257_v20  ;;  %v172_v23 = vadd.f32 %v171_v22, %v72_v21  ;;  %v260_v24 = vpop.f32.mrb[6].mxu1  ;;  %v173_v25 = vpop.f32.mrb[7].mxu0 }
  0xf6   :  { %v261_v26 = vadd.f32 %v260_v24, %v72_v21  ;;  %v174_v27 = vadd.f32 %v173_v25, %v72_v21  ;;  %v262_v28 = vpop.f32.mrb[7].mxu1 }
  0xf7   :  { %277 = vst [vmem:[%s538_s3 + $0x60] sm:$0xff] %v172_v23  ;;  %v263_v29 = vadd.f32 %v262_v28, %v72_v21 }
  0xf8   :  { %279 = vst [vmem:[%s538_s3 + $0x70] sm:$0xff] %v261_v26  ;;  %278 = vst [vmem:[%s538_s3 + $0x68] sm:$0xff] %v174_v27 }
  0xf9   :  { %280 = vst [vmem:[%s538_s3 + $0x78] sm:$0xff] %v263_v29 }

// kernel: vnet_forward.49
= control target key start
LH: loop header
LB: loop body
LE: loop exit
PB: predicated region body
PF: predicated region fallthrough
CT: control target
= control target key end

     0   :  { %s723_s14 = smov 0   ;;  %s759_s0 = inlined_call_operand.vmem [shape: f32[1,4], index: 0, kind: input, shape index: {}]   ;;  %s760_s1 = inlined_call_operand.vmem [shape: f32[4,4096], index: 1, kind: input, shape index: {}]   ;;  %s761_s2 = inlined_call_operand.<no memory space> [shape: f32[1,1], index: 2, kind: input, shape index: {}]   ;;  %s762_s3 = inlined_call_operand.vmem [shape: f32[1,4096], index: 3, kind: output, shape index: {}]  }
   0x1   :  { %v8_v0 = vstv %s761_s2 }
   0x2   :  { %9 = vst [vmem:[#allocation2] sm:$0x1] %v8_v0 }
   0x3 LB: > { %s635_s15 = sadd.s32 4294967295, %s695_s14   ;;  %p639_p0 = scmp.ge.s32.totalorder %s695_s14, 1  ;;  %s695_s14 = sphi %s723_s14, %s15_s14  }
   0x4   : > { %p140_p1 = scmp.lt.s32.totalorder %s695_s14, 5 }
   0x6   : > { %p141_p2 = pnand %p639_p0, %p140_p1 }
   0x7   : > { %s640_s16 = sshll.u32 (!%p141_p2), %s635_s15, 3  ;;  %v697_v1 = vmov (!%p141_p2), 0.0   ;;  %v698_v3 = vmov (!%p141_p2), 0   ;;  %vm201_vm0 = vcmask (!%p141_p2), 1043456   ;;  %v174_v10 = vld [vmem:[%s759_s0] sm:$0x1] (!%p141_p2)  ;;  %v185_v13 = vlaneseq (!%p141_p2) }
   0x8   : > { %144 = sbr.rel (%p141_p2) target bundleno = 270 (0x10e), region = 32  ;;  %p164_p3 = scmp.lt.s32.totalorder (!%p141_p2), %s640_s16, 31  ;;  %282 = vmatprep.mubr.f32.mxu0 (!%p141_p2), %v697_v1  ;;  %353 = vmatprep.mubr.f32.mxu1 (!%p141_p2), %v697_v1  ;;  %vm197_vm1 = vcmask (!%p141_p2), 31744   ;;  %v699_v34 = vmov (!%p141_p2), 1966171168  }
   0x9   : > { %v179_v2 = vld [vmem:[#allocation2] sm:$0x1] (!%p141_p2)  ;;  %668 = vset.pattern.permute.xlu0 (!%p141_p2), %v698_v3  ;;  %v186_v14 = vshrl.u32 (!%p141_p2), %v185_v13, 7  ;;  %v539_v35 = vunpack.c.l.s4 (!%p141_p2), %v699_v34 }
   0xa   : > { %182 = vperm.xlu0 (!%p141_p2), %668, %v179_v2  }
   0xb   : > { %v187_v15 = vsub.s32 (!%p141_p2), 0, %v186_v14  ;;  %v540_v38 = vunpack.c.0.s8 (!%p141_p2), %v539_v35 }
   0xd   : > { %v543_v49 = vsub.s32 (!%p141_p2), %v540_v38, %v186_v14 }
   0xf   : > { %s764_s16 = smov (!%p164_p3, %s640_s16), 31 }
  0x10   : > { %s641_s2 = sshll.u32 %s764_s16, 2  ;;  %s172_s24 = scalar_lea.vmem %s762_s3, %s764_s16 }
  0x11   : > { %s167_s19 = scalar_lea.vmem %s760_s1, %s641_s2 }
  0x12   : > { %v175_v4 = vld [vmem:[%s167_s19] sm:$0xff]  ;;  %v176_v5 = vld [vmem:[%s167_s19 + $0x8] sm:$0xff]  ;;  %v177_v6 = vld [vmem:[%s167_s19 + $0x10] sm:$0xff] }
  0x13   : > { %v193_v7 = vcombine.high %v175_v4, %v175_v4  ;;  %v194_v8 = vcombine.high %v176_v5, %v176_v5  ;;  %v178_v9 = vld [vmem:[%s167_s19 + $0x18] sm:$0xff]  ;;  %v195_v11 = vcombine.high %v177_v6, %v177_v6 }
  0x14   : > { %v196_v12 = vcombine.high %v178_v9, %v178_v9 }
  0x15   : > { %643 = vmatprep.subr.msk.mxu0 %vm201_vm0, %v193_v7  ;;  %646 = vmatprep.subr.msk.mxu1 %vm201_vm0, %v194_v8 }
  0x16   : > { %644 = vmatpush1.msk.msra.mxu0 %vm201_vm0, %v175_v4  ;;  %647 = vmatpush1.msk.msra.mxu1 %vm201_vm0, %v176_v5 }
  0x17   : > { %645 = vmatmul.mubr.msk.f32.vlgmr.msra.gmra.mrb[0].mxu0 %vm197_vm1, %v174_v10  ;;  %648 = vmatmul.mubr.msk.f32.vlgmr.msra.gmra.mrb[0].mxu1 %vm197_vm1, %v174_v10 }
  0x18   : > { %649 = vmatprep.subr.msk.mxu0 %vm201_vm0, %v195_v11  ;;  %652 = vmatprep.subr.msk.mxu1 %vm201_vm0, %v196_v12 }
  0x19   : > { %650 = vmatpush1.msk.msra.mxu0 %vm201_vm0, %v177_v6  ;;  %653 = vmatpush1.msk.msra.mxu1 %vm201_vm0, %v178_v9 }
  0x1a   : > { %424 = vmatprep.mubr.f32.mxu0 %v697_v1  ;;  %495 = vmatprep.mubr.f32.mxu1 %v697_v1 }
  0x1b   : > { %651 = vmatmul.mubr.msk.f32.vlgmr.msra.gmra.mrb[2].mxu0 %vm197_vm1, %v174_v10  ;;  %654 = vmatmul.mubr.msk.f32.vlgmr.msra.gmra.mrb[2].mxu1 %vm197_vm1, %v174_v10 }
  0x89   : > { %v183_v16 = vpop.permute.xlu0 %182 }
  0x8a   : > { %v188_v17 = vrot.slane %v183_v16, %v187_v15 }
  0xea   : > { %v284_v18 = vpop.f32.mrb[0].mxu0  ;;  %v355_v19 = vpop.f32.mrb[0].mxu1 }
  0xeb   : > { %v285_v20 = vadd.f32 %v284_v18, %v188_v17  ;;  %v356_v21 = vadd.f32 %v355_v19, %v188_v17  ;;  %v286_v22 = vpop.f32.mrb[1].mxu0  ;;  %v357_v23 = vpop.f32.mrb[1].mxu1 }
  0xec   : > { %v287_v24 = vadd.f32 %v286_v22, %v188_v17  ;;  %v358_v25 = vadd.f32 %v357_v23, %v188_v17 }
  0xed   : > { %673 = vtanh.f32 %v285_v20 }
  0xee   : > { %675 = vtanh.f32 %v356_v21  ;;  %v426_v26 = vpop.f32.mrb[2].mxu0  ;;  %v497_v27 = vpop.f32.mrb[2].mxu1 }
  0xef   : > { %677 = vtanh.f32 %v287_v24  ;;  %v427_v28 = vadd.f32 %v426_v26, %v188_v17  ;;  %v498_v29 = vadd.f32 %v497_v27, %v188_v17  ;;  %v428_v30 = vpop.f32.mrb[3].mxu0  ;;  %v499_v31 = vpop.f32.mrb[3].mxu1 }
  0xf0   : > { %679 = vtanh.f32 %v358_v25  ;;  %v429_v32 = vadd.f32 %v428_v30, %v188_v17  ;;  %v500_v33 = vadd.f32 %v499_v31, %v188_v17 }
  0xf1   : > { %681 = vtanh.f32 %v427_v28 }
  0xf2   : > { %683 = vtanh.f32 %v498_v29 }
  0xf3   : > { %685 = vtanh.f32 %v429_v32 }
  0xf4   : > { %687 = vtanh.f32 %v500_v33 }
  0xf7   : > { %v674_v36 = vpop.eup %673 }
  0xf8   : > { %v676_v37 = vpop.eup %675  ;;  %v510_v39 = vmul.f32 0.5, %v674_v36 }
  0xf9   : > { %v678_v40 = vpop.eup %677  ;;  %v512_v41 = vmul.f32 0.5, %v676_v37 }
  0xfa   : > { %v680_v42 = vpop.eup %679  ;;  %v518_v43 = vadd.f32 0.5, %v510_v39  ;;  %v511_v44 = vmul.f32 0.5, %v678_v40 }
  0xfb   : > { %v682_v45 = vpop.eup %681  ;;  %v520_v46 = vadd.f32 0.5, %v512_v41  ;;  %v513_v47 = vmul.f32 0.5, %v680_v42 }
  0xfc   : > { %v684_v48 = vpop.eup %683  ;;  %v519_v50 = vadd.f32 0.5, %v511_v44  ;;  %v514_v51 = vmul.f32 0.5, %v682_v45 }
  0xfd   : > { %v686_v52 = vpop.eup %685  ;;  %v521_v53 = vadd.f32 0.5, %v513_v47  ;;  %v516_v54 = vmul.f32 0.5, %v684_v48 }
  0xfe   : > { %v688_v55 = vpop.eup %687  ;;  %v534_v56 = vcombine.low %v518_v43, %v519_v50  ;;  %v522_v57 = vadd.f32 0.5, %v514_v51  ;;  %v515_v58 = vmul.f32 0.5, %v686_v52 }
  0xff   : > { %v535_v59 = vcombine.low %v520_v46, %v521_v53  ;;  %v524_v60 = vadd.f32 0.5, %v516_v54  ;;  %v517_v61 = vmul.f32 0.5, %v688_v55 }
 0x100   : > { %v544_v62 = vrot.slane %v534_v56, %v543_v49  ;;  %v523_v63 = vadd.f32 0.5, %v515_v58 }
 0x101   : > { %v551_v0 = vrot.slane %v535_v59, %v543_v49  ;;  %v525_v1 = vadd.f32 0.5, %v517_v61 }
 0x102   : > { %v536_v2 = vcombine.low %v522_v57, %v523_v63 }
 0x103   : > { %v566_v3 = vcombine.low %v544_v62, %v551_v0  ;;  %v537_v4 = vcombine.low %v524_v60, %v525_v1 }
 0x104   : > { %v558_v5 = vrot.slane %v536_v2, %v543_v49 }
 0x105   : > { %v565_v6 = vrot.slane %v537_v4, %v543_v49  ;;  %v574_v8 = vrot.slane %v566_v3, %v543_v49 }
 0x107   : > { %v567_v7 = vcombine.low %v558_v5, %v565_v6 }
 0x109   : > { %v581_v9 = vrot.slane %v567_v7, %v543_v49 }
 0x10b   : > { %v582_v10 = vcombine.low %v574_v8, %v581_v9 }
 0x10d   : > { %584 = vst [vmem:[%s172_s24] sm:$0xff] %v582_v10 }
 0x10e PF: > { %s15_s14 = sadd.s32 1, %s695_s14  }
 0x10f   : > { %p12_p4 = scmp.ge.s32.totalorder %s15_s14, 6  }
 0x111   :  { %14 = sbr.rel (!%p12_p4) target bundleno = 3 (0x3), region = 62 }

</bundles_post_ra>
